<compile_context>
chip_gen: v7x
topology: tpu7x:2x2x1
jax: 0.10.0
libtpu: 0.0.40
codegen_flags: <defaults>
</compile_context>

<pallas_src>
import math

import jax
import jax.numpy as jnp
from jax.experimental import pallas as pl
from jax.experimental.pallas import tpu as pltpu

CP = 128        # padded channel / med-id-vocab width (lane-dense)
NUM_MEDS = 13   # med slots per timestep


def _round_up(a, m):
    return ((a + m - 1) // m) * m


def _halo_pad(dilations, T):
    # Side taps only reach real data when dilation < T; size the halo for those only.
    reach = [d for d in dilations if d < T]
    dmax = max(reach) if reach else 1
    return _round_up(max(dmax, 8), 8)


def _gelu_tanh(x):
    # tanh-form GELU: one EUP tanh instead of the erf poly chain (~1e-3 abs vs exact erf).
    c = 0.7978845608028654  # sqrt(2/pi)
    return 0.5 * x * (1.0 + jnp.tanh(c * (x + 0.044715 * x * x * x)))


# ----------------------------------------------------------------------------
# Fused kernel: embedding-sum + input_fc + mask  ->  full DilatedConvEncoder stack.
# One grid step handles Bt sequences; all weights stay resident in VMEM.
# ----------------------------------------------------------------------------
def make_fused_kernel(Bt, T, T8, P, dilations):
    NB = len(dilations)
    M = Bt * T8                     # matmul M dimension (rows per grid step)

    def kernel(ids_ref, scale_ref, mask_ref, mw_ref, bfc_ref,
               w1_ref, b1_ref, w2_ref, b2_ref, wp_ref, bp_ref,
               out_ref, g_scr):
        # ---- prologue: h = mask * (input_fc(sum_j scale_j * med_table[id_j])) ----
        # realized as a scale-weighted one-hot (M,128) @ fused (med_table@W_fc) (128,128).
        lane = jax.lax.broadcasted_iota(jnp.int32, (M, CP), 1)
        s = scale_ref[:, 0:1] * (ids_ref[:, 0:1] == lane).astype(jnp.float32)
        for j in range(1, NUM_MEDS):                              # static unroll, J=13
            s = s + scale_ref[:, j:j + 1] * (ids_ref[:, j:j + 1] == lane).astype(jnp.float32)
        h = jnp.dot(s, mw_ref[...], preferred_element_type=jnp.float32)
        h = (h + bfc_ref[...]) * mask_ref[...]                    # (M, 128) f32

        # ---- zero the scratch halo rows once; they are never written afterwards ----
        g_scr[:, :P, :] = jnp.zeros((Bt, P, CP), jnp.bfloat16)
        g_scr[:, P + T:, :] = jnp.zeros((Bt, P + (T8 - T), CP), jnp.bfloat16)

        def write_g(hval):
            g = _gelu_tanh(hval).astype(jnp.bfloat16).reshape(Bt, T8, CP)
            if T == T8:
                g_scr[:, P:P + T8, :] = g
            else:
                g_scr[:, P:P + T, :] = g[:, :T, :]   # keep [T:T8) rows of the halo zero

        def conv3(w_ref, b_ref, blk, d):
            # 3-tap dilated conv as (up to) three accumulating K=128 bf16 matmuls.
            ctr = g_scr[:, P:P + T8, :].reshape(M, CP)
            acc = jnp.dot(ctr, w_ref[blk, 1], preferred_element_type=jnp.float32)
            if d < T:    # side taps only see real data when the dilation fits in the seq
                lo = g_scr[:, P - d:P - d + T8, :].reshape(M, CP)
                hi = g_scr[:, P + d:P + d + T8, :].reshape(M, CP)
                acc = acc + jnp.dot(lo, w_ref[blk, 0], preferred_element_type=jnp.float32)
                acc = acc + jnp.dot(hi, w_ref[blk, 2], preferred_element_type=jnp.float32)
            return acc + b_ref[blk]

        # ---- DilatedConvEncoder: ConvBlock x NB, statically unrolled ----
        for i, d in enumerate(dilations):
            if i == NB - 1:                 # only the final block has a projector
                resid = jnp.dot(h.astype(jnp.bfloat16), wp_ref[...],
                                preferred_element_type=jnp.float32) + bp_ref[...]
            else:
                resid = h                   # identity residual: no matmul
            write_g(h)
            h = conv3(w1_ref, b1_ref, i, d)
            write_g(h)
            h = conv3(w2_ref, b2_ref, i, d)
            h = h + resid
        out_ref[...] = h

    return kernel


def fused_encoder(ids, scale, mask, params, target_m=512):
    """ids/scale: (B, T, 13), mask: (B, T, 1).  Returns (B, T, 128) f32 (lane-dense)."""
    B, T, J = ids.shape
    dils = tuple(params["dilations"])
    NB = len(dils)
    T8 = _round_up(T, 8)
    P = _halo_pad(dils, T)

    # Batch tile: make matmul M = Bt*T8 large, but keep >=2 grid steps when B allows
    # (v7x megacore).  Padded batch rows have mask=0 and are discarded on output.
    Bt = max(1, min(B, max(1, target_m // T8)))
    if B > 1:
        Bt = min(Bt, max(1, (B + 1) // 2))
    B_pad = _round_up(B, Bt)
    M = Bt * T8

    def pad_bt(a):
        return jnp.pad(a, ((0, B_pad - B), (0, T8 - T), (0, 0)))

    ids2 = pad_bt(ids).reshape(B_pad * T8, J)
    scale2 = pad_bt(scale).reshape(B_pad * T8, J)
    mask2 = pad_bt(mask).reshape(B_pad * T8, 1)

    # Explicit VMEM budget (v7x has only 64 MiB physical per TC).
    def _nbytes(a):
        return a.size * a.dtype.itemsize
    weight_bytes = sum(_nbytes(params[k]) for k in
                       ("mw_pad", "bfc_pad", "w1s", "b1s", "w2s", "b2s", "wp_pad", "bp_pad"))
    io_bytes = M * (2 * J * 4 + 4) + M * CP * 4
    scratch_bytes = Bt * (T8 + 2 * P) * CP * 2
    est = 2 * (weight_bytes + io_bytes) + scratch_bytes + (8 << 20)
    vmem_limit = int(min(max(est, 32 << 20), 64 << 20))

    kernel = make_fused_kernel(Bt, T, T8, P, dils)
    out = pl.pallas_call(
        kernel,
        out_shape=jax.ShapeDtypeStruct((B_pad * T8, CP), jnp.float32),
        grid=(B_pad // Bt,),
        in_specs=[
            pl.BlockSpec((M, J), lambda b: (b, 0)),
            pl.BlockSpec((M, J), lambda b: (b, 0)),
            pl.BlockSpec((M, 1), lambda b: (b, 0)),
            pl.BlockSpec((CP, CP), lambda b: (0, 0)),               # fused embed table (resident)
            pl.BlockSpec((1, CP), lambda b: (0, 0)),
            pl.BlockSpec((NB, 3, CP, CP), lambda b: (0, 0, 0, 0)),  # resident bf16 conv weights
            pl.BlockSpec((NB, 1, CP), lambda b: (0, 0, 0)),
            pl.BlockSpec((NB, 3, CP, CP), lambda b: (0, 0, 0, 0)),
            pl.BlockSpec((NB, 1, CP), lambda b: (0, 0, 0)),
            pl.BlockSpec((CP, CP), lambda b: (0, 0)),
            pl.BlockSpec((1, CP), lambda b: (0, 0)),
        ],
        out_specs=pl.BlockSpec((M, CP), lambda b: (b, 0)),
        scratch_shapes=[pltpu.VMEM((Bt, T8 + 2 * P, CP), jnp.bfloat16)],
        compiler_params=pltpu.CompilerParams(
            dimension_semantics=("parallel",),
            vmem_limit_bytes=vmem_limit),
    )(ids2, scale2, mask2, params["mw_pad"], params["bfc_pad"],
      params["w1s"], params["b1s"], params["w2s"], params["b2s"],
      params["wp_pad"], params["bp_pad"])

    return out.reshape(B_pad, T8, CP)[:B, :T, :]


# ----------------------------------------------------------------------------
# Parameter init (deterministic, synthetic) + host-side packing/padding to Cp=128
# ----------------------------------------------------------------------------
def init_params(key, med_embed_dim, hidden_dims, output_dims, depth):
    keys = iter(jax.random.split(key, 256))
    nk = lambda: next(keys)

    med_table = 0.1 * jax.random.normal(nk(), (92 + 1, med_embed_dim), jnp.float32)
    med_table = med_table.at[0].set(0.0)            # padding_idx = 0
    unit_table = 0.1 * jax.random.normal(nk(), (218 + 1, 1), jnp.float32)
    unit_table = unit_table.at[0].set(0.0)          # padding_idx = 0

    w_fc = jax.random.normal(nk(), (med_embed_dim, hidden_dims), jnp.float32) / math.sqrt(med_embed_dim)
    b_fc = 0.01 * jax.random.normal(nk(), (1, hidden_dims), jnp.float32)

    # Fuse embedding table with input_fc (both linear in med_table rows); pad to 128x128.
    mw = med_table @ w_fc                                             # (93, H)
    mw_pad = jnp.zeros((CP, CP), jnp.float32).at[:mw.shape[0], :hidden_dims].set(mw)
    bfc_pad = jnp.zeros((1, CP), jnp.float32).at[:, :hidden_dims].set(b_fc)

    channels = [hidden_dims] * depth + [output_dims]
    NB = len(channels)
    w1s, b1s, w2s, b2s, dils = [], [], [], [], []
    wp_pad = jnp.zeros((CP, CP), jnp.float32)
    bp_pad = jnp.zeros((1, CP), jnp.float32)
    cin = hidden_dims
    for i, cout in enumerate(channels):
        final = i == NB - 1
        if not final:
            assert cin == cout, "non-final blocks are identity-residual in this architecture"
        w1 = jax.random.normal(nk(), (3, cin, cout), jnp.float32) / math.sqrt(3 * cin)
        b1 = 0.01 * jax.random.normal(nk(), (1, cout), jnp.float32)
        w2 = jax.random.normal(nk(), (3, cout, cout), jnp.float32) / math.sqrt(3 * cout)
        b2 = 0.01 * jax.random.normal(nk(), (1, cout), jnp.float32)
        w1s.append(jnp.zeros((3, CP, CP), jnp.float32).at[:, :cin, :cout].set(w1))
        w2s.append(jnp.zeros((3, CP, CP), jnp.float32).at[:, :cout, :cout].set(w2))
        b1s.append(jnp.zeros((1, CP), jnp.float32).at[:, :cout].set(b1))
        b2s.append(jnp.zeros((1, CP), jnp.float32).at[:, :cout].set(b2))
        dils.append(2 ** i)
        if cin != cout or final:
            wp = jax.random.normal(nk(), (cin, cout), jnp.float32) / math.sqrt(cin)
            bp = 0.01 * jax.random.normal(nk(), (1, cout), jnp.float32)
            wp_pad = jnp.zeros((CP, CP), jnp.float32).at[:cin, :cout].set(wp)
            bp_pad = jnp.zeros((1, CP), jnp.float32).at[:, :cout].set(bp)
        cin = cout

    return dict(
        unit_table=unit_table,
        mw_pad=mw_pad, bfc_pad=bfc_pad,
        w1s=jnp.stack(w1s).astype(jnp.bfloat16),     # (NB, 3, CP, CP) bf16 MXU operands
        b1s=jnp.stack(b1s),
        w2s=jnp.stack(w2s).astype(jnp.bfloat16),
        b2s=jnp.stack(b2s),
        wp_pad=wp_pad.astype(jnp.bfloat16), bp_pad=bp_pad,
        dilations=tuple(dils), output_dims=output_dims,
    )


# ----------------------------------------------------------------------------
# Forward pass (eval-mode semantics of TSEncoder_m.forward)
# ----------------------------------------------------------------------------
def ts_encoder_forward(x, params):
    B, T, Fdim = x.shape

    # nan_mask = ~x.isnan().any(-1);  x[~nan_mask] = 0
    nan_mask = jnp.logical_not(jnp.any(jnp.isnan(x), axis=-1))        # (B, T)
    x = jnp.where(nan_mask[..., None], x, 0.0)

    ids = x[:, :, :13].astype(jnp.int32)            # med ids
    doses = x[:, :, 13:26].astype(jnp.float32)      # med doses
    units = x[:, :, Fdim - 13:].astype(jnp.int32)   # med unit ids

    # unit embedding is a scalar table (219x1) -> tiny gather kept in XLA glue.
    unit_scale = params["unit_table"][units][..., 0]                  # (B, T, 13)
    scale = (unit_scale * doses).astype(jnp.float32)
    mask = nan_mask.astype(jnp.float32)[..., None]                    # eval: all_true & nan_mask

    out = fused_encoder(ids, scale, mask, params)                     # (B, T, 128) f32

    # repr_dropout is identity in eval mode; consumer-side slice strips channel padding
    # (the kernel store itself stays lane-dense 128-wide).
    return out[..., :params["output_dims"]]


# ----------------------------------------------------------------------------
# Pure-JAX f32 reference (exact-erf GELU) for a tolerance check.
# ----------------------------------------------------------------------------
def ts_encoder_reference(x, params):
    B, T, Fdim = x.shape
    nan_mask = jnp.logical_not(jnp.any(jnp.isnan(x), axis=-1))
    x = jnp.where(nan_mask[..., None], x, 0.0)
    ids = x[:, :, :13].astype(jnp.int32)
    doses = x[:, :, 13:26].astype(jnp.float32)
    units = x[:, :, Fdim - 13:].astype(jnp.int32)
    scale = params["unit_table"][units][..., 0] * doses               # (B, T, 13)

    emb = params["mw_pad"][ids]                                       # (B, T, 13, 128)
    h = jnp.sum(scale[..., None] * emb, axis=2) + params["bfc_pad"][0]
    h = h * nan_mask[..., None]

    def gelu_exact(v):
        return 0.5 * v * (1.0 + jax.lax.erf(v / jnp.sqrt(2.0)))

    def conv(g, w, b, d):
        gp = jnp.pad(g, ((0, 0), (d, d), (0, 0)))
        out = gp[:, 0:T, :] @ w[0] + gp[:, d:d + T, :] @ w[1] + gp[:, 2 * d:2 * d + T, :] @ w[2]
        return out + b

    w1s = params["w1s"].astype(jnp.float32)
    w2s = params["w2s"].astype(jnp.float32)
    NB = w1s.shape[0]
    for i, d in enumerate(params["dilations"]):
        if i == NB - 1:
            resid = h @ params["wp_pad"].astype(jnp.float32) + params["bp_pad"]
        else:
            resid = h
        h = conv(gelu_exact(h), w1s[i], params["b1s"][i], d)
        h = conv(gelu_exact(h), w2s[i], params["b2s"][i], d)
        h = h + resid
    return h[..., :params["output_dims"]]


# ----------------------------------------------------------------------------
if __name__ == "__main__":
    B, T = 2, 16
    MED_EMBED_DIM, HIDDEN, OUTPUT_DIMS, DEPTH = 8, 32, 16, 2

    key = jax.random.PRNGKey(0)
    k_ids, k_doses, k_units, k_params = jax.random.split(key, 4)

    ids = jax.random.randint(k_ids, (B, T, NUM_MEDS), 0, 92 + 1).astype(jnp.float32)
    doses = jax.random.uniform(k_doses, (B, T, NUM_MEDS), jnp.float32, 0.0, 5.0)
    units = jax.random.randint(k_units, (B, T, NUM_MEDS), 0, 218 + 1).astype(jnp.float32)
    x = jnp.concatenate([ids, doses, units], axis=-1)                 # (B, T, 39)
    x = x.at[0, 3, 15].set(jnp.nan)   # exercise the nan_mask path

    params = init_params(k_params, MED_EMBED_DIM, HIDDEN, OUTPUT_DIMS, DEPTH)

    out = ts_encoder_forward(x, params)
    jax.block_until_ready(out)

    assert out.shape == (B, T, OUTPUT_DIMS), out.shape
    assert bool(jnp.all(jnp.isfinite(out)))

    # Tolerance vs f32/exact-erf reference (kernel uses bf16 MXU operands + tanh GELU).
    ref = ts_encoder_reference(x, params)
    err_ok = jnp.all(jnp.abs(out - ref) <= 0.05 + 0.05 * jnp.abs(ref))
    assert bool(err_ok), float(jnp.max(jnp.abs(out - ref)))

    print("KERNEL_OK")
</pallas_src>

<mosaic_0001>
module attributes {stable_mosaic.version = 11 : i64} {
  func.func @kernel(%arg0: i32, %arg1: memref<16x13xi32, #tpu.memory_space<vmem>>, %arg2: memref<16x13xf32, #tpu.memory_space<vmem>>, %arg3: memref<16x1xf32, #tpu.memory_space<vmem>>, %arg4: memref<128x128xf32, #tpu.memory_space<vmem>>, %arg5: memref<1x128xf32, #tpu.memory_space<vmem>>, %arg6: memref<3x3x128x128xbf16, #tpu.memory_space<vmem>>, %arg7: memref<3x1x128xf32, #tpu.memory_space<vmem>>, %arg8: memref<3x3x128x128xbf16, #tpu.memory_space<vmem>>, %arg9: memref<3x1x128xf32, #tpu.memory_space<vmem>>, %arg10: memref<128x128xbf16, #tpu.memory_space<vmem>>, %arg11: memref<1x128xf32, #tpu.memory_space<vmem>>, %arg12: memref<16x128xf32, #tpu.memory_space<vmem>>, %arg13: memref<1x32x128xbf16, #tpu.memory_space<vmem>>) attributes {dimension_semantics = [#tpu.dimension_semantics<parallel>], iteration_bounds = array<i64: 2>, scalar_prefetch = 0 : i64, scratch_operands = 1 : i64, tpu.core_type = #tpu.core_type<tc>, window_params = [{transform_indices = @transform_0, window_bounds = array<i64: 16, 13>}, {transform_indices = @transform_1, window_bounds = array<i64: 16, 13>}, {transform_indices = @transform_2, window_bounds = array<i64: 16, 1>}, {pipeline_mode = #tpu.pipeline_mode<synchronous>, transform_indices = @transform_3, window_bounds = array<i64: 128, 128>}, {pipeline_mode = #tpu.pipeline_mode<synchronous>, transform_indices = @transform_4, window_bounds = array<i64: 1, 128>}, {pipeline_mode = #tpu.pipeline_mode<synchronous>, transform_indices = @transform_5, window_bounds = array<i64: 3, 3, 128, 128>}, {pipeline_mode = #tpu.pipeline_mode<synchronous>, transform_indices = @transform_6, window_bounds = array<i64: 3, 1, 128>}, {pipeline_mode = #tpu.pipeline_mode<synchronous>, transform_indices = @transform_7, window_bounds = array<i64: 3, 3, 128, 128>}, {pipeline_mode = #tpu.pipeline_mode<synchronous>, transform_indices = @transform_8, window_bounds = array<i64: 3, 1, 128>}, {pipeline_mode = #tpu.pipeline_mode<synchronous>, transform_indices = @transform_9, window_bounds = array<i64: 128, 128>}, {pipeline_mode = #tpu.pipeline_mode<synchronous>, transform_indices = @transform_10, window_bounds = array<i64: 1, 128>}, {transform_indices = @transform_11, window_bounds = array<i64: 16, 128>}]} {
    %0 = tpu.iota {dimensions = array<i32: 1>} : vector<16x128xi32>
    %c0 = arith.constant 0 : index
    %c0_0 = arith.constant 0 : index
    %1 = vector.load %arg2[%c0, %c0_0] : memref<16x13xf32, #tpu.memory_space<vmem>>, vector<16x1xf32>
    %c0_1 = arith.constant 0 : index
    %c0_2 = arith.constant 0 : index
    %2 = vector.load %arg1[%c0_1, %c0_2] : memref<16x13xi32, #tpu.memory_space<vmem>>, vector<16x1xi32>
    %3 = vector.broadcast %2 : vector<16x1xi32> to vector<16x128xi32>
    %4 = arith.cmpi eq, %3, %0 : vector<16x128xi32>
    %5 = arith.extui %4 : vector<16x128xi1> to vector<16x128xi32>
    %6 = arith.sitofp %5 : vector<16x128xi32> to vector<16x128xf32>
    %7 = vector.broadcast %1 : vector<16x1xf32> to vector<16x128xf32>
    %8 = arith.mulf %7, %6 : vector<16x128xf32>
    %c0_3 = arith.constant 0 : index
    %c1 = arith.constant 1 : index
    %9 = vector.load %arg2[%c0_3, %c1] : memref<16x13xf32, #tpu.memory_space<vmem>>, vector<16x1xf32>
    %c0_4 = arith.constant 0 : index
    %c1_5 = arith.constant 1 : index
    %10 = vector.load %arg1[%c0_4, %c1_5] : memref<16x13xi32, #tpu.memory_space<vmem>>, vector<16x1xi32>
    %11 = vector.broadcast %10 : vector<16x1xi32> to vector<16x128xi32>
    %12 = arith.cmpi eq, %11, %0 : vector<16x128xi32>
    %13 = arith.extui %12 : vector<16x128xi1> to vector<16x128xi32>
    %14 = arith.sitofp %13 : vector<16x128xi32> to vector<16x128xf32>
    %15 = vector.broadcast %9 : vector<16x1xf32> to vector<16x128xf32>
    %16 = arith.mulf %15, %14 : vector<16x128xf32>
    %17 = arith.addf %8, %16 : vector<16x128xf32>
    %c0_6 = arith.constant 0 : index
    %c2 = arith.constant 2 : index
    %18 = vector.load %arg2[%c0_6, %c2] : memref<16x13xf32, #tpu.memory_space<vmem>>, vector<16x1xf32>
    %c0_7 = arith.constant 0 : index
    %c2_8 = arith.constant 2 : index
    %19 = vector.load %arg1[%c0_7, %c2_8] : memref<16x13xi32, #tpu.memory_space<vmem>>, vector<16x1xi32>
    %20 = vector.broadcast %19 : vector<16x1xi32> to vector<16x128xi32>
    %21 = arith.cmpi eq, %20, %0 : vector<16x128xi32>
    %22 = arith.extui %21 : vector<16x128xi1> to vector<16x128xi32>
    %23 = arith.sitofp %22 : vector<16x128xi32> to vector<16x128xf32>
    %24 = vector.broadcast %18 : vector<16x1xf32> to vector<16x128xf32>
    %25 = arith.mulf %24, %23 : vector<16x128xf32>
    %26 = arith.addf %17, %25 : vector<16x128xf32>
    %c0_9 = arith.constant 0 : index
    %c3 = arith.constant 3 : index
    %27 = vector.load %arg2[%c0_9, %c3] : memref<16x13xf32, #tpu.memory_space<vmem>>, vector<16x1xf32>
    %c0_10 = arith.constant 0 : index
    %c3_11 = arith.constant 3 : index
    %28 = vector.load %arg1[%c0_10, %c3_11] : memref<16x13xi32, #tpu.memory_space<vmem>>, vector<16x1xi32>
    %29 = vector.broadcast %28 : vector<16x1xi32> to vector<16x128xi32>
    %30 = arith.cmpi eq, %29, %0 : vector<16x128xi32>
    %31 = arith.extui %30 : vector<16x128xi1> to vector<16x128xi32>
    %32 = arith.sitofp %31 : vector<16x128xi32> to vector<16x128xf32>
    %33 = vector.broadcast %27 : vector<16x1xf32> to vector<16x128xf32>
    %34 = arith.mulf %33, %32 : vector<16x128xf32>
    %35 = arith.addf %26, %34 : vector<16x128xf32>
    %c0_12 = arith.constant 0 : index
    %c4 = arith.constant 4 : index
    %36 = vector.load %arg2[%c0_12, %c4] : memref<16x13xf32, #tpu.memory_space<vmem>>, vector<16x1xf32>
    %c0_13 = arith.constant 0 : index
    %c4_14 = arith.constant 4 : index
    %37 = vector.load %arg1[%c0_13, %c4_14] : memref<16x13xi32, #tpu.memory_space<vmem>>, vector<16x1xi32>
    %38 = vector.broadcast %37 : vector<16x1xi32> to vector<16x128xi32>
    %39 = arith.cmpi eq, %38, %0 : vector<16x128xi32>
    %40 = arith.extui %39 : vector<16x128xi1> to vector<16x128xi32>
    %41 = arith.sitofp %40 : vector<16x128xi32> to vector<16x128xf32>
    %42 = vector.broadcast %36 : vector<16x1xf32> to vector<16x128xf32>
    %43 = arith.mulf %42, %41 : vector<16x128xf32>
    %44 = arith.addf %35, %43 : vector<16x128xf32>
    %c0_15 = arith.constant 0 : index
    %c5 = arith.constant 5 : index
    %45 = vector.load %arg2[%c0_15, %c5] : memref<16x13xf32, #tpu.memory_space<vmem>>, vector<16x1xf32>
    %c0_16 = arith.constant 0 : index
    %c5_17 = arith.constant 5 : index
    %46 = vector.load %arg1[%c0_16, %c5_17] : memref<16x13xi32, #tpu.memory_space<vmem>>, vector<16x1xi32>
    %47 = vector.broadcast %46 : vector<16x1xi32> to vector<16x128xi32>
    %48 = arith.cmpi eq, %47, %0 : vector<16x128xi32>
    %49 = arith.extui %48 : vector<16x128xi1> to vector<16x128xi32>
    %50 = arith.sitofp %49 : vector<16x128xi32> to vector<16x128xf32>
    %51 = vector.broadcast %45 : vector<16x1xf32> to vector<16x128xf32>
    %52 = arith.mulf %51, %50 : vector<16x128xf32>
    %53 = arith.addf %44, %52 : vector<16x128xf32>
    %c0_18 = arith.constant 0 : index
    %c6 = arith.constant 6 : index
    %54 = vector.load %arg2[%c0_18, %c6] : memref<16x13xf32, #tpu.memory_space<vmem>>, vector<16x1xf32>
    %c0_19 = arith.constant 0 : index
    %c6_20 = arith.constant 6 : index
    %55 = vector.load %arg1[%c0_19, %c6_20] : memref<16x13xi32, #tpu.memory_space<vmem>>, vector<16x1xi32>
    %56 = vector.broadcast %55 : vector<16x1xi32> to vector<16x128xi32>
    %57 = arith.cmpi eq, %56, %0 : vector<16x128xi32>
    %58 = arith.extui %57 : vector<16x128xi1> to vector<16x128xi32>
    %59 = arith.sitofp %58 : vector<16x128xi32> to vector<16x128xf32>
    %60 = vector.broadcast %54 : vector<16x1xf32> to vector<16x128xf32>
    %61 = arith.mulf %60, %59 : vector<16x128xf32>
    %62 = arith.addf %53, %61 : vector<16x128xf32>
    %c0_21 = arith.constant 0 : index
    %c7 = arith.constant 7 : index
    %63 = vector.load %arg2[%c0_21, %c7] : memref<16x13xf32, #tpu.memory_space<vmem>>, vector<16x1xf32>
    %c0_22 = arith.constant 0 : index
    %c7_23 = arith.constant 7 : index
    %64 = vector.load %arg1[%c0_22, %c7_23] : memref<16x13xi32, #tpu.memory_space<vmem>>, vector<16x1xi32>
    %65 = vector.broadcast %64 : vector<16x1xi32> to vector<16x128xi32>
    %66 = arith.cmpi eq, %65, %0 : vector<16x128xi32>
    %67 = arith.extui %66 : vector<16x128xi1> to vector<16x128xi32>
    %68 = arith.sitofp %67 : vector<16x128xi32> to vector<16x128xf32>
    %69 = vector.broadcast %63 : vector<16x1xf32> to vector<16x128xf32>
    %70 = arith.mulf %69, %68 : vector<16x128xf32>
    %71 = arith.addf %62, %70 : vector<16x128xf32>
    %c0_24 = arith.constant 0 : index
    %c8 = arith.constant 8 : index
    %72 = vector.load %arg2[%c0_24, %c8] : memref<16x13xf32, #tpu.memory_space<vmem>>, vector<16x1xf32>
    %c0_25 = arith.constant 0 : index
    %c8_26 = arith.constant 8 : index
    %73 = vector.load %arg1[%c0_25, %c8_26] : memref<16x13xi32, #tpu.memory_space<vmem>>, vector<16x1xi32>
    %74 = vector.broadcast %73 : vector<16x1xi32> to vector<16x128xi32>
    %75 = arith.cmpi eq, %74, %0 : vector<16x128xi32>
    %76 = arith.extui %75 : vector<16x128xi1> to vector<16x128xi32>
    %77 = arith.sitofp %76 : vector<16x128xi32> to vector<16x128xf32>
    %78 = vector.broadcast %72 : vector<16x1xf32> to vector<16x128xf32>
    %79 = arith.mulf %78, %77 : vector<16x128xf32>
    %80 = arith.addf %71, %79 : vector<16x128xf32>
    %c0_27 = arith.constant 0 : index
    %c9 = arith.constant 9 : index
    %81 = vector.load %arg2[%c0_27, %c9] : memref<16x13xf32, #tpu.memory_space<vmem>>, vector<16x1xf32>
    %c0_28 = arith.constant 0 : index
    %c9_29 = arith.constant 9 : index
    %82 = vector.load %arg1[%c0_28, %c9_29] : memref<16x13xi32, #tpu.memory_space<vmem>>, vector<16x1xi32>
    %83 = vector.broadcast %82 : vector<16x1xi32> to vector<16x128xi32>
    %84 = arith.cmpi eq, %83, %0 : vector<16x128xi32>
    %85 = arith.extui %84 : vector<16x128xi1> to vector<16x128xi32>
    %86 = arith.sitofp %85 : vector<16x128xi32> to vector<16x128xf32>
    %87 = vector.broadcast %81 : vector<16x1xf32> to vector<16x128xf32>
    %88 = arith.mulf %87, %86 : vector<16x128xf32>
    %89 = arith.addf %80, %88 : vector<16x128xf32>
    %c0_30 = arith.constant 0 : index
    %c10 = arith.constant 10 : index
    %90 = vector.load %arg2[%c0_30, %c10] : memref<16x13xf32, #tpu.memory_space<vmem>>, vector<16x1xf32>
    %c0_31 = arith.constant 0 : index
    %c10_32 = arith.constant 10 : index
    %91 = vector.load %arg1[%c0_31, %c10_32] : memref<16x13xi32, #tpu.memory_space<vmem>>, vector<16x1xi32>
    %92 = vector.broadcast %91 : vector<16x1xi32> to vector<16x128xi32>
    %93 = arith.cmpi eq, %92, %0 : vector<16x128xi32>
    %94 = arith.extui %93 : vector<16x128xi1> to vector<16x128xi32>
    %95 = arith.sitofp %94 : vector<16x128xi32> to vector<16x128xf32>
    %96 = vector.broadcast %90 : vector<16x1xf32> to vector<16x128xf32>
    %97 = arith.mulf %96, %95 : vector<16x128xf32>
    %98 = arith.addf %89, %97 : vector<16x128xf32>
    %c0_33 = arith.constant 0 : index
    %c11 = arith.constant 11 : index
    %99 = vector.load %arg2[%c0_33, %c11] : memref<16x13xf32, #tpu.memory_space<vmem>>, vector<16x1xf32>
    %c0_34 = arith.constant 0 : index
    %c11_35 = arith.constant 11 : index
    %100 = vector.load %arg1[%c0_34, %c11_35] : memref<16x13xi32, #tpu.memory_space<vmem>>, vector<16x1xi32>
    %101 = vector.broadcast %100 : vector<16x1xi32> to vector<16x128xi32>
    %102 = arith.cmpi eq, %101, %0 : vector<16x128xi32>
    %103 = arith.extui %102 : vector<16x128xi1> to vector<16x128xi32>
    %104 = arith.sitofp %103 : vector<16x128xi32> to vector<16x128xf32>
    %105 = vector.broadcast %99 : vector<16x1xf32> to vector<16x128xf32>
    %106 = arith.mulf %105, %104 : vector<16x128xf32>
    %107 = arith.addf %98, %106 : vector<16x128xf32>
    %c0_36 = arith.constant 0 : index
    %c12 = arith.constant 12 : index
    %108 = vector.load %arg2[%c0_36, %c12] : memref<16x13xf32, #tpu.memory_space<vmem>>, vector<16x1xf32>
    %c0_37 = arith.constant 0 : index
    %c12_38 = arith.constant 12 : index
    %109 = vector.load %arg1[%c0_37, %c12_38] : memref<16x13xi32, #tpu.memory_space<vmem>>, vector<16x1xi32>
    %110 = vector.broadcast %109 : vector<16x1xi32> to vector<16x128xi32>
    %111 = arith.cmpi eq, %110, %0 : vector<16x128xi32>
    %112 = arith.extui %111 : vector<16x128xi1> to vector<16x128xi32>
    %113 = arith.sitofp %112 : vector<16x128xi32> to vector<16x128xf32>
    %114 = vector.broadcast %108 : vector<16x1xf32> to vector<16x128xf32>
    %115 = arith.mulf %114, %113 : vector<16x128xf32>
    %116 = arith.addf %107, %115 : vector<16x128xf32>
    %c0_39 = arith.constant 0 : index
    %c0_40 = arith.constant 0 : index
    %117 = vector.load %arg4[%c0_39, %c0_40] : memref<128x128xf32, #tpu.memory_space<vmem>>, vector<128x128xf32>
    %cst = arith.constant dense<0.000000e+00> : vector<16x128xf32>
    %118 = tpu.matmul %116, %117, %cst {dimension_numbers = #tpu.dot_dimension_numbers<[1], [0], [0], [1], [0, 0, 1, 1], [], []>} : vector<16x128xf32>, vector<128x128xf32>, vector<16x128xf32> -> vector<16x128xf32>
    %c0_41 = arith.constant 0 : index
    %c0_42 = arith.constant 0 : index
    %119 = vector.load %arg5[%c0_41, %c0_42] : memref<1x128xf32, #tpu.memory_space<vmem>>, vector<1x128xf32>
    %120 = vector.broadcast %119 : vector<1x128xf32> to vector<16x128xf32>
    %121 = arith.addf %118, %120 : vector<16x128xf32>
    %c0_43 = arith.constant 0 : index
    %c0_44 = arith.constant 0 : index
    %122 = vector.load %arg3[%c0_43, %c0_44] : memref<16x1xf32, #tpu.memory_space<vmem>>, vector<16x1xf32>
    %123 = vector.broadcast %122 : vector<16x1xf32> to vector<16x128xf32>
    %124 = arith.mulf %121, %123 : vector<16x128xf32>
    %cst_45 = arith.constant 0.000000e+00 : bf16
    %125 = vector.broadcast %cst_45 : bf16 to vector<1x8x128xbf16>
    %c0_46 = arith.constant 0 : index
    %c0_47 = arith.constant 0 : index
    %c0_48 = arith.constant 0 : index
    %126 = vector.load %arg13[%c0_46, %c0_47, %c0_48] : memref<1x32x128xbf16, #tpu.memory_space<vmem>>, vector<1x8x128xbf16>
    tpu.vector_store %arg13[%c0_46, %c0_47, %c0_48], %125 {strides = array<i32>} : memref<1x32x128xbf16, #tpu.memory_space<vmem>>, vector<1x8x128xbf16>,
    %cst_49 = arith.constant 0.000000e+00 : bf16
    %127 = vector.broadcast %cst_49 : bf16 to vector<1x8x128xbf16>
    %c0_50 = arith.constant 0 : index
    %c24 = arith.constant 24 : index
    %c0_51 = arith.constant 0 : index
    %128 = vector.load %arg13[%c0_50, %c24, %c0_51] : memref<1x32x128xbf16, #tpu.memory_space<vmem>>, vector<1x8x128xbf16>
    tpu.vector_store %arg13[%c0_50, %c24, %c0_51], %127 {strides = array<i32>} : memref<1x32x128xbf16, #tpu.memory_space<vmem>>, vector<1x8x128xbf16>,
    %cst_52 = arith.constant 5.000000e-01 : f32
    %129 = vector.broadcast %cst_52 : f32 to vector<16x128xf32>
    %130 = arith.mulf %129, %124 : vector<16x128xf32>
    %cst_53 = arith.constant 4.471500e-02 : f32
    %131 = vector.broadcast %cst_53 : f32 to vector<16x128xf32>
    %132 = arith.mulf %131, %124 : vector<16x128xf32>
    %133 = arith.mulf %132, %124 : vector<16x128xf32>
    %134 = arith.mulf %133, %124 : vector<16x128xf32>
    %135 = arith.addf %124, %134 : vector<16x128xf32>
    %cst_54 = arith.constant 0.797884583 : f32
    %136 = vector.broadcast %cst_54 : f32 to vector<16x128xf32>
    %137 = arith.mulf %136, %135 : vector<16x128xf32>
    %138 = math.tanh %137 : vector<16x128xf32>
    %cst_55 = arith.constant 1.000000e+00 : f32
    %139 = vector.broadcast %cst_55 : f32 to vector<16x128xf32>
    %140 = arith.addf %139, %138 : vector<16x128xf32>
    %141 = arith.mulf %130, %140 : vector<16x128xf32>
    %142 = arith.truncf %141 : vector<16x128xf32> to vector<16x128xbf16>
    %143 = vector.shape_cast %142 : vector<16x128xbf16> to vector<1x16x128xbf16>
    %c0_56 = arith.constant 0 : index
    %c8_57 = arith.constant 8 : index
    %c0_58 = arith.constant 0 : index
    %144 = vector.load %arg13[%c0_56, %c8_57, %c0_58] : memref<1x32x128xbf16, #tpu.memory_space<vmem>>, vector<1x16x128xbf16>
    tpu.vector_store %arg13[%c0_56, %c8_57, %c0_58], %143 {strides = array<i32>} : memref<1x32x128xbf16, #tpu.memory_space<vmem>>, vector<1x16x128xbf16>,
    %c0_59 = arith.constant 0 : index
    %c8_60 = arith.constant 8 : index
    %c0_61 = arith.constant 0 : index
    %145 = vector.load %arg13[%c0_59, %c8_60, %c0_61] : memref<1x32x128xbf16, #tpu.memory_space<vmem>>, vector<1x16x128xbf16>
    %146 = vector.shape_cast %145 : vector<1x16x128xbf16> to vector<16x128xbf16>
    %c0_62 = arith.constant 0 : index
    %c1_63 = arith.constant 1 : index
    %c0_64 = arith.constant 0 : index
    %c0_65 = arith.constant 0 : index
    %147 = vector.load %arg6[%c0_62, %c1_63, %c0_64, %c0_65] : memref<3x3x128x128xbf16, #tpu.memory_space<vmem>>, vector<1x1x128x128xbf16>
    %148 = vector.shape_cast %147 : vector<1x1x128x128xbf16> to vector<128x128xbf16>
    %cst_66 = arith.constant dense<0.000000e+00> : vector<16x128xf32>
    %149 = tpu.matmul %146, %148, %cst_66 {dimension_numbers = #tpu.dot_dimension_numbers<[1], [0], [0], [1], [0, 0, 1, 1], [], []>} : vector<16x128xbf16>, vector<128x128xbf16>, vector<16x128xf32> -> vector<16x128xf32>
    %c0_67 = arith.constant 0 : index
    %c7_68 = arith.constant 7 : index
    %c0_69 = arith.constant 0 : index
    %150 = vector.load %arg13[%c0_67, %c7_68, %c0_69] : memref<1x32x128xbf16, #tpu.memory_space<vmem>>, vector<1x16x128xbf16>
    %151 = vector.shape_cast %150 : vector<1x16x128xbf16> to vector<16x128xbf16>
    %c0_70 = arith.constant 0 : index
    %c9_71 = arith.constant 9 : index
    %c0_72 = arith.constant 0 : index
    %152 = vector.load %arg13[%c0_70, %c9_71, %c0_72] : memref<1x32x128xbf16, #tpu.memory_space<vmem>>, vector<1x16x128xbf16>
    %153 = vector.shape_cast %152 : vector<1x16x128xbf16> to vector<16x128xbf16>
    %c0_73 = arith.constant 0 : index
    %c0_74 = arith.constant 0 : index
    %c0_75 = arith.constant 0 : index
    %c0_76 = arith.constant 0 : index
    %154 = vector.load %arg6[%c0_73, %c0_74, %c0_75, %c0_76] : memref<3x3x128x128xbf16, #tpu.memory_space<vmem>>, vector<1x1x128x128xbf16>
    %155 = vector.shape_cast %154 : vector<1x1x128x128xbf16> to vector<128x128xbf16>
    %cst_77 = arith.constant dense<0.000000e+00> : vector<16x128xf32>
    %156 = tpu.matmul %151, %155, %cst_77 {dimension_numbers = #tpu.dot_dimension_numbers<[1], [0], [0], [1], [0, 0, 1, 1], [], []>} : vector<16x128xbf16>, vector<128x128xbf16>, vector<16x128xf32> -> vector<16x128xf32>
    %157 = arith.addf %149, %156 : vector<16x128xf32>
    %c0_78 = arith.constant 0 : index
    %c2_79 = arith.constant 2 : index
    %c0_80 = arith.constant 0 : index
    %c0_81 = arith.constant 0 : index
    %158 = vector.load %arg6[%c0_78, %c2_79, %c0_80, %c0_81] : memref<3x3x128x128xbf16, #tpu.memory_space<vmem>>, vector<1x1x128x128xbf16>
    %159 = vector.shape_cast %158 : vector<1x1x128x128xbf16> to vector<128x128xbf16>
    %cst_82 = arith.constant dense<0.000000e+00> : vector<16x128xf32>
    %160 = tpu.matmul %153, %159, %cst_82 {dimension_numbers = #tpu.dot_dimension_numbers<[1], [0], [0], [1], [0, 0, 1, 1], [], []>} : vector<16x128xbf16>, vector<128x128xbf16>, vector<16x128xf32> -> vector<16x128xf32>
    %161 = arith.addf %157, %160 : vector<16x128xf32>
    %c0_83 = arith.constant 0 : index
    %c0_84 = arith.constant 0 : index
    %c0_85 = arith.constant 0 : index
    %162 = vector.load %arg7[%c0_83, %c0_84, %c0_85] : memref<3x1x128xf32, #tpu.memory_space<vmem>>, vector<1x1x128xf32>
    %163 = vector.shape_cast %162 : vector<1x1x128xf32> to vector<1x128xf32>
    %164 = vector.broadcast %163 : vector<1x128xf32> to vector<16x128xf32>
    %165 = arith.addf %161, %164 : vector<16x128xf32>
    %cst_86 = arith.constant 5.000000e-01 : f32
    %166 = vector.broadcast %cst_86 : f32 to vector<16x128xf32>
    %167 = arith.mulf %166, %165 : vector<16x128xf32>
    %cst_87 = arith.constant 4.471500e-02 : f32
    %168 = vector.broadcast %cst_87 : f32 to vector<16x128xf32>
    %169 = arith.mulf %168, %165 : vector<16x128xf32>
    %170 = arith.mulf %169, %165 : vector<16x128xf32>
    %171 = arith.mulf %170, %165 : vector<16x128xf32>
    %172 = arith.addf %165, %171 : vector<16x128xf32>
    %cst_88 = arith.constant 0.797884583 : f32
    %173 = vector.broadcast %cst_88 : f32 to vector<16x128xf32>
    %174 = arith.mulf %173, %172 : vector<16x128xf32>
    %175 = math.tanh %174 : vector<16x128xf32>
    %cst_89 = arith.constant 1.000000e+00 : f32
    %176 = vector.broadcast %cst_89 : f32 to vector<16x128xf32>
    %177 = arith.addf %176, %175 : vector<16x128xf32>
    %178 = arith.mulf %167, %177 : vector<16x128xf32>
    %179 = arith.truncf %178 : vector<16x128xf32> to vector<16x128xbf16>
    %180 = vector.shape_cast %179 : vector<16x128xbf16> to vector<1x16x128xbf16>
    %c0_90 = arith.constant 0 : index
    %c8_91 = arith.constant 8 : index
    %c0_92 = arith.constant 0 : index
    %181 = vector.load %arg13[%c0_90, %c8_91, %c0_92] : memref<1x32x128xbf16, #tpu.memory_space<vmem>>, vector<1x16x128xbf16>
    tpu.vector_store %arg13[%c0_90, %c8_91, %c0_92], %180 {strides = array<i32>} : memref<1x32x128xbf16, #tpu.memory_space<vmem>>, vector<1x16x128xbf16>,
    %c0_93 = arith.constant 0 : index
    %c8_94 = arith.constant 8 : index
    %c0_95 = arith.constant 0 : index
    %182 = vector.load %arg13[%c0_93, %c8_94, %c0_95] : memref<1x32x128xbf16, #tpu.memory_space<vmem>>, vector<1x16x128xbf16>
    %183 = vector.shape_cast %182 : vector<1x16x128xbf16> to vector<16x128xbf16>
    %c0_96 = arith.constant 0 : index
    %c1_97 = arith.constant 1 : index
    %c0_98 = arith.constant 0 : index
    %c0_99 = arith.constant 0 : index
    %184 = vector.load %arg8[%c0_96, %c1_97, %c0_98, %c0_99] : memref<3x3x128x128xbf16, #tpu.memory_space<vmem>>, vector<1x1x128x128xbf16>
    %185 = vector.shape_cast %184 : vector<1x1x128x128xbf16> to vector<128x128xbf16>
    %cst_100 = arith.constant dense<0.000000e+00> : vector<16x128xf32>
    %186 = tpu.matmul %183, %185, %cst_100 {dimension_numbers = #tpu.dot_dimension_numbers<[1], [0], [0], [1], [0, 0, 1, 1], [], []>} : vector<16x128xbf16>, vector<128x128xbf16>, vector<16x128xf32> -> vector<16x128xf32>
    %c0_101 = arith.constant 0 : index
    %c7_102 = arith.constant 7 : index
    %c0_103 = arith.constant 0 : index
    %187 = vector.load %arg13[%c0_101, %c7_102, %c0_103] : memref<1x32x128xbf16, #tpu.memory_space<vmem>>, vector<1x16x128xbf16>
    %188 = vector.shape_cast %187 : vector<1x16x128xbf16> to vector<16x128xbf16>
    %c0_104 = arith.constant 0 : index
    %c9_105 = arith.constant 9 : index
    %c0_106 = arith.constant 0 : index
    %189 = vector.load %arg13[%c0_104, %c9_105, %c0_106] : memref<1x32x128xbf16, #tpu.memory_space<vmem>>, vector<1x16x128xbf16>
    %190 = vector.shape_cast %189 : vector<1x16x128xbf16> to vector<16x128xbf16>
    %c0_107 = arith.constant 0 : index
    %c0_108 = arith.constant 0 : index
    %c0_109 = arith.constant 0 : index
    %c0_110 = arith.constant 0 : index
    %191 = vector.load %arg8[%c0_107, %c0_108, %c0_109, %c0_110] : memref<3x3x128x128xbf16, #tpu.memory_space<vmem>>, vector<1x1x128x128xbf16>
    %192 = vector.shape_cast %191 : vector<1x1x128x128xbf16> to vector<128x128xbf16>
    %cst_111 = arith.constant dense<0.000000e+00> : vector<16x128xf32>
    %193 = tpu.matmul %188, %192, %cst_111 {dimension_numbers = #tpu.dot_dimension_numbers<[1], [0], [0], [1], [0, 0, 1, 1], [], []>} : vector<16x128xbf16>, vector<128x128xbf16>, vector<16x128xf32> -> vector<16x128xf32>
    %194 = arith.addf %186, %193 : vector<16x128xf32>
    %c0_112 = arith.constant 0 : index
    %c2_113 = arith.constant 2 : index
    %c0_114 = arith.constant 0 : index
    %c0_115 = arith.constant 0 : index
    %195 = vector.load %arg8[%c0_112, %c2_113, %c0_114, %c0_115] : memref<3x3x128x128xbf16, #tpu.memory_space<vmem>>, vector<1x1x128x128xbf16>
    %196 = vector.shape_cast %195 : vector<1x1x128x128xbf16> to vector<128x128xbf16>
    %cst_116 = arith.constant dense<0.000000e+00> : vector<16x128xf32>
    %197 = tpu.matmul %190, %196, %cst_116 {dimension_numbers = #tpu.dot_dimension_numbers<[1], [0], [0], [1], [0, 0, 1, 1], [], []>} : vector<16x128xbf16>, vector<128x128xbf16>, vector<16x128xf32> -> vector<16x128xf32>
    %198 = arith.addf %194, %197 : vector<16x128xf32>
    %c0_117 = arith.constant 0 : index
    %c0_118 = arith.constant 0 : index
    %c0_119 = arith.constant 0 : index
    %199 = vector.load %arg9[%c0_117, %c0_118, %c0_119] : memref<3x1x128xf32, #tpu.memory_space<vmem>>, vector<1x1x128xf32>
    %200 = vector.shape_cast %199 : vector<1x1x128xf32> to vector<1x128xf32>
    %201 = vector.broadcast %200 : vector<1x128xf32> to vector<16x128xf32>
    %202 = arith.addf %198, %201 : vector<16x128xf32>
    %203 = arith.addf %202, %124 : vector<16x128xf32>
    %cst_120 = arith.constant 5.000000e-01 : f32
    %204 = vector.broadcast %cst_120 : f32 to vector<16x128xf32>
    %205 = arith.mulf %204, %203 : vector<16x128xf32>
    %cst_121 = arith.constant 4.471500e-02 : f32
    %206 = vector.broadcast %cst_121 : f32 to vector<16x128xf32>
    %207 = arith.mulf %206, %203 : vector<16x128xf32>
    %208 = arith.mulf %207, %203 : vector<16x128xf32>
    %209 = arith.mulf %208, %203 : vector<16x128xf32>
    %210 = arith.addf %203, %209 : vector<16x128xf32>
    %cst_122 = arith.constant 0.797884583 : f32
    %211 = vector.broadcast %cst_122 : f32 to vector<16x128xf32>
    %212 = arith.mulf %211, %210 : vector<16x128xf32>
    %213 = math.tanh %212 : vector<16x128xf32>
    %cst_123 = arith.constant 1.000000e+00 : f32
    %214 = vector.broadcast %cst_123 : f32 to vector<16x128xf32>
    %215 = arith.addf %214, %213 : vector<16x128xf32>
    %216 = arith.mulf %205, %215 : vector<16x128xf32>
    %217 = arith.truncf %216 : vector<16x128xf32> to vector<16x128xbf16>
    %218 = vector.shape_cast %217 : vector<16x128xbf16> to vector<1x16x128xbf16>
    %c0_124 = arith.constant 0 : index
    %c8_125 = arith.constant 8 : index
    %c0_126 = arith.constant 0 : index
    %219 = vector.load %arg13[%c0_124, %c8_125, %c0_126] : memref<1x32x128xbf16, #tpu.memory_space<vmem>>, vector<1x16x128xbf16>
    tpu.vector_store %arg13[%c0_124, %c8_125, %c0_126], %218 {strides = array<i32>} : memref<1x32x128xbf16, #tpu.memory_space<vmem>>, vector<1x16x128xbf16>,
    %c0_127 = arith.constant 0 : index
    %c8_128 = arith.constant 8 : index
    %c0_129 = arith.constant 0 : index
    %220 = vector.load %arg13[%c0_127, %c8_128, %c0_129] : memref<1x32x128xbf16, #tpu.memory_space<vmem>>, vector<1x16x128xbf16>
    %221 = vector.shape_cast %220 : vector<1x16x128xbf16> to vector<16x128xbf16>
    %c1_130 = arith.constant 1 : index
    %c1_131 = arith.constant 1 : index
    %c0_132 = arith.constant 0 : index
    %c0_133 = arith.constant 0 : index
    %222 = vector.load %arg6[%c1_130, %c1_131, %c0_132, %c0_133] : memref<3x3x128x128xbf16, #tpu.memory_space<vmem>>, vector<1x1x128x128xbf16>
    %223 = vector.shape_cast %222 : vector<1x1x128x128xbf16> to vector<128x128xbf16>
    %cst_134 = arith.constant dense<0.000000e+00> : vector<16x128xf32>
    %224 = tpu.matmul %221, %223, %cst_134 {dimension_numbers = #tpu.dot_dimension_numbers<[1], [0], [0], [1], [0, 0, 1, 1], [], []>} : vector<16x128xbf16>, vector<128x128xbf16>, vector<16x128xf32> -> vector<16x128xf32>
    %c0_135 = arith.constant 0 : index
    %c6_136 = arith.constant 6 : index
    %c0_137 = arith.constant 0 : index
    %225 = vector.load %arg13[%c0_135, %c6_136, %c0_137] : memref<1x32x128xbf16, #tpu.memory_space<vmem>>, vector<1x16x128xbf16>
    %226 = vector.shape_cast %225 : vector<1x16x128xbf16> to vector<16x128xbf16>
    %c0_138 = arith.constant 0 : index
    %c10_139 = arith.constant 10 : index
    %c0_140 = arith.constant 0 : index
    %227 = vector.load %arg13[%c0_138, %c10_139, %c0_140] : memref<1x32x128xbf16, #tpu.memory_space<vmem>>, vector<1x16x128xbf16>
    %228 = vector.shape_cast %227 : vector<1x16x128xbf16> to vector<16x128xbf16>
    %c1_141 = arith.constant 1 : index
    %c0_142 = arith.constant 0 : index
    %c0_143 = arith.constant 0 : index
    %c0_144 = arith.constant 0 : index
    %229 = vector.load %arg6[%c1_141, %c0_142, %c0_143, %c0_144] : memref<3x3x128x128xbf16, #tpu.memory_space<vmem>>, vector<1x1x128x128xbf16>
    %230 = vector.shape_cast %229 : vector<1x1x128x128xbf16> to vector<128x128xbf16>
    %cst_145 = arith.constant dense<0.000000e+00> : vector<16x128xf32>
    %231 = tpu.matmul %226, %230, %cst_145 {dimension_numbers = #tpu.dot_dimension_numbers<[1], [0], [0], [1], [0, 0, 1, 1], [], []>} : vector<16x128xbf16>, vector<128x128xbf16>, vector<16x128xf32> -> vector<16x128xf32>
    %232 = arith.addf %224, %231 : vector<16x128xf32>
    %c1_146 = arith.constant 1 : index
    %c2_147 = arith.constant 2 : index
    %c0_148 = arith.constant 0 : index
    %c0_149 = arith.constant 0 : index
    %233 = vector.load %arg6[%c1_146, %c2_147, %c0_148, %c0_149] : memref<3x3x128x128xbf16, #tpu.memory_space<vmem>>, vector<1x1x128x128xbf16>
    %234 = vector.shape_cast %233 : vector<1x1x128x128xbf16> to vector<128x128xbf16>
    %cst_150 = arith.constant dense<0.000000e+00> : vector<16x128xf32>
    %235 = tpu.matmul %228, %234, %cst_150 {dimension_numbers = #tpu.dot_dimension_numbers<[1], [0], [0], [1], [0, 0, 1, 1], [], []>} : vector<16x128xbf16>, vector<128x128xbf16>, vector<16x128xf32> -> vector<16x128xf32>
    %236 = arith.addf %232, %235 : vector<16x128xf32>
    %c1_151 = arith.constant 1 : index
    %c0_152 = arith.constant 0 : index
    %c0_153 = arith.constant 0 : index
    %237 = vector.load %arg7[%c1_151, %c0_152, %c0_153] : memref<3x1x128xf32, #tpu.memory_space<vmem>>, vector<1x1x128xf32>
    %238 = vector.shape_cast %237 : vector<1x1x128xf32> to vector<1x128xf32>
    %239 = vector.broadcast %238 : vector<1x128xf32> to vector<16x128xf32>
    %240 = arith.addf %236, %239 : vector<16x128xf32>
    %cst_154 = arith.constant 5.000000e-01 : f32
    %241 = vector.broadcast %cst_154 : f32 to vector<16x128xf32>
    %242 = arith.mulf %241, %240 : vector<16x128xf32>
    %cst_155 = arith.constant 4.471500e-02 : f32
    %243 = vector.broadcast %cst_155 : f32 to vector<16x128xf32>
    %244 = arith.mulf %243, %240 : vector<16x128xf32>
    %245 = arith.mulf %244, %240 : vector<16x128xf32>
    %246 = arith.mulf %245, %240 : vector<16x128xf32>
    %247 = arith.addf %240, %246 : vector<16x128xf32>
    %cst_156 = arith.constant 0.797884583 : f32
    %248 = vector.broadcast %cst_156 : f32 to vector<16x128xf32>
    %249 = arith.mulf %248, %247 : vector<16x128xf32>
    %250 = math.tanh %249 : vector<16x128xf32>
    %cst_157 = arith.constant 1.000000e+00 : f32
    %251 = vector.broadcast %cst_157 : f32 to vector<16x128xf32>
    %252 = arith.addf %251, %250 : vector<16x128xf32>
    %253 = arith.mulf %242, %252 : vector<16x128xf32>
    %254 = arith.truncf %253 : vector<16x128xf32> to vector<16x128xbf16>
    %255 = vector.shape_cast %254 : vector<16x128xbf16> to vector<1x16x128xbf16>
    %c0_158 = arith.constant 0 : index
    %c8_159 = arith.constant 8 : index
    %c0_160 = arith.constant 0 : index
    %256 = vector.load %arg13[%c0_158, %c8_159, %c0_160] : memref<1x32x128xbf16, #tpu.memory_space<vmem>>, vector<1x16x128xbf16>
    tpu.vector_store %arg13[%c0_158, %c8_159, %c0_160], %255 {strides = array<i32>} : memref<1x32x128xbf16, #tpu.memory_space<vmem>>, vector<1x16x128xbf16>,
    %c0_161 = arith.constant 0 : index
    %c8_162 = arith.constant 8 : index
    %c0_163 = arith.constant 0 : index
    %257 = vector.load %arg13[%c0_161, %c8_162, %c0_163] : memref<1x32x128xbf16, #tpu.memory_space<vmem>>, vector<1x16x128xbf16>
    %258 = vector.shape_cast %257 : vector<1x16x128xbf16> to vector<16x128xbf16>
    %c1_164 = arith.constant 1 : index
    %c1_165 = arith.constant 1 : index
    %c0_166 = arith.constant 0 : index
    %c0_167 = arith.constant 0 : index
    %259 = vector.load %arg8[%c1_164, %c1_165, %c0_166, %c0_167] : memref<3x3x128x128xbf16, #tpu.memory_space<vmem>>, vector<1x1x128x128xbf16>
    %260 = vector.shape_cast %259 : vector<1x1x128x128xbf16> to vector<128x128xbf16>
    %cst_168 = arith.constant dense<0.000000e+00> : vector<16x128xf32>
    %261 = tpu.matmul %258, %260, %cst_168 {dimension_numbers = #tpu.dot_dimension_numbers<[1], [0], [0], [1], [0, 0, 1, 1], [], []>} : vector<16x128xbf16>, vector<128x128xbf16>, vector<16x128xf32> -> vector<16x128xf32>
    %c0_169 = arith.constant 0 : index
    %c6_170 = arith.constant 6 : index
    %c0_171 = arith.constant 0 : index
    %262 = vector.load %arg13[%c0_169, %c6_170, %c0_171] : memref<1x32x128xbf16, #tpu.memory_space<vmem>>, vector<1x16x128xbf16>
    %263 = vector.shape_cast %262 : vector<1x16x128xbf16> to vector<16x128xbf16>
    %c0_172 = arith.constant 0 : index
    %c10_173 = arith.constant 10 : index
    %c0_174 = arith.constant 0 : index
    %264 = vector.load %arg13[%c0_172, %c10_173, %c0_174] : memref<1x32x128xbf16, #tpu.memory_space<vmem>>, vector<1x16x128xbf16>
    %265 = vector.shape_cast %264 : vector<1x16x128xbf16> to vector<16x128xbf16>
    %c1_175 = arith.constant 1 : index
    %c0_176 = arith.constant 0 : index
    %c0_177 = arith.constant 0 : index
    %c0_178 = arith.constant 0 : index
    %266 = vector.load %arg8[%c1_175, %c0_176, %c0_177, %c0_178] : memref<3x3x128x128xbf16, #tpu.memory_space<vmem>>, vector<1x1x128x128xbf16>
    %267 = vector.shape_cast %266 : vector<1x1x128x128xbf16> to vector<128x128xbf16>
    %cst_179 = arith.constant dense<0.000000e+00> : vector<16x128xf32>
    %268 = tpu.matmul %263, %267, %cst_179 {dimension_numbers = #tpu.dot_dimension_numbers<[1], [0], [0], [1], [0, 0, 1, 1], [], []>} : vector<16x128xbf16>, vector<128x128xbf16>, vector<16x128xf32> -> vector<16x128xf32>
    %269 = arith.addf %261, %268 : vector<16x128xf32>
    %c1_180 = arith.constant 1 : index
    %c2_181 = arith.constant 2 : index
    %c0_182 = arith.constant 0 : index
    %c0_183 = arith.constant 0 : index
    %270 = vector.load %arg8[%c1_180, %c2_181, %c0_182, %c0_183] : memref<3x3x128x128xbf16, #tpu.memory_space<vmem>>, vector<1x1x128x128xbf16>
    %271 = vector.shape_cast %270 : vector<1x1x128x128xbf16> to vector<128x128xbf16>
    %cst_184 = arith.constant dense<0.000000e+00> : vector<16x128xf32>
    %272 = tpu.matmul %265, %271, %cst_184 {dimension_numbers = #tpu.dot_dimension_numbers<[1], [0], [0], [1], [0, 0, 1, 1], [], []>} : vector<16x128xbf16>, vector<128x128xbf16>, vector<16x128xf32> -> vector<16x128xf32>
    %273 = arith.addf %269, %272 : vector<16x128xf32>
    %c1_185 = arith.constant 1 : index
    %c0_186 = arith.constant 0 : index
    %c0_187 = arith.constant 0 : index
    %274 = vector.load %arg9[%c1_185, %c0_186, %c0_187] : memref<3x1x128xf32, #tpu.memory_space<vmem>>, vector<1x1x128xf32>
    %275 = vector.shape_cast %274 : vector<1x1x128xf32> to vector<1x128xf32>
    %276 = vector.broadcast %275 : vector<1x128xf32> to vector<16x128xf32>
    %277 = arith.addf %273, %276 : vector<16x128xf32>
    %278 = arith.addf %277, %203 : vector<16x128xf32>
    %279 = arith.truncf %278 : vector<16x128xf32> to vector<16x128xbf16>
    %c0_188 = arith.constant 0 : index
    %c0_189 = arith.constant 0 : index
    %280 = vector.load %arg10[%c0_188, %c0_189] : memref<128x128xbf16, #tpu.memory_space<vmem>>, vector<128x128xbf16>
    %cst_190 = arith.constant dense<0.000000e+00> : vector<16x128xf32>
    %281 = tpu.matmul %279, %280, %cst_190 {dimension_numbers = #tpu.dot_dimension_numbers<[1], [0], [0], [1], [0, 0, 1, 1], [], []>} : vector<16x128xbf16>, vector<128x128xbf16>, vector<16x128xf32> -> vector<16x128xf32>
    %c0_191 = arith.constant 0 : index
    %c0_192 = arith.constant 0 : index
    %282 = vector.load %arg11[%c0_191, %c0_192] : memref<1x128xf32, #tpu.memory_space<vmem>>, vector<1x128xf32>
    %283 = vector.broadcast %282 : vector<1x128xf32> to vector<16x128xf32>
    %284 = arith.addf %281, %283 : vector<16x128xf32>
    %cst_193 = arith.constant 5.000000e-01 : f32
    %285 = vector.broadcast %cst_193 : f32 to vector<16x128xf32>
    %286 = arith.mulf %285, %278 : vector<16x128xf32>
    %cst_194 = arith.constant 4.471500e-02 : f32
    %287 = vector.broadcast %cst_194 : f32 to vector<16x128xf32>
    %288 = arith.mulf %287, %278 : vector<16x128xf32>
    %289 = arith.mulf %288, %278 : vector<16x128xf32>
    %290 = arith.mulf %289, %278 : vector<16x128xf32>
    %291 = arith.addf %278, %290 : vector<16x128xf32>
    %cst_195 = arith.constant 0.797884583 : f32
    %292 = vector.broadcast %cst_195 : f32 to vector<16x128xf32>
    %293 = arith.mulf %292, %291 : vector<16x128xf32>
    %294 = math.tanh %293 : vector<16x128xf32>
    %cst_196 = arith.constant 1.000000e+00 : f32
    %295 = vector.broadcast %cst_196 : f32 to vector<16x128xf32>
    %296 = arith.addf %295, %294 : vector<16x128xf32>
    %297 = arith.mulf %286, %296 : vector<16x128xf32>
    %298 = arith.truncf %297 : vector<16x128xf32> to vector<16x128xbf16>
    %299 = vector.shape_cast %298 : vector<16x128xbf16> to vector<1x16x128xbf16>
    %c0_197 = arith.constant 0 : index
    %c8_198 = arith.constant 8 : index
    %c0_199 = arith.constant 0 : index
    %300 = vector.load %arg13[%c0_197, %c8_198, %c0_199] : memref<1x32x128xbf16, #tpu.memory_space<vmem>>, vector<1x16x128xbf16>
    tpu.vector_store %arg13[%c0_197, %c8_198, %c0_199], %299 {strides = array<i32>} : memref<1x32x128xbf16, #tpu.memory_space<vmem>>, vector<1x16x128xbf16>,
    %c0_200 = arith.constant 0 : index
    %c8_201 = arith.constant 8 : index
    %c0_202 = arith.constant 0 : index
    %301 = vector.load %arg13[%c0_200, %c8_201, %c0_202] : memref<1x32x128xbf16, #tpu.memory_space<vmem>>, vector<1x16x128xbf16>
    %302 = vector.shape_cast %301 : vector<1x16x128xbf16> to vector<16x128xbf16>
    %c2_203 = arith.constant 2 : index
    %c1_204 = arith.constant 1 : index
    %c0_205 = arith.constant 0 : index
    %c0_206 = arith.constant 0 : index
    %303 = vector.load %arg6[%c2_203, %c1_204, %c0_205, %c0_206] : memref<3x3x128x128xbf16, #tpu.memory_space<vmem>>, vector<1x1x128x128xbf16>
    %304 = vector.shape_cast %303 : vector<1x1x128x128xbf16> to vector<128x128xbf16>
    %cst_207 = arith.constant dense<0.000000e+00> : vector<16x128xf32>
    %305 = tpu.matmul %302, %304, %cst_207 {dimension_numbers = #tpu.dot_dimension_numbers<[1], [0], [0], [1], [0, 0, 1, 1], [], []>} : vector<16x128xbf16>, vector<128x128xbf16>, vector<16x128xf32> -> vector<16x128xf32>
    %c0_208 = arith.constant 0 : index
    %c4_209 = arith.constant 4 : index
    %c0_210 = arith.constant 0 : index
    %306 = vector.load %arg13[%c0_208, %c4_209, %c0_210] : memref<1x32x128xbf16, #tpu.memory_space<vmem>>, vector<1x16x128xbf16>
    %307 = vector.shape_cast %306 : vector<1x16x128xbf16> to vector<16x128xbf16>
    %c0_211 = arith.constant 0 : index
    %c12_212 = arith.constant 12 : index
    %c0_213 = arith.constant 0 : index
    %308 = vector.load %arg13[%c0_211, %c12_212, %c0_213] : memref<1x32x128xbf16, #tpu.memory_space<vmem>>, vector<1x16x128xbf16>
    %309 = vector.shape_cast %308 : vector<1x16x128xbf16> to vector<16x128xbf16>
    %c2_214 = arith.constant 2 : index
    %c0_215 = arith.constant 0 : index
    %c0_216 = arith.constant 0 : index
    %c0_217 = arith.constant 0 : index
    %310 = vector.load %arg6[%c2_214, %c0_215, %c0_216, %c0_217] : memref<3x3x128x128xbf16, #tpu.memory_space<vmem>>, vector<1x1x128x128xbf16>
    %311 = vector.shape_cast %310 : vector<1x1x128x128xbf16> to vector<128x128xbf16>
    %cst_218 = arith.constant dense<0.000000e+00> : vector<16x128xf32>
    %312 = tpu.matmul %307, %311, %cst_218 {dimension_numbers = #tpu.dot_dimension_numbers<[1], [0], [0], [1], [0, 0, 1, 1], [], []>} : vector<16x128xbf16>, vector<128x128xbf16>, vector<16x128xf32> -> vector<16x128xf32>
    %313 = arith.addf %305, %312 : vector<16x128xf32>
    %c2_219 = arith.constant 2 : index
    %c2_220 = arith.constant 2 : index
    %c0_221 = arith.constant 0 : index
    %c0_222 = arith.constant 0 : index
    %314 = vector.load %arg6[%c2_219, %c2_220, %c0_221, %c0_222] : memref<3x3x128x128xbf16, #tpu.memory_space<vmem>>, vector<1x1x128x128xbf16>
    %315 = vector.shape_cast %314 : vector<1x1x128x128xbf16> to vector<128x128xbf16>
    %cst_223 = arith.constant dense<0.000000e+00> : vector<16x128xf32>
    %316 = tpu.matmul %309, %315, %cst_223 {dimension_numbers = #tpu.dot_dimension_numbers<[1], [0], [0], [1], [0, 0, 1, 1], [], []>} : vector<16x128xbf16>, vector<128x128xbf16>, vector<16x128xf32> -> vector<16x128xf32>
    %317 = arith.addf %313, %316 : vector<16x128xf32>
    %c2_224 = arith.constant 2 : index
    %c0_225 = arith.constant 0 : index
    %c0_226 = arith.constant 0 : index
    %318 = vector.load %arg7[%c2_224, %c0_225, %c0_226] : memref<3x1x128xf32, #tpu.memory_space<vmem>>, vector<1x1x128xf32>
    %319 = vector.shape_cast %318 : vector<1x1x128xf32> to vector<1x128xf32>
    %320 = vector.broadcast %319 : vector<1x128xf32> to vector<16x128xf32>
    %321 = arith.addf %317, %320 : vector<16x128xf32>
    %cst_227 = arith.constant 5.000000e-01 : f32
    %322 = vector.broadcast %cst_227 : f32 to vector<16x128xf32>
    %323 = arith.mulf %322, %321 : vector<16x128xf32>
    %cst_228 = arith.constant 4.471500e-02 : f32
    %324 = vector.broadcast %cst_228 : f32 to vector<16x128xf32>
    %325 = arith.mulf %324, %321 : vector<16x128xf32>
    %326 = arith.mulf %325, %321 : vector<16x128xf32>
    %327 = arith.mulf %326, %321 : vector<16x128xf32>
    %328 = arith.addf %321, %327 : vector<16x128xf32>
    %cst_229 = arith.constant 0.797884583 : f32
    %329 = vector.broadcast %cst_229 : f32 to vector<16x128xf32>
    %330 = arith.mulf %329, %328 : vector<16x128xf32>
    %331 = math.tanh %330 : vector<16x128xf32>
    %cst_230 = arith.constant 1.000000e+00 : f32
    %332 = vector.broadcast %cst_230 : f32 to vector<16x128xf32>
    %333 = arith.addf %332, %331 : vector<16x128xf32>
    %334 = arith.mulf %323, %333 : vector<16x128xf32>
    %335 = arith.truncf %334 : vector<16x128xf32> to vector<16x128xbf16>
    %336 = vector.shape_cast %335 : vector<16x128xbf16> to vector<1x16x128xbf16>
    %c0_231 = arith.constant 0 : index
    %c8_232 = arith.constant 8 : index
    %c0_233 = arith.constant 0 : index
    %337 = vector.load %arg13[%c0_231, %c8_232, %c0_233] : memref<1x32x128xbf16, #tpu.memory_space<vmem>>, vector<1x16x128xbf16>
    tpu.vector_store %arg13[%c0_231, %c8_232, %c0_233], %336 {strides = array<i32>} : memref<1x32x128xbf16, #tpu.memory_space<vmem>>, vector<1x16x128xbf16>,
    %c0_234 = arith.constant 0 : index
    %c8_235 = arith.constant 8 : index
    %c0_236 = arith.constant 0 : index
    %338 = vector.load %arg13[%c0_234, %c8_235, %c0_236] : memref<1x32x128xbf16, #tpu.memory_space<vmem>>, vector<1x16x128xbf16>
    %339 = vector.shape_cast %338 : vector<1x16x128xbf16> to vector<16x128xbf16>
    %c2_237 = arith.constant 2 : index
    %c1_238 = arith.constant 1 : index
    %c0_239 = arith.constant 0 : index
    %c0_240 = arith.constant 0 : index
    %340 = vector.load %arg8[%c2_237, %c1_238, %c0_239, %c0_240] : memref<3x3x128x128xbf16, #tpu.memory_space<vmem>>, vector<1x1x128x128xbf16>
    %341 = vector.shape_cast %340 : vector<1x1x128x128xbf16> to vector<128x128xbf16>
    %cst_241 = arith.constant dense<0.000000e+00> : vector<16x128xf32>
    %342 = tpu.matmul %339, %341, %cst_241 {dimension_numbers = #tpu.dot_dimension_numbers<[1], [0], [0], [1], [0, 0, 1, 1], [], []>} : vector<16x128xbf16>, vector<128x128xbf16>, vector<16x128xf32> -> vector<16x128xf32>
    %c0_242 = arith.constant 0 : index
    %c4_243 = arith.constant 4 : index
    %c0_244 = arith.constant 0 : index
    %343 = vector.load %arg13[%c0_242, %c4_243, %c0_244] : memref<1x32x128xbf16, #tpu.memory_space<vmem>>, vector<1x16x128xbf16>
    %344 = vector.shape_cast %343 : vector<1x16x128xbf16> to vector<16x128xbf16>
    %c0_245 = arith.constant 0 : index
    %c12_246 = arith.constant 12 : index
    %c0_247 = arith.constant 0 : index
    %345 = vector.load %arg13[%c0_245, %c12_246, %c0_247] : memref<1x32x128xbf16, #tpu.memory_space<vmem>>, vector<1x16x128xbf16>
    %346 = vector.shape_cast %345 : vector<1x16x128xbf16> to vector<16x128xbf16>
    %c2_248 = arith.constant 2 : index
    %c0_249 = arith.constant 0 : index
    %c0_250 = arith.constant 0 : index
    %c0_251 = arith.constant 0 : index
    %347 = vector.load %arg8[%c2_248, %c0_249, %c0_250, %c0_251] : memref<3x3x128x128xbf16, #tpu.memory_space<vmem>>, vector<1x1x128x128xbf16>
    %348 = vector.shape_cast %347 : vector<1x1x128x128xbf16> to vector<128x128xbf16>
    %cst_252 = arith.constant dense<0.000000e+00> : vector<16x128xf32>
    %349 = tpu.matmul %344, %348, %cst_252 {dimension_numbers = #tpu.dot_dimension_numbers<[1], [0], [0], [1], [0, 0, 1, 1], [], []>} : vector<16x128xbf16>, vector<128x128xbf16>, vector<16x128xf32> -> vector<16x128xf32>
    %350 = arith.addf %342, %349 : vector<16x128xf32>
    %c2_253 = arith.constant 2 : index
    %c2_254 = arith.constant 2 : index
    %c0_255 = arith.constant 0 : index
    %c0_256 = arith.constant 0 : index
    %351 = vector.load %arg8[%c2_253, %c2_254, %c0_255, %c0_256] : memref<3x3x128x128xbf16, #tpu.memory_space<vmem>>, vector<1x1x128x128xbf16>
    %352 = vector.shape_cast %351 : vector<1x1x128x128xbf16> to vector<128x128xbf16>
    %cst_257 = arith.constant dense<0.000000e+00> : vector<16x128xf32>
    %353 = tpu.matmul %346, %352, %cst_257 {dimension_numbers = #tpu.dot_dimension_numbers<[1], [0], [0], [1], [0, 0, 1, 1], [], []>} : vector<16x128xbf16>, vector<128x128xbf16>, vector<16x128xf32> -> vector<16x128xf32>
    %354 = arith.addf %350, %353 : vector<16x128xf32>
    %c2_258 = arith.constant 2 : index
    %c0_259 = arith.constant 0 : index
    %c0_260 = arith.constant 0 : index
    %355 = vector.load %arg9[%c2_258, %c0_259, %c0_260] : memref<3x1x128xf32, #tpu.memory_space<vmem>>, vector<1x1x128xf32>
    %356 = vector.shape_cast %355 : vector<1x1x128xf32> to vector<1x128xf32>
    %357 = vector.broadcast %356 : vector<1x128xf32> to vector<16x128xf32>
    %358 = arith.addf %354, %357 : vector<16x128xf32>
    %359 = arith.addf %358, %284 : vector<16x128xf32>
    %c0_261 = arith.constant 0 : index
    %c0_262 = arith.constant 0 : index
    %360 = vector.load %arg12[%c0_261, %c0_262] : memref<16x128xf32, #tpu.memory_space<vmem>>, vector<16x128xf32>
    tpu.vector_store %arg12[%c0_261, %c0_262], %359 {strides = array<i32>} : memref<16x128xf32, #tpu.memory_space<vmem>>, vector<16x128xf32>,
    return
  }
  func.func @transform_0(%arg0: i32) -> (i32, i32) {
    %c0_i32 = arith.constant 0 : i32
    %c0_i32_0 = arith.constant 0 : i32
    return %arg0, %c0_i32 : i32, i32
  }
  func.func @transform_1(%arg0: i32) -> (i32, i32) {
    %c0_i32 = arith.constant 0 : i32
    %c0_i32_0 = arith.constant 0 : i32
    return %arg0, %c0_i32 : i32, i32
  }
  func.func @transform_2(%arg0: i32) -> (i32, i32) {
    %c0_i32 = arith.constant 0 : i32
    %c0_i32_0 = arith.constant 0 : i32
    return %arg0, %c0_i32 : i32, i32
  }
  func.func @transform_3(%arg0: i32) -> (i32, i32) {
    %c0_i32 = arith.constant 0 : i32
    %c0_i32_0 = arith.constant 0 : i32
    %c0_i32_1 = arith.constant 0 : i32
    return %c0_i32, %c0_i32_0 : i32, i32
  }
  func.func @transform_4(%arg0: i32) -> (i32, i32) {
    %c0_i32 = arith.constant 0 : i32
    %c0_i32_0 = arith.constant 0 : i32
    %c0_i32_1 = arith.constant 0 : i32
    return %c0_i32, %c0_i32_0 : i32, i32
  }
  func.func @transform_5(%arg0: i32) -> (i32, i32, i32, i32) {
    %c0_i32 = arith.constant 0 : i32
    %c0_i32_0 = arith.constant 0 : i32
    %c0_i32_1 = arith.constant 0 : i32
    %c0_i32_2 = arith.constant 0 : i32
    %c0_i32_3 = arith.constant 0 : i32
    return %c0_i32, %c0_i32_0, %c0_i32_1, %c0_i32_2 : i32, i32, i32, i32
  }
  func.func @transform_6(%arg0: i32) -> (i32, i32, i32) {
    %c0_i32 = arith.constant 0 : i32
    %c0_i32_0 = arith.constant 0 : i32
    %c0_i32_1 = arith.constant 0 : i32
    %c0_i32_2 = arith.constant 0 : i32
    return %c0_i32, %c0_i32_0, %c0_i32_1 : i32, i32, i32
  }
  func.func @transform_7(%arg0: i32) -> (i32, i32, i32, i32) {
    %c0_i32 = arith.constant 0 : i32
    %c0_i32_0 = arith.constant 0 : i32
    %c0_i32_1 = arith.constant 0 : i32
    %c0_i32_2 = arith.constant 0 : i32
    %c0_i32_3 = arith.constant 0 : i32
    return %c0_i32, %c0_i32_0, %c0_i32_1, %c0_i32_2 : i32, i32, i32, i32
  }
  func.func @transform_8(%arg0: i32) -> (i32, i32, i32) {
    %c0_i32 = arith.constant 0 : i32
    %c0_i32_0 = arith.constant 0 : i32
    %c0_i32_1 = arith.constant 0 : i32
    %c0_i32_2 = arith.constant 0 : i32
    return %c0_i32, %c0_i32_0, %c0_i32_1 : i32, i32, i32
  }
  func.func @transform_9(%arg0: i32) -> (i32, i32) {
    %c0_i32 = arith.constant 0 : i32
    %c0_i32_0 = arith.constant 0 : i32
    %c0_i32_1 = arith.constant 0 : i32
    return %c0_i32, %c0_i32_0 : i32, i32
  }
  func.func @transform_10(%arg0: i32) -> (i32, i32) {
    %c0_i32 = arith.constant 0 : i32
    %c0_i32_0 = arith.constant 0 : i32
    %c0_i32_1 = arith.constant 0 : i32
    return %c0_i32, %c0_i32_0 : i32, i32
  }
  func.func @transform_11(%arg0: i32) -> (i32, i32) {
    %c0_i32 = arith.constant 0 : i32
    %c0_i32_0 = arith.constant 0 : i32
    return %arg0, %c0_i32 : i32, i32
  }
}

</mosaic_0001>

<bundles_post_ra>
// kernel: tpu_custom_call.1
= control target key start
LH: loop header
LB: loop body
LE: loop exit
PB: predicated region body
PF: predicated region fallthrough
CT: control target
= control target key end

     0   :  { %s5543_s0 = inlined_call_operand.vmem [shape: s32[32,13], index: 0, kind: input, shape index: {}]   ;;  %s5544_s1 = inlined_call_operand.vmem [shape: f32[32,13], index: 1, kind: input, shape index: {}]   ;;  %s5545_s2 = inlined_call_operand.vmem [shape: f32[32,1], index: 2, kind: input, shape index: {}]   ;;  %s5546_s3 = inlined_call_operand.vmem [shape: f32[128,128], index: 3, kind: input, shape index: {}]   ;;  %s5547_s4 = inlined_call_operand.vmem [shape: f32[1,128], index: 4, kind: input, shape index: {}]   ;;  %s5548_s5 = inlined_call_operand.hbm [shape: bf16[3,3,128,128], index: 5, kind: input, shape index: {}]   ;;  %s5549_s6 = inlined_call_operand.vmem [shape: f32[3,1,128], index: 6, kind: input, shape index: {}]   ;;  %s5550_s7 = inlined_call_operand.hbm [shape: bf16[3,3,128,128], index: 7, kind: input, shape index: {}]   ;;  %s5551_s8 = inlined_call_operand.vmem [shape: f32[3,1,128], index: 8, kind: input, shape index: {}]   ;;  %s5552_s9 = inlined_call_operand.hbm [shape: bf16[128,128], index: 9, kind: input, shape index: {}]   ;;  %s5553_s10 = inlined_call_operand.vmem [shape: f32[1,128], index: 10, kind: input, shape index: {}]   ;;  %s5554_s11 = inlined_call_operand.hbm [shape: f32[32,128], index: 11, kind: output, shape index: {}]  }
   0x1   :  { %5565 = sst [smem:[#allocation19_spill]] %s5554_s11 }
   0x2   :  { %16 = vsyncpa [#allocation4], 0 }
   0x3   :  { %17 = vsyncpa [#allocation7], 0 }
   0x4   :  { %18 = vsyncpa [#allocation5], 0 }
   0x5   :  { %20 = vsyncpa [#allocation5 + $0x1], 0  ;;  %s4886_s17 = smov 0   ;;  %s4888_s18 = smov 0  }
   0x6   :  { %s4890_s19 = smov 0   ;;  %s4892_s20 = smov 0  }
   0x7 LB: > { %5566 = sst [smem:[#allocation13_spill]] %s4789_s17  ;;  %s4907_s21 = sadd.s32 4294967295, %s4801_s20   ;;  %s4801_s20 = sphi %s4892_s20, %s5588_s20   ;;  %s4797_s19 = sphi %s4890_s19, %s5590_s19   ;;  %s4793_s18 = sphi %s4888_s18, %s5592_s18   ;;  %s4789_s17 = sphi %s4886_s17, %s5591_s17  }
   0x8   : > { %5567 = sst [smem:[#allocation14_spill]] %s4797_s19  ;;  %s3476_s22 = sadd.s32 4294967294, %s4801_s20  }
   0x9   : > { %5568 = sst [smem:[#allocation15_spill]] %s4801_s20  ;;  %s4911_s23 = sadd.s32 1, %s4801_s20  }
   0xa   : > { %5569 = sst [smem:[#allocation16_spill]] %s4911_s23  ;;  %s279_s24 = sadd.s32 1, %s4797_s19 }
   0xb   : > { %s276_s25 = ssub.s32 %s4801_s20, %s4911_s23  ;;  %p289_p0 = scmp.ne.s32.totalorder %s4797_s19, %s4793_s18 }
   0xc   : > { %p277_p1 = scmp.eq.s32.totalorder %s276_s25, 0  ;;  %p290_p2 = scmp.eq.s32.totalorder %s4907_s21, 1 }
   0xd   : > { %p295_p3 = scmp.ne.s32.totalorder %s4793_s18, %s4789_s17  ;;  %p296_p4 = scmp.eq.s32.totalorder %s3476_s22, 1 }
   0xe   : > { %s4922_s26 = scalar_select %p277_p1, %s4797_s19, %s279_s24  }
   0xf   : > { %p4924_p5 = por %p290_p2, %p289_p0  ;;  %p4928_p6 = por %p296_p4, %p295_p3 }
  0x10   : > { %5570 = sst [smem:[#allocation17_spill]] %s4922_s26  ;;  %p3477_p7 = scmp.ge.s32.totalorder %s4801_s20, 1 }
  0x11   : > { %s5571_s27 = scalar_select %p4924_p5, 1, 0 }
  0x12   : > { %s5572_s28 = scalar_select %p4928_p6, 1, 0 }
  0x13   : > { %p303_p8 = scmp.lt.s32.totalorder %s4801_s20, 3  ;;  %p5558_p9 = scmp.eq.s32.totalorder %s4907_s21, 0 }
  0x14   : > { %5573 = sst [smem:[#allocation18_spill]] %s5572_s28  ;;  %s4803_s30 = smov [#allocation6]  }
  0x15   : > { %p4935_p10 = pnand %p3477_p7, %p303_p8  ;;  %s337_s12 = sshll.u32 %s4803_s30, 4  ;;  %s4941_s12 = int_to_ptr.vmem [resolvable:$true] %s337_s12 }
  0x16   : > { %s4804_s14 = smov [#allocation3]   ;;  %s4805_s16 = smov [#allocation8]  }
  0x17   : > { %s5574_s29 = scalar_select %p4935_p10, 1, 0 }
  0x18   : > { %p4355_p11 = pneg %p4935_p10  ;;  %s321_s15 = sshll.u32 %s4804_s14, 4  ;;  %s4949_s15 = int_to_ptr.vmem [resolvable:$true] %s321_s15 }
  0x19   : > { %s4951_s22 = sshll.u32 %s4805_s16, 4  ;;  %s4647_s26 = scalar_lea.hbm %s5550_s7, 9216  ;;  %s354_s22 = int_to_ptr.vmem [resolvable:$true] %s4951_s22 }
  0x1a   : > { %p4945_p12 = pnand %p5558_p9, %p4355_p11  ;;  %p4648_p13 = scmp.ne.s32.totalorder %s5550_s7, %s4647_s26 }
  0x1b   : > { %p4654_p3 = scmp.lt.u32.totalorder %s4647_s26, %s5550_s7 }
  0x1c   : > { %p4961_p0 = pneg %p4945_p12 }
  0x1e   : > { %p4650_p1 = pnand %p4961_p0, %p4648_p13 }
  0x20   : > { %p4651_p2 = pneg %p4650_p1 }
  0x22   : > { %p4656_p4 = pnand %p4654_p3, %p4651_p2 }
  0x24   : > { %4659 = shalt.err (!%p4656_p4)
}
  0x25   : > { %s4660_s19 = scalar_lea.vmem %s4941_s12, 9216  ;;  %p4668_p9 = scmp.lt.s32.totalorder %s4941_s12, %s4941_s12 }
  0x26   : > { %p4661_p7 = scmp.ne.s32.totalorder %s4941_s12, %s4660_s19  ;;  %p4669_p6 = scmp.lt.s32.totalorder %s4660_s19, %s4660_s19 }
  0x28   : > { %p4663_p8 = pnand %p4661_p7, %p4961_p0  ;;  %p4670_p13 = por %p4669_p6, %p4668_p9 }
  0x2a   : > { %p4664_p11 = pneg %p4663_p8 }
  0x2c   : > { %p4671_p1 = pnand %p4670_p13, %p4664_p11 }
  0x2e   : > { %4674 = shalt.err (!%p4671_p1)
}
  0x2f   : > { %s4806_s24 = smov 64   ;;  %s4807_s26 = smov 4  }
  0x30   : > { %4361 = dma.hbm_to_vmem [thread:$0]  (!%p4945_p12), %s5550_s7, 9216, %s4941_s12, [#allocation7], %s4806_s24, %s4806_s24, %s4807_s26  }
  0x31   : > { %s4675_s19 = scalar_lea.hbm %s5548_s5, 9216 }
  0x32   : > { %p4676_p6 = scmp.ne.s32.totalorder %s5548_s5, %s4675_s19  ;;  %p4682_p3 = scmp.lt.u32.totalorder %s4675_s19, %s5548_s5 }
  0x34   : > { %p4678_p9 = pnand %p4676_p6, %p4961_p0 }
  0x36   : > { %p4679_p2 = pneg %p4678_p9 }
  0x38   : > { %p4684_p4 = pnand %p4682_p3, %p4679_p2 }
  0x3a   : > { %4687 = shalt.err (!%p4684_p4)
}
  0x3b   : > { %s4688_s12 = scalar_lea.vmem %s4949_s15, 9216  ;;  %p4696_p13 = scmp.lt.s32.totalorder %s4949_s15, %s4949_s15 }
  0x3c   : > { %p4689_p7 = scmp.ne.s32.totalorder %s4949_s15, %s4688_s12  ;;  %p4697_p1 = scmp.lt.s32.totalorder %s4688_s12, %s4688_s12 }
  0x3e   : > { %p4691_p8 = pnand %p4689_p7, %p4961_p0  ;;  %p4698_p6 = por %p4697_p1, %p4696_p13 }
  0x40   : > { %p4692_p11 = pneg %p4691_p8 }
  0x42   : > { %p4699_p9 = pnand %p4698_p6, %p4692_p11 }
  0x44   : > { %4702 = shalt.err (!%p4699_p9)
}
  0x45   : > { %4358 = dma.hbm_to_vmem [thread:$0]  (!%p4945_p12), %s5548_s5, 9216, %s4949_s15, [#allocation4], %s4806_s24, %s4806_s24, %s4807_s26  }
  0x46   : > { %s4703_s25 = scalar_lea.hbm %s5552_s9, 1024 }
  0x47   : > { %p4704_p2 = scmp.ne.s32.totalorder %s5552_s9, %s4703_s25  ;;  %p4710_p7 = scmp.lt.u32.totalorder %s4703_s25, %s5552_s9 }
  0x49   : > { %p4706_p3 = pnand %p4704_p2, %p4961_p0 }
  0x4b   : > { %p4707_p4 = pneg %p4706_p3 }
  0x4d   : > { %p4712_p8 = pnand %p4710_p7, %p4707_p4 }
  0x4f   : > { %4715 = shalt.err (!%p4712_p8)
}
  0x50   : > { %s4716_s12 = scalar_lea.vmem %s354_s22, 1024  ;;  %p4724_p6 = scmp.lt.s32.totalorder %s354_s22, %s354_s22 }
  0x51   : > { %p4717_p11 = scmp.ne.s32.totalorder %s354_s22, %s4716_s12  ;;  %p4725_p9 = scmp.lt.s32.totalorder %s4716_s12, %s4716_s12 }
  0x53   : > { %p4719_p13 = pnand %p4717_p11, %p4961_p0  ;;  %p4726_p5 = por %p4725_p9, %p4724_p6 }
  0x55   : > { %p4720_p1 = pneg %p4719_p13 }
  0x57   : > { %p4727_p10 = pnand %p4726_p5, %p4720_p1 }
  0x59   : > { %4730 = shalt.err (!%p4727_p10)
}
  0x5a   : > { %4364 = dma.hbm_to_vmem [thread:$0]  (!%p4945_p12), %s5552_s9, 1024, %s354_s22, [#allocation7], %s4806_s24, %s4806_s24, %s4807_s26  }
  0x5b   : > { %p5577_p2 = scmp.ne.s32.totalorder %s5574_s29, 0 }
  0x5c   : > { %p5578_p0 = scmp.eq.s32.totalorder (!%p5577_p2), %s4907_s21, 0 }
  0x5d   : > { %399 = sbr.rel (%p5577_p2) target bundleno = 2412 (0x96c), region = 64 }
  0x64   : > { %4776 = dma.done.wait (%p5578_p0), [#allocation4], 9216   ;;  %p5579_p3 = pmov %p5578_p0 }
  0x65   : > { %p5580_p5 = pmov %p5578_p0 }
  0x66   : > { %4778 = vsyncadd (%p5579_p3), [#allocation4], 4294958080 }
  0x67   : > { %4780 = dma.done.wait (%p5580_p5), [#allocation7], 10240   ;;  %p5581_p10 = pmov %p5578_p0 }
  0x68   : > { %s3487_s23 = sshll.u32 %s4907_s21, 1  ;;  %v4808_v0 = vmov 1   ;;  %v4809_v1 = vmov 0   ;;  %v4810_v5 = vmov 0.0   ;;  %v4811_v7 = vmov 2   ;;  %v795_v18 = vld [vmem:[%s5546_s3] sm:$0xff] }
  0x69   : > { %4782 = vsyncadd (%p5581_p10), [#allocation7], 4294957056  ;;  %4430 = vset.pattern.permute.xlu0 %v4808_v0  ;;  %4431 = vset.pattern.permute.xlu1 %v4809_v1  ;;  %907 = vst [vmem:[#allocation2] sm:$0xf] %v4809_v1  ;;  %p458_p12 = scmp.lt.s32.totalorder %s3487_s23, 3  ;;  %v4812_v8 = vmov 3   ;;  %v477_v29 = vlaneseq }
  0x6a   : > { %908 = vst [vmem:[#allocation2 + $0x8] sm:$0xf0] %v4809_v1  ;;  %3953 = vmatprep.subr.bf16.mxu1 %v4810_v5  ;;  %v4813_v9 = vmov 4   ;;  %v4814_v10 = vmov 5   ;;  %v4815_v11 = vmov 6   ;;  %v4816_v12 = vmov 7  }
  0x6b   : > { %s5594_s23 = smov (!%p458_p12, %s3487_s23), 3  ;;  %v4817_v13 = vmov 8   ;;  %v4818_v14 = vmov 9   ;;  %v4819_v15 = vmov 10   ;;  %v4820_v16 = vmov 11   ;;  %v796_v19 = vld [vmem:[%s5546_s3 + $0x8] sm:$0xff] }
  0x6c   : > { %s5047_s29 = sshll.u32 %s5594_s23, 3  ;;  %v4821_v17 = vmov 12   ;;  %v4293_v20 = vpack.c.bf16 %v796_v19, %v795_v18  ;;  %v797_v21 = vld [vmem:[%s5546_s3 + $0x10] sm:$0xff]  ;;  %v798_v22 = vld [vmem:[%s5546_s3 + $0x18] sm:$0xff]  ;;  %v799_v24 = vld [vmem:[%s5546_s3 + $0x20] sm:$0xff]  ;;  %v5142_v35 = vand.u32 127, %v477_v29 }
  0x6d   : > { %s461_s24 = scalar_lea.vmem %s5543_s0, %s5047_s29  ;;  %s467_s20 = scalar_lea.vmem %s5544_s1, %s5047_s29  ;;  %v4297_v23 = vpack.c.bf16 %v798_v22, %v797_v21  ;;  %v800_v25 = vld [vmem:[%s5546_s3 + $0x28] sm:$0xff]  ;;  %v801_v30 = vld [vmem:[%s5546_s3 + $0x30] sm:$0xff]  ;;  %v802_v31 = vld [vmem:[%s5546_s3 + $0x38] sm:$0xff] }
  0x6e   : > { %v5057_v2 = vld [vmem:[%s461_s24 + $0x8] sm:$0xff]  ;;  %v5059_v3 = vld [vmem:[%s461_s24] sm:$0xff]  ;;  %4294 = vmatprep.subr.bf16.mxu0 %v4293_v20  ;;  %v4301_v28 = vpack.c.bf16 %v800_v25, %v799_v24  ;;  %v4305_v33 = vpack.c.bf16 %v802_v31, %v801_v30  ;;  %v805_v41 = vld [vmem:[%s5546_s3 + $0x50] sm:$0xff]  ;;  %s473_s30 = scalar_lea.vmem %s5545_s2, %s5047_s29  ;;  %s454_s17 = sand.u32 1, %s4793_s18  }
  0x6f   : > { %487 = vperm.xlu1 %4431, %v5057_v2   ;;  %508 = vperm.xlu0 %4430, %v5059_v3   ;;  %v5063_v4 = vld [vmem:[%s467_s20] sm:$0xff]  ;;  %v5069_v6 = vld [vmem:[%s467_s20 + $0x8] sm:$0xff]  ;;  %v806_v42 = vld [vmem:[%s5546_s3 + $0x58] sm:$0xff]  ;;  %s3486_s20 = sshll.u32 %s454_s17, 4  ;;  %s3688_s19 = sshll.u32 %s4907_s21, 8 }
  0x70   : > { %4296 = vmatpush3.bf16.msra.mxu0 %v4293_v20  ;;  %v803_v36 = vld [vmem:[%s5546_s3 + $0x40] sm:$0xff]  ;;  %v804_v37 = vld [vmem:[%s5546_s3 + $0x48] sm:$0xff]  ;;  %v4313_v45 = vpack.c.bf16 %v806_v42, %v805_v41  ;;  %v809_v57 = vld [vmem:[%s5546_s3 + $0x70] sm:$0xff]  ;;  %s456_s14 = scalar_lea.vmem [#allocation9], %s3486_s20  ;;  %s5582_s11 = sld [smem:[#allocation19_spill]] }
  0x71   : > { %4298 = vmatprep.subr.bf16.mxu0 %v4297_v23  ;;  %v4309_v38 = vpack.c.bf16 %v804_v37, %v803_v36  ;;  %v807_v50 = vld [vmem:[%s5546_s3 + $0x60] sm:$0xff]  ;;  %v808_v51 = vld [vmem:[%s5546_s3 + $0x68] sm:$0xff]  ;;  %v810_v58 = vld [vmem:[%s5546_s3 + $0x78] sm:$0xff]  ;;  %s3359_s16 = sshll.u32 %s456_s14, 4  ;;  %s5502_s13 = scalar_lea.sflag [#allocation5], %s454_s17  ;;  %s5495_s16 = int_to_ptr.vmem [resolvable:$true] %s3359_s16 }
  0x72   : > { %v4317_v52 = vpack.c.bf16 %v808_v51, %v807_v50  ;;  %v4321_v62 = vpack.c.bf16 %v810_v58, %v809_v57  ;;  %s4731_s22 = scalar_lea.vmem %s5495_s16, 256  ;;  %p5583_p7 = scmp.ne.s32.totalorder %s5571_s27, 0 }
  0x73   : > { %4432 = vset.pattern.permute.xlu1 %v4808_v0  ;;  %520 = vperm.xlu0 %4430, %v5063_v4   ;;  %p4732_p4 = scmp.ne.s32.totalorder %s5495_s16, %s4731_s22  ;;  %s4823_s21 = smov [#allocation9]  }
  0x74   : > { %511 = vperm.xlu1 %4432, %v5057_v2   ;;  %4300 = vmatpush3.bf16.msra.mxu0 %v4297_v23  ;;  %s4735_s24 = sshll.u32 %s4823_s21, 4  ;;  %s4736_s24 = int_to_ptr.vmem [resolvable:$false] %s4735_s24 }
  0x75   : > { %4302 = vmatprep.subr.bf16.mxu0 %v4301_v28  ;;  %p4733_p8 = pnand %p4732_p4, %p5583_p7  ;;  %s4737_s26 = scalar_lea.vmem %s4736_s24, 512 }
  0x76   : > { %s5500_s23 = scalar_lea.hbm %s5582_s11, %s3688_s19  ;;  %p4738_p13 = scmp.lt.s32.totalorder %s5495_s16, %s4736_s24 }
  0x77   : > { %4434 = vset.pattern.permute.xlu0 %v4809_v1  ;;  %p4734_p11 = pneg %p4733_p8  ;;  %p4739_p1 = scmp.lt.s32.totalorder %s4737_s26, %s4731_s22 }
  0x78   : > { %4433 = vset.pattern.permute.xlu1 %v4809_v1  ;;  %484 = vperm.xlu0 %4434, %v5059_v3  }
  0x79   : > { %497 = vperm.xlu1 %4433, %v5063_v4   ;;  %4304 = vmatpush3.bf16.msra.mxu0 %v4301_v28  ;;  %p4740_p6 = por %p4739_p1, %p4738_p13 }
  0x7a   : > { %4306 = vmatprep.subr.bf16.mxu0 %v4305_v33 }
  0x7b   : > { %p4741_p9 = pnand %p4740_p6, %p4734_p11 }
  0x7c   : > { %502 = vperm.xlu0 %4434, %v5069_v6  }
  0x7d   : > { %4435 = vset.pattern.permute.xlu1 %v4811_v7  ;;  %4308 = vmatpush3.bf16.msra.mxu0 %v4305_v33 }
  0x7e   : > { %532 = vperm.xlu1 %4435, %v5059_v3   ;;  %4310 = vmatprep.subr.bf16.mxu0 %v4309_v38 }
  0x80   : > { %4438 = vset.pattern.permute.xlu0 %v4811_v7 }
  0x81   : > { %544 = vperm.xlu0 %4438, %v5063_v4   ;;  %4312 = vmatpush3.bf16.msra.mxu0 %v4309_v38 }
  0x82   : > { %4436 = vset.pattern.permute.xlu1 %v4808_v0  ;;  %4314 = vmatprep.subr.bf16.mxu0 %v4313_v45 }
  0x83   : > { %524 = vperm.xlu1 %4436, %v5069_v6  }
  0x85   : > { %4441 = vset.pattern.permute.xlu0 %v4812_v8  ;;  %4316 = vmatpush3.bf16.msra.mxu0 %v4313_v45 }
  0x86   : > { %559 = vperm.xlu0 %4441, %v5057_v2   ;;  %4318 = vmatprep.subr.bf16.mxu0 %v4317_v52 }
  0x87   : > { %4437 = vset.pattern.permute.xlu1 %v4811_v7 }
  0x88   : > { %535 = vperm.xlu1 %4437, %v5057_v2  }
  0x89   : > { %4320 = vmatpush3.bf16.msra.mxu0 %v4317_v52 }
  0x8a   : > { %572 = vperm.xlu0 %4441, %v5069_v6   ;;  %4322 = vmatprep.subr.bf16.mxu0 %v4321_v62 }
  0x8c   : > { %4439 = vset.pattern.permute.xlu1 %v4812_v8 }
  0x8d   : > { %556 = vperm.xlu1 %4439, %v5059_v3   ;;  %4324 = vmatpush3.bf16.msra.mxu0 %v4321_v62 }
  0x8e   : > { %4444 = vset.pattern.permute.xlu0 %v4813_v9  ;;  %3913 = vmatprep.subr.bf16.mxu0 %v4810_v5 }
  0x8f   : > { %592 = vperm.xlu0 %4444, %v5063_v4  }
  0x91   : > { %4440 = vset.pattern.permute.xlu1 %v4811_v7  ;;  %v894_v7 = vld [vmem:[%s473_s30 + $0x8] sm:$0xff] }
  0x92   : > { %548 = vperm.xlu1 %4440, %v5069_v6  }
  0x93   : > { %4447 = vset.pattern.permute.xlu0 %v4814_v10 }
  0x94   : > { %607 = vperm.xlu0 %4447, %v5057_v2  }
  0x96   : > { %4442 = vset.pattern.permute.xlu1 %v4812_v8  ;;  %v893_v8 = vld [vmem:[%s473_s30] sm:$0xff] }
  0x97   : > { %568 = vperm.xlu1 %4442, %v5063_v4  }
  0x98   : > { %620 = vperm.xlu0 %4447, %v5069_v6  }
  0x9b   : > { %4443 = vset.pattern.permute.xlu1 %v4813_v9 }
  0x9c   : > { %580 = vperm.xlu1 %4443, %v5059_v3   ;;  %4450 = vset.pattern.permute.xlu0 %v4815_v11 }
  0x9d   : > { %640 = vperm.xlu0 %4450, %v5063_v4  }
  0xa0   : > { %583 = vperm.xlu1 %4443, %v5057_v2  }
  0xa1   : > { %4453 = vset.pattern.permute.xlu0 %v4816_v12 }
  0xa2   : > { %655 = vperm.xlu0 %4453, %v5057_v2  }
  0xa4   : > { %4445 = vset.pattern.permute.xlu1 %v4814_v10 }
  0xa5   : > { %604 = vperm.xlu1 %4445, %v5059_v3  }
  0xa6   : > { %668 = vperm.xlu0 %4453, %v5069_v6  }
  0xa9   : > { %4446 = vset.pattern.permute.xlu1 %v4813_v9 }
  0xaa   : > { %596 = vperm.xlu1 %4446, %v5069_v6   ;;  %4456 = vset.pattern.permute.xlu0 %v4817_v13 }
  0xab   : > { %688 = vperm.xlu0 %4456, %v5063_v4  }
  0xae   : > { %4448 = vset.pattern.permute.xlu1 %v4814_v10 }
  0xaf   : > { %616 = vperm.xlu1 %4448, %v5063_v4   ;;  %4459 = vset.pattern.permute.xlu0 %v4818_v14 }
  0xb0   : > { %703 = vperm.xlu0 %4459, %v5057_v2  }
  0xb3   : > { %4449 = vset.pattern.permute.xlu1 %v4815_v11 }
  0xb4   : > { %628 = vperm.xlu1 %4449, %v5059_v3   ;;  %716 = vperm.xlu0 %4459, %v5069_v6  }
  0xb8   : > { %631 = vperm.xlu1 %4449, %v5057_v2   ;;  %4462 = vset.pattern.permute.xlu0 %v4819_v15 }
  0xb9   : > { %736 = vperm.xlu0 %4462, %v5063_v4  }
  0xbc   : > { %4451 = vset.pattern.permute.xlu1 %v4816_v12 }
  0xbd   : > { %652 = vperm.xlu1 %4451, %v5059_v3   ;;  %4465 = vset.pattern.permute.xlu0 %v4820_v16 }
  0xbe   : > { %751 = vperm.xlu0 %4465, %v5057_v2  }
  0xc1   : > { %4452 = vset.pattern.permute.xlu1 %v4815_v11 }
  0xc2   : > { %644 = vperm.xlu1 %4452, %v5069_v6   ;;  %764 = vperm.xlu0 %4465, %v5069_v6  }
  0xc6   : > { %4454 = vset.pattern.permute.xlu1 %v4816_v12  ;;  %4468 = vset.pattern.permute.xlu0 %v4821_v17 }
  0xc7   : > { %664 = vperm.xlu1 %4454, %v5063_v4   ;;  %784 = vperm.xlu0 %4468, %v5063_v4  }
  0xcb   : > { %4455 = vset.pattern.permute.xlu1 %v4817_v13  ;;  %4470 = vset.pattern.permute.xlu0 %v4809_v1 }
  0xcc   : > { %676 = vperm.xlu1 %4455, %v5059_v3   ;;  %902 = vperm.xlu0 %4470, %v894_v7  }
  0xd0   : > { %679 = vperm.xlu1 %4455, %v5057_v2  }
  0xd4   : > { %4457 = vset.pattern.permute.xlu1 %v4818_v14 }
  0xd5   : > { %700 = vperm.xlu1 %4457, %v5059_v3  }
  0xd9   : > { %4458 = vset.pattern.permute.xlu1 %v4817_v13 }
  0xda   : > { %692 = vperm.xlu1 %4458, %v5069_v6  }
  0xde   : > { %4460 = vset.pattern.permute.xlu1 %v4818_v14 }
  0xdf   : > { %712 = vperm.xlu1 %4460, %v5063_v4  }
  0xe3   : > { %4461 = vset.pattern.permute.xlu1 %v4819_v15 }
  0xe4   : > { %724 = vperm.xlu1 %4461, %v5059_v3  }
  0xe8   : > { %727 = vperm.xlu1 %4461, %v5057_v2  }
  0xec   : > { %4463 = vset.pattern.permute.xlu1 %v4820_v16 }
  0xed   : > { %748 = vperm.xlu1 %4463, %v5059_v3  }
  0xee   : > { %v488_v26 = vpop.permute.xlu1 %487  ;;  %v509_v27 = vpop.permute.xlu0 %508 }
  0xef   : > { %vm513_vm0 = vcmp.eq.s32.totalorder %v509_v27, %v5142_v35  ;;  %vm490_vm3 = vcmp.eq.s32.totalorder %v488_v26, %v5142_v35 }
  0xf0   : > { %v3495_v43 = vsel %vm513_vm0, 1.0, %v4810_v5  ;;  %v3494_v59 = vsel %vm490_vm3, 1.0, %v4810_v5 }
  0xf1   : > { %4464 = vset.pattern.permute.xlu1 %v4819_v15 }
  0xf2   : > { %740 = vperm.xlu1 %4464, %v5069_v6   ;;  %v521_v32 = vpop.permute.xlu0 %520 }
  0xf3   : > { %v512_v34 = vpop.permute.xlu1 %511  ;;  %v527_v47 = vmul.f32 %v3495_v43, %v521_v32 }
  0xf4   : > { %vm514_vm4 = vcmp.eq.s32.totalorder %v512_v34, %v5142_v35 }
  0xf5   : > { %v3496_v60 = vsel %vm514_vm4, 1.0, %v4810_v5 }
  0xf6   : > { %4466 = vset.pattern.permute.xlu1 %v4820_v16 }
  0xf7   : > { %v485_v39 = vpop.permute.xlu0 %484  ;;  %760 = vperm.xlu1 %4466, %v5063_v4  }
  0xf8   : > { %vm489_vm1 = vcmp.eq.s32.totalorder %v485_v39, %v5142_v35  ;;  %v498_v40 = vpop.permute.xlu1 %497 }
  0xf9   : > { %v3493_v44 = vsel %vm489_vm1, 1.0, %v4810_v5 }
  0xfa   : > { %v505_v48 = vmul.f32 %v3493_v44, %v498_v40 }
  0xfb   : > { %v503_v46 = vpop.permute.xlu0 %502  ;;  %4467 = vset.pattern.permute.xlu1 %v4821_v17 }
  0xfc   : > { %772 = vperm.xlu1 %4467, %v5059_v3   ;;  %v529_v55 = vadd.f32 %v527_v47, %v505_v48  ;;  %v506_v63 = vmul.f32 %v3494_v59, %v503_v46 }
  0xfd   : > { %v533_v49 = vpop.permute.xlu1 %532 }
  0xfe   : > { %vm537_vm2 = vcmp.eq.s32.totalorder %v533_v49, %v5142_v35 }
  0xff   : > { %v3497_v53 = vsel %vm537_vm2, 1.0, %v4810_v5 }
 0x100   : > { %v545_v54 = vpop.permute.xlu0 %544  ;;  %775 = vperm.xlu1 %4467, %v5057_v2  }
 0x101   : > { %v551_v56 = vmul.f32 %v3497_v53, %v545_v54 }
 0x102   : > { %v525_v61 = vpop.permute.xlu1 %524 }
 0x103   : > { %v553_v0 = vadd.f32 %v551_v56, %v529_v55  ;;  %v528_v2 = vmul.f32 %v3496_v60, %v525_v61 }
 0x104   : > { %788 = vperm.xlu1 %4467, %v5069_v6  }
 0x105   : > { %v530_v3 = vadd.f32 %v528_v2, %v506_v63  ;;  %v560_v6 = vpop.permute.xlu0 %559 }
 0x106   : > { %vm562_vm8 = vcmp.eq.s32.totalorder %v560_v6, %v5142_v35 }
 0x107   : > { %v536_v4 = vpop.permute.xlu1 %535  ;;  %v3500_v24 = vsel %vm562_vm8, 1.0, %v4810_v5 }
 0x108   : > { %4469 = vset.pattern.permute.xlu1 %v4809_v1  ;;  %vm538_vm5 = vcmp.eq.s32.totalorder %v536_v4, %v5142_v35 }
 0x109   : > { %897 = vperm.xlu1 %4469, %v893_v8   ;;  %v3498_v10 = vsel %vm538_vm5, 1.0, %v4810_v5  ;;  %v573_v16 = vpop.permute.xlu0 %572 }
 0x10a   : > { %v576_v26 = vmul.f32 %v3500_v24, %v573_v16 }
 0x10c   : > { %v557_v9 = vpop.permute.xlu1 %556 }
 0x10d   : > { %vm561_vm6 = vcmp.eq.s32.totalorder %v557_v9, %v5142_v35 }
 0x10e   : > { %v3499_v14 = vsel %vm561_vm6, 1.0, %v4810_v5  ;;  %v593_v19 = vpop.permute.xlu0 %592 }
 0x111   : > { %v549_v11 = vpop.permute.xlu1 %548 }
 0x112   : > { %v552_v12 = vmul.f32 %v3498_v10, %v549_v11 }
 0x113   : > { %v608_v39 = vpop.permute.xlu0 %607 }
 0x114   : > { %v554_v13 = vadd.f32 %v552_v12, %v530_v3  ;;  %vm610_vm10 = vcmp.eq.s32.totalorder %v608_v39, %v5142_v35 }
 0x115   : > { %v3504_v53 = vsel %vm610_vm10, 1.0, %v4810_v5  ;;  %vm4822_vm10 = vmmov 0  }
 0x116   : > { %v569_v15 = vpop.permute.xlu1 %568  ;;  %v578_v29 = vadd.f32 %v576_v26, %v554_v13  ;;  %3969 = vmatprep.mubr.msk.bf16.mxu1 %vm4822_vm10, %v4810_v5 }
 0x117   : > { %v575_v1 = vmul.f32 %v3499_v14, %v569_v15  ;;  %v621_v41 = vpop.permute.xlu0 %620 }
 0x118   : > { %v624_v55 = vmul.f32 %v3504_v53, %v621_v41  ;;  %v4474_v53 = vld [vmem:[#allocation3 + $0x88] sm:$0xff]  }
 0x119   : > { %v577_v17 = vadd.f32 %v575_v1, %v553_v0 }
 0x11b   : > { %v581_v18 = vpop.permute.xlu1 %580 }
 0x11c   : > { %vm585_vm7 = vcmp.eq.s32.totalorder %v581_v18, %v5142_v35  ;;  %v641_v43 = vpop.permute.xlu0 %640 }
 0x11d   : > { %v3501_v20 = vsel %vm585_vm7, 1.0, %v4810_v5 }
 0x11e   : > { %v599_v21 = vmul.f32 %v3501_v20, %v593_v19 }
 0x11f   : > { %v584_v22 = vpop.permute.xlu1 %583 }
 0x120   : > { %v601_v23 = vadd.f32 %v599_v21, %v577_v17  ;;  %vm586_vm9 = vcmp.eq.s32.totalorder %v584_v22, %v5142_v35 }
 0x121   : > { %v3502_v27 = vsel %vm586_vm9, 1.0, %v4810_v5  ;;  %v656_v45 = vpop.permute.xlu0 %655 }
 0x122   : > { %vm658_vm14 = vcmp.eq.s32.totalorder %v656_v45, %v5142_v35 }
 0x123   : > { %v3508_v2 = vsel %vm658_vm14, 1.0, %v4810_v5  ;;  %vm1776_vm14 = vcmask 1044480  }
 0x124   : > { %v605_v25 = vpop.permute.xlu1 %604 }
 0x125   : > { %v669_v47 = vpop.permute.xlu0 %668  ;;  %vm609_vm11 = vcmp.eq.s32.totalorder %v605_v25, %v5142_v35 }
 0x126   : > { %v3503_v56 = vsel %vm609_vm11, 1.0, %v4810_v5  ;;  %v672_v12 = vmul.f32 %v3508_v2, %v669_v47  ;;  %v3519_v2 = vld [vmem:[%s5547_s4] ss:$0 sm:$0xff]  ;;  %vm970_vm11 = vsmask.f32 4352 }
 0x129   : > { %v597_v28 = vpop.permute.xlu1 %596 }
 0x12a   : > { %v600_v30 = vmul.f32 %v3502_v27, %v597_v28  ;;  %v689_v49 = vpop.permute.xlu0 %688 }
 0x12c   : > { %v602_v31 = vadd.f32 %v600_v30, %v578_v29 }
 0x12e   : > { %v617_v32 = vpop.permute.xlu1 %616  ;;  %v626_v62 = vadd.f32 %v624_v55, %v602_v31  ;;  %v4477_v55 = vld [vmem:[#allocation3 + $0x18] sm:$0xff]  }
 0x12f   : > { %v704_v50 = vpop.permute.xlu0 %703  ;;  %v623_v58 = vmul.f32 %v3503_v56, %v617_v32  ;;  %v4478_v56 = vld [vmem:[#allocation3 + $0x98] sm:$0xff]  }
 0x130   : > { %vm706_vm1 = vcmp.eq.s32.totalorder %v704_v50, %v5142_v35  ;;  %v4471_v50 = vld [vmem:[#allocation3] sm:$0xff]  }
 0x131   : > { %v625_v3 = vadd.f32 %v623_v58, %v601_v23  ;;  %v3512_v15 = vsel %vm706_vm1, 1.0, %v4810_v5  ;;  %v4480_v58 = vld [vmem:[#allocation3 + $0xa0] sm:$0xff]   ;;  %vm2857_vm1 = vcmask 1041408  }
 0x133   : > { %v629_v33 = vpop.permute.xlu1 %628  ;;  %v717_v54 = vpop.permute.xlu0 %716 }
 0x134   : > { %vm633_vm12 = vcmp.eq.s32.totalorder %v629_v33, %v5142_v35  ;;  %v720_v25 = vmul.f32 %v3512_v15, %v717_v54  ;;  %v4476_v54 = vld [vmem:[#allocation3 + $0x90] sm:$0xff]  }
 0x135   : > { %v3505_v59 = vsel %vm633_vm12, 1.0, %v4810_v5  ;;  %vm1191_vm12 = vsmask.f32 3328 }
 0x136   : > { %v647_v63 = vmul.f32 %v3505_v59, %v641_v43  ;;  %v4481_v59 = vld [vmem:[#allocation3 + $0x28] sm:$0xff]  }
 0x137   : > { %v632_v34 = vpop.permute.xlu1 %631 }
 0x138   : > { %vm634_vm13 = vcmp.eq.s32.totalorder %v632_v34, %v5142_v35  ;;  %v737_v60 = vpop.permute.xlu0 %736  ;;  %v649_v10 = vadd.f32 %v647_v63, %v625_v3  ;;  %v4485_v63 = vld [vmem:[#allocation3 + $0x38] sm:$0xff]  }
 0x139   : > { %v3506_v61 = vsel %vm634_vm13, 1.0, %v4810_v5  ;;  %vm1080_vm13 = vcmask 1043456  }
 0x13c   : > { %v653_v36 = vpop.permute.xlu1 %652 }
 0x13d   : > { %vm657_vm15 = vcmp.eq.s32.totalorder %v653_v36, %v5142_v35  ;;  %v752_v8 = vpop.permute.xlu0 %751 }
 0x13e   : > { %v3507_v4 = vsel %vm657_vm15, 1.0, %v4810_v5  ;;  %vm754_vm7 = vcmp.eq.s32.totalorder %v752_v8, %v5142_v35  ;;  %vm1984_vm15 = vcmask 1042432  }
 0x13f   : > { %v3516_v36 = vsel %vm754_vm7, 1.0, %v4810_v5 }
 0x141   : > { %v645_v37 = vpop.permute.xlu1 %644  ;;  %v765_v21 = vpop.permute.xlu0 %764 }
 0x142   : > { %v648_v0 = vmul.f32 %v3506_v61, %v645_v37  ;;  %v768_v43 = vmul.f32 %v3516_v36, %v765_v21  ;;  %v4483_v61 = vld [vmem:[#allocation3 + $0x30] sm:$0xff]  }
 0x144   : > { %v650_v11 = vadd.f32 %v648_v0, %v626_v62  ;;  %v4484_v62 = vld [vmem:[#allocation3 + $0xb0] sm:$0xff]   ;;  %v4486_v0 = vld [vmem:[#allocation3 + $0xb8] sm:$0xff]  }
 0x146   : > { %v665_v38 = vpop.permute.xlu1 %664  ;;  %v674_v22 = vadd.f32 %v672_v12, %v650_v11  ;;  %v785_v32 = vpop.permute.xlu0 %784 }
 0x147   : > { %v671_v6 = vmul.f32 %v3507_v4, %v665_v38 }
 0x149   : > { %v673_v17 = vadd.f32 %v671_v6, %v649_v10 }
 0x14b   : > { %v677_v40 = vpop.permute.xlu1 %676  ;;  %v903_v4 = vpop.permute.xlu0 %902 }
 0x14c   : > { %vm681_vm0 = vcmp.eq.s32.totalorder %v677_v40, %v5142_v35 }
 0x14d   : > { %v3509_v7 = vsel %vm681_vm0, 1.0, %v4810_v5  ;;  %vm2649_vm0 = vcmask 1045504  }
 0x14e   : > { %v695_v13 = vmul.f32 %v3509_v7, %v689_v49 }
 0x14f   : > { %v680_v42 = vpop.permute.xlu1 %679 }
 0x150   : > { %vm682_vm2 = vcmp.eq.s32.totalorder %v680_v42, %v5142_v35  ;;  %v697_v23 = vadd.f32 %v695_v13, %v673_v17 }
 0x151   : > { %v3510_v14 = vsel %vm682_vm2, 1.0, %v4810_v5 }
 0x154   : > { %v701_v44 = vpop.permute.xlu1 %700 }
 0x155   : > { %vm705_vm3 = vcmp.eq.s32.totalorder %v701_v44, %v5142_v35 }
 0x156   : > { %v3511_v16 = vsel %vm705_vm3, 1.0, %v4810_v5 }
 0x159   : > { %v693_v46 = vpop.permute.xlu1 %692 }
 0x15a   : > { %v696_v18 = vmul.f32 %v3510_v14, %v693_v46 }
 0x15c   : > { %v698_v27 = vadd.f32 %v696_v18, %v674_v22 }
 0x15e   : > { %v713_v48 = vpop.permute.xlu1 %712  ;;  %v722_v38 = vadd.f32 %v720_v25, %v698_v27 }
 0x15f   : > { %v719_v19 = vmul.f32 %v3511_v16, %v713_v48 }
 0x161   : > { %v721_v28 = vadd.f32 %v719_v19, %v697_v23 }
 0x163   : > { %v725_v51 = vpop.permute.xlu1 %724 }
 0x164   : > { %vm729_vm4 = vcmp.eq.s32.totalorder %v725_v51, %v5142_v35  ;;  %v4472_v51 = vld [vmem:[#allocation3 + $0x80] sm:$0xff]  }
 0x165   : > { %v3513_v1 = vsel %vm729_vm4, 1.0, %v4810_v5  ;;  %3954 = vmatpush3.bf16.msra.mxu1 %v4472_v51 }
 0x166   : > { %v743_v24 = vmul.f32 %v3513_v1, %v737_v60  ;;  %3955 = vmatprep.subr.bf16.mxu1 %v4810_v5  ;;  %v4482_v60 = vld [vmem:[#allocation3 + $0xa8] sm:$0xff]  }
 0x167   : > { %v728_v52 = vpop.permute.xlu1 %727 }
 0x168   : > { %vm730_vm6 = vcmp.eq.s32.totalorder %v728_v52, %v5142_v35  ;;  %v745_v33 = vadd.f32 %v743_v24, %v721_v28  ;;  %v4473_v52 = vld [vmem:[#allocation3 + $0x8] sm:$0xff]  }
 0x169   : > { %v3514_v30 = vsel %vm730_vm6, 1.0, %v4810_v5  ;;  %3956 = vmatpush3.bf16.msra.mxu1 %v4474_v53 }
 0x16a   : > { %3957 = vmatprep.subr.bf16.mxu1 %v4810_v5 }
 0x16c   : > { %v749_v57 = vpop.permute.xlu1 %748 }
 0x16d   : > { %vm753_vm5 = vcmp.eq.s32.totalorder %v749_v57, %v5142_v35  ;;  %3958 = vmatpush3.bf16.msra.mxu1 %v4476_v54  ;;  %v4479_v57 = vld [vmem:[#allocation3 + $0x20] sm:$0xff]  }
 0x16e   : > { %v3515_v26 = vsel %vm753_vm5, 1.0, %v4810_v5  ;;  %3959 = vmatprep.subr.bf16.mxu1 %v4810_v5 }
 0x171   : > { %v741_v9 = vpop.permute.xlu1 %740  ;;  %3960 = vmatpush3.bf16.msra.mxu1 %v4478_v56 }
 0x172   : > { %v744_v34 = vmul.f32 %v3514_v30, %v741_v9  ;;  %3961 = vmatprep.subr.bf16.mxu1 %v4810_v5 }
 0x174   : > { %v746_v42 = vadd.f32 %v744_v34, %v722_v38 }
 0x175   : > { %3962 = vmatpush3.bf16.msra.mxu1 %v4480_v58  ;;  %v4488_v58 = vld [vmem:[#allocation3 + $0x48] sm:$0xff]  }
 0x176   : > { %v761_v20 = vpop.permute.xlu1 %760  ;;  %v770_v47 = vadd.f32 %v768_v43, %v746_v42  ;;  %3963 = vmatprep.subr.bf16.mxu1 %v4810_v5 }
 0x177   : > { %v767_v29 = vmul.f32 %v3515_v26, %v761_v20 }
 0x179   : > { %v769_v40 = vadd.f32 %v767_v29, %v745_v33  ;;  %3964 = vmatpush3.bf16.msra.mxu1 %v4482_v60  ;;  %v4490_v60 = vld [vmem:[#allocation3 + $0x58] sm:$0xff]  }
 0x17a   : > { %3965 = vmatprep.subr.bf16.mxu1 %v4810_v5 }
 0x17b   : > { %v773_v31 = vpop.permute.xlu1 %772 }
 0x17c   : > { %vm777_vm8 = vcmp.eq.s32.totalorder %v773_v31, %v5142_v35 }
 0x17d   : > { %v3517_v37 = vsel %vm777_vm8, 1.0, %v4810_v5  ;;  %3966 = vmatpush3.bf16.msra.mxu1 %v4484_v62  ;;  %v4492_v62 = vld [vmem:[#allocation3 + $0x68] sm:$0xff]  }
 0x17e   : > { %v791_v39 = vmul.f32 %v3517_v37, %v785_v32  ;;  %3967 = vmatprep.subr.bf16.mxu1 %v4810_v5 }
 0x17f   : > { %v776_v41 = vpop.permute.xlu1 %775 }
 0x180   : > { %vm778_vm9 = vcmp.eq.s32.totalorder %v776_v41, %v5142_v35  ;;  %v793_v44 = vadd.f32 %v791_v39, %v769_v40  ;;  %v4475_v35 = vld [vmem:[#allocation3 + $0x10] sm:$0xff]  }
 0x181   : > { %v3518_v45 = vsel %vm778_vm9, 1.0, %v4810_v5  ;;  %3968 = vmatpush3.bf16.msra.mxu1 %v4486_v0  ;;  %v4494_v0 = vld [vmem:[#allocation3 + $0x78] sm:$0xff]  }
 0x182   : > { %3910 = vmatprep.mubr.f32.mxu0 %v793_v44  ;;  %3993 = vmatprep.subr.bf16.mxu1 %v4810_v5 }
 0x183   : > { %v789_v46 = vpop.permute.xlu1 %788 }
 0x184   : > { %v792_v48 = vmul.f32 %v3518_v45, %v789_v46 }
 0x186   : > { %v794_v49 = vadd.f32 %v792_v48, %v770_v47 }
 0x188   : > { %3911 = vmatmul.mubr.f32.vlgmr.msra.gmra.mrb[0].mxu0 %v794_v49  ;;  %v898_v9 = vpop.permute.xlu1 %897 }
 0x189   : > { %3914 = vmatpush3.bf16.msra.mxu0 %v4471_v50  ;;  %3929 = vmatprep.mubr.msk.bf16.mxu0 %vm4822_vm10, %v4810_v5 }
 0x18a   : > { %3915 = vmatprep.subr.bf16.mxu0 %v4810_v5 }
 0x18d   : > { %3916 = vmatpush3.bf16.msra.mxu0 %v4473_v52 }
 0x18e   : > { %3917 = vmatprep.subr.bf16.mxu0 %v4810_v5 }
 0x191   : > { %3918 = vmatpush3.bf16.msra.mxu0 %v4475_v35  ;;  %v4487_v35 = vld [vmem:[#allocation3 + $0x40] sm:$0xff]  }
 0x192   : > { %3919 = vmatprep.subr.bf16.mxu0 %v4810_v5 }
 0x195   : > { %3920 = vmatpush3.bf16.msra.mxu0 %v4477_v55 }
 0x196   : > { %3921 = vmatprep.subr.bf16.mxu0 %v4810_v5 }
 0x199   : > { %3922 = vmatpush3.bf16.msra.mxu0 %v4479_v57 }
 0x19a   : > { %3923 = vmatprep.subr.bf16.mxu0 %v4810_v5 }
 0x19d   : > { %3924 = vmatpush3.bf16.msra.mxu0 %v4481_v59  ;;  %v4489_v59 = vld [vmem:[#allocation3 + $0x50] sm:$0xff]  }
 0x19e   : > { %3925 = vmatprep.subr.bf16.mxu0 %v4810_v5 }
 0x1a1   : > { %3926 = vmatpush3.bf16.msra.mxu0 %v4483_v61  ;;  %v4491_v61 = vld [vmem:[#allocation3 + $0x60] sm:$0xff]  }
 0x1a2   : > { %3927 = vmatprep.subr.bf16.mxu0 %v4810_v5 }
 0x1a5   : > { %3928 = vmatpush3.bf16.msra.mxu0 %v4485_v63  ;;  %v4493_v63 = vld [vmem:[#allocation3 + $0x70] sm:$0xff]  }
 0x1a6   : > { %3933 = vmatprep.subr.bf16.mxu0 %v4810_v5 }
 0x25b   : > { %v3912_v3 = vpop.f32.mrb[0].mxu0 }
 0x25c   : > { %v890_v7 = vadd.f32 %v3912_v3, %v3519_v2  ;;  %v884_v8 = vpop.f32.mrb[1].mxu0 }
 0x25d   : > { %v885_v6 = vadd.f32 %v3519_v2, %v884_v8  ;;  %v4496_v8 = vld [vmem:[#allocation6] sm:$0xff]  }
 0x25e   : > { %v5254_v10 = vmul.f32 %v903_v4, %v890_v7  ;;  %v4495_v7 = vld [vmem:[#allocation6 + $0x40] sm:$0xff]  }
 0x25f   : > { %v5256_v11 = vmul.f32 %v898_v9, %v885_v6  ;;  %v4497_v9 = vld [vmem:[#allocation6 + $0x48] sm:$0xff]  }
 0x260   : > { %v912_v12 = vmul.f32 0.044715, %v5254_v10  ;;  %v910_v23 = vmul.f32 0.5, %v5254_v10  ;;  %v4498_v6 = vld [vmem:[#allocation6 + $0x8] sm:$0xff]  }
 0x261   : > { %v911_v13 = vmul.f32 0.044715, %v5256_v11  ;;  %v909_v25 = vmul.f32 0.5, %v5256_v11 }
 0x262   : > { %v914_v14 = vmul.f32 %v912_v12, %v5254_v10  ;;  %v4499_v12 = vld [vmem:[#allocation6 + $0x50] sm:$0xff]  }
 0x263   : > { %v913_v15 = vmul.f32 %v911_v13, %v5256_v11  ;;  %v4500_v13 = vld [vmem:[#allocation6 + $0x10] sm:$0xff]  }
 0x264   : > { %v916_v16 = vmul.f32 %v914_v14, %v5254_v10  ;;  %v4501_v14 = vld [vmem:[#allocation6 + $0x58] sm:$0xff]  }
 0x265   : > { %v915_v1 = vmul.f32 %v913_v15, %v5256_v11  ;;  %v4502_v15 = vld [vmem:[#allocation6 + $0x18] sm:$0xff]  }
 0x266   : > { %v918_v17 = vadd.f32 %v916_v16, %v5254_v10  ;;  %v4503_v16 = vld [vmem:[#allocation6 + $0x60] sm:$0xff]  }
 0x267   : > { %v917_v18 = vadd.f32 %v915_v1, %v5256_v11  ;;  %v4504_v1 = vld [vmem:[#allocation6 + $0x20] sm:$0xff]  }
 0x268   : > { %v920_v19 = vmul.f32 0.7978846, %v918_v17  ;;  %v4505_v17 = vld [vmem:[#allocation6 + $0x68] sm:$0xff]  }
 0x269   : > { %v919_v20 = vmul.f32 0.7978846, %v917_v18  ;;  %v4506_v18 = vld [vmem:[#allocation6 + $0x28] sm:$0xff]  }
 0x26a   : > { %4623 = vtanh.f32 %v920_v19  ;;  %v4507_v19 = vld [vmem:[#allocation6 + $0x70] sm:$0xff]  }
 0x26b   : > { %4625 = vtanh.f32 %v919_v20  ;;  %v4508_v20 = vld [vmem:[#allocation6 + $0x30] sm:$0xff]  }
 0x274   : > { %v4624_v21 = vpop.eup %4623 }
 0x275   : > { %v4626_v22 = vpop.eup %4625  ;;  %v924_v24 = vadd.f32 1.0, %v4624_v21  ;;  %v4509_v21 = vld [vmem:[#allocation6 + $0x78] sm:$0xff]  }
 0x276   : > { %v923_v26 = vadd.f32 1.0, %v4626_v22  ;;  %v4510_v22 = vld [vmem:[#allocation6 + $0x38] sm:$0xff]  }
 0x277   : > { %v926_v27 = vmul.f32 %v924_v24, %v910_v23 }
 0x278   : > { %v925_v28 = vmul.f32 %v923_v26, %v909_v25 }
 0x27a   : > { %v927_v29 = vpack.c.bf16 %v926_v27, %v925_v28 }
 0x27c   : > { %v929_v30 = vrot.slane %v927_v29, 4 }
 0x27e   : > { %931 = vst [vmem:[#allocation2 + $0x8] ss:$-4 sps:$4 sm:$0xff] %v929_v30  }
 0x285   : > { %v934_v31 = vld [vmem:[#allocation2 + $0x8] sm:$0xf]  ;;  %v952_v32 = vld [vmem:[#allocation2] sm:$0xf8] }
 0x286   : > { %v933_v33 = vld [vmem:[#allocation2] sm:$0xf0]  ;;  %v972_v34 = vshrl.u32 %v952_v32, 16  ;;  %v975_v36 = vshll.u32 %v952_v32, 16  ;;  %v980_v37 = vshrl.u32 %v934_v31, 16  ;;  %v983_v38 = vshll.u32 %v934_v31, 16 }
 0x287   : > { %v953_v39 = vld [vmem:[#allocation2 + $0x8] sm:$0x1f]  ;;  %v1193_v40 = vshrl.u32 %v933_v33, 16  ;;  %v1196_v41 = vshll.u32 %v933_v33, 16  ;;  %v1081_v2 = vrot.slane %v933_v33, 4  ;;  %v1082_v3 = vrot.slane %v934_v31, 4 }
 0x288   : > { %v1201_v42 = vshrl.u32 %v953_v39, 16  ;;  %v1204_v43 = vshll.u32 %v953_v39, 16  ;;  %v974_v44 = vrot.slane %v972_v34, 3  ;;  %v977_v45 = vrot.slane %v975_v36, 4  ;;  %v3544_v34 = vld [vmem:[%s5549_s6] ss:$0 sm:$0xff] }
 0x289   : > { %v982_v46 = vrot.slane %v980_v37, 3  ;;  %v985_v47 = vrot.slane %v983_v38, 4  ;;  %v1195_v48 = vrot.slane %v1193_v40, 4  ;;  %v1198_v49 = vrot.slane %v1196_v41, 5 }
 0x28a   : > { %v1203_v50 = vrot.slane %v1201_v42, 4  ;;  %v1206_v51 = vrot.slane %v1204_v43, 5  ;;  %v978_v52 = vor.u32 %v977_v45, %v974_v44  ;;  %v1083_v4 = vsel %vm1080_vm13, %v1081_v2, %v1082_v3 }
 0x28b   : > { %v986_v53 = vor.u32 %v985_v47, %v982_v46  ;;  %v1199_v54 = vor.u32 %v1198_v49, %v1195_v48 }
 0x28c   : > { %v1207_v55 = vor.u32 %v1206_v51, %v1203_v50 }
 0x28d   : > { %v987_v56 = vsel %vm970_vm11, %v978_v52, %v986_v53 }
 0x28e   : > { %3930 = vmatmul.mubr.bf16.vlgmr.msra.gmra.mrb[4].mxu0 %v987_v56  ;;  %v1208_v57 = vsel %vm1191_vm12, %v1199_v54, %v1207_v55 }
 0x28f   : > { %3934 = vmatpush3.bf16.msra.mxu0 %v4487_v35  ;;  %3970 = vmatmul.mubr.bf16.vlgmr.msra.gmra.mrb[0].mxu1 %v1208_v57 }
 0x290   : > { %3935 = vmatprep.subr.bf16.mxu0 %v4810_v5  ;;  %3949 = vmatprep.mubr.msk.bf16.mxu0 %vm4822_vm10, %v4810_v5 }
 0x291   : > { %4009 = vmatprep.mubr.msk.bf16.mxu1 %vm4822_vm10, %v4810_v5  ;;  %3994 = vmatpush3.bf16.msra.mxu1 %v4495_v7 }
 0x292   : > { %3995 = vmatprep.subr.bf16.mxu1 %v4810_v5 }
 0x293   : > { %3936 = vmatpush3.bf16.msra.mxu0 %v4488_v58 }
 0x294   : > { %3937 = vmatprep.subr.bf16.mxu0 %v4810_v5 }
 0x295   : > { %3996 = vmatpush3.bf16.msra.mxu1 %v4497_v9 }
 0x296   : > { %3997 = vmatprep.subr.bf16.mxu1 %v4810_v5 }
 0x297   : > { %3938 = vmatpush3.bf16.msra.mxu0 %v4489_v59 }
 0x298   : > { %3939 = vmatprep.subr.bf16.mxu0 %v4810_v5 }
 0x299   : > { %3998 = vmatpush3.bf16.msra.mxu1 %v4499_v12 }
 0x29a   : > { %3999 = vmatprep.subr.bf16.mxu1 %v4810_v5 }
 0x29b   : > { %3940 = vmatpush3.bf16.msra.mxu0 %v4490_v60 }
 0x29c   : > { %3941 = vmatprep.subr.bf16.mxu0 %v4810_v5 }
 0x29d   : > { %4000 = vmatpush3.bf16.msra.mxu1 %v4501_v14 }
 0x29e   : > { %4001 = vmatprep.subr.bf16.mxu1 %v4810_v5 }
 0x29f   : > { %3942 = vmatpush3.bf16.msra.mxu0 %v4491_v61 }
 0x2a0   : > { %3943 = vmatprep.subr.bf16.mxu0 %v4810_v5 }
 0x2a1   : > { %4002 = vmatpush3.bf16.msra.mxu1 %v4503_v16 }
 0x2a2   : > { %4003 = vmatprep.subr.bf16.mxu1 %v4810_v5 }
 0x2a3   : > { %3944 = vmatpush3.bf16.msra.mxu0 %v4492_v62 }
 0x2a4   : > { %3945 = vmatprep.subr.bf16.mxu0 %v4810_v5 }
 0x2a5   : > { %4004 = vmatpush3.bf16.msra.mxu1 %v4505_v17  ;;  %v4511_v17 = vld [vmem:[#allocation6 + $0x80] sm:$0xff]  }
 0x2a6   : > { %4005 = vmatprep.subr.bf16.mxu1 %v4810_v5 }
 0x2a7   : > { %3946 = vmatpush3.bf16.msra.mxu0 %v4493_v63 }
 0x2a8   : > { %3947 = vmatprep.subr.bf16.mxu0 %v4810_v5 }
 0x2a9   : > { %4006 = vmatpush3.bf16.msra.mxu1 %v4507_v19  ;;  %v4512_v19 = vld [vmem:[#allocation6 + $0x88] sm:$0xff]  }
 0x2aa   : > { %4007 = vmatprep.subr.bf16.mxu1 %v4810_v5 }
 0x2ab   : > { %3948 = vmatpush3.bf16.msra.mxu0 %v4494_v0 }
 0x2ac   : > { %3973 = vmatprep.subr.bf16.mxu0 %v4810_v5 }
 0x2ad   : > { %4008 = vmatpush3.bf16.msra.mxu1 %v4509_v21  ;;  %v4514_v21 = vld [vmem:[#allocation6 + $0x98] sm:$0xff]  }
 0x2ae   : > { %3950 = vmatmul.mubr.bf16.vlgmr.msra.gmra.mrb[8].mxu0 %v1083_v4  ;;  %4033 = vmatprep.subr.bf16.mxu1 %v4810_v5 }
 0x2af   : > { %3989 = vmatprep.mubr.msk.bf16.mxu0 %vm4822_vm10, %v4810_v5  ;;  %3974 = vmatpush3.bf16.msra.mxu0 %v4496_v8 }
 0x2b0   : > { %3975 = vmatprep.subr.bf16.mxu0 %v4810_v5 }
 0x2b3   : > { %3976 = vmatpush3.bf16.msra.mxu0 %v4498_v6 }
 0x2b4   : > { %3977 = vmatprep.subr.bf16.mxu0 %v4810_v5 }
 0x2b7   : > { %3978 = vmatpush3.bf16.msra.mxu0 %v4500_v13 }
 0x2b8   : > { %3979 = vmatprep.subr.bf16.mxu0 %v4810_v5 }
 0x2bb   : > { %3980 = vmatpush3.bf16.msra.mxu0 %v4502_v15 }
 0x2bc   : > { %3981 = vmatprep.subr.bf16.mxu0 %v4810_v5 }
 0x2bf   : > { %3982 = vmatpush3.bf16.msra.mxu0 %v4504_v1 }
 0x2c0   : > { %3983 = vmatprep.subr.bf16.mxu0 %v4810_v5 }
 0x2c3   : > { %3984 = vmatpush3.bf16.msra.mxu0 %v4506_v18 }
 0x2c4   : > { %3985 = vmatprep.subr.bf16.mxu0 %v4810_v5 }
 0x2c7   : > { %3986 = vmatpush3.bf16.msra.mxu0 %v4508_v20  ;;  %v4513_v20 = vld [vmem:[#allocation6 + $0x90] sm:$0xff]  }
 0x2c8   : > { %3987 = vmatprep.subr.bf16.mxu0 %v4810_v5 }
 0x2cb   : > { %3988 = vmatpush3.bf16.msra.mxu0 %v4510_v22  ;;  %v4515_v22 = vld [vmem:[#allocation6 + $0xa0] sm:$0xff]  }
 0x2cc   : > { %4013 = vmatprep.subr.bf16.mxu0 %v4810_v5 }
 0x361   : > { %v1071_v23 = vpop.f32.mrb[4].mxu0 }
 0x362   : > { %v1292_v24 = vpop.f32.mrb[0].mxu1  ;;  %v3931_v25 = vpop.f32.mrb[5].mxu0 }
 0x363   : > { %v3971_v26 = vpop.f32.mrb[1].mxu1  ;;  %v1074_v27 = vpop.f32.mrb[6].mxu0 }
 0x364   : > { %v1295_v28 = vpop.f32.mrb[2].mxu1  ;;  %v3932_v29 = vpop.f32.mrb[7].mxu0 }
 0x365   : > { %v3972_v30 = vpop.f32.mrb[3].mxu1  ;;  %v4517_v29 = vld [vmem:[#allocation6 + $0xb0] sm:$0xff]  }
 0x381   : > { %v1167_v31 = vpop.f32.mrb[8].mxu0 }
 0x382   : > { %v1168_v32 = vadd.f32 %v1167_v31, %v1071_v23  ;;  %v3951_v33 = vpop.f32.mrb[9].mxu0 }
 0x383   : > { %v1170_v36 = vpop.f32.mrb[10].mxu0 }
 0x384   : > { %v1299_v37 = vadd.f32 %v1292_v24, %v1168_v32  ;;  %v1171_v38 = vadd.f32 %v1170_v36, %v1074_v27  ;;  %v3952_v39 = vpop.f32.mrb[11].mxu0  ;;  %v4516_v24 = vld [vmem:[#allocation6 + $0xa8] sm:$0xff]  }
 0x385   : > { %v4519_v39 = vld [vmem:[#allocation3 + $0xc0] sm:$0xff]  }
 0x386   : > { %v1308_v40 = vadd.f32 %v3544_v34, %v1299_v37  ;;  %v1300_v41 = vadd.f32 %v1295_v28, %v1171_v38 }
 0x388   : > { %v1312_v42 = vmul.f32 0.044715, %v1308_v40  ;;  %v1309_v43 = vadd.f32 %v3544_v34, %v1300_v41  ;;  %v1310_v55 = vmul.f32 0.5, %v1308_v40  ;;  %v4518_v34 = vld [vmem:[#allocation6 + $0xb8] sm:$0xff]   ;;  %v4521_v41 = vld [vmem:[#allocation3 + $0xc8] sm:$0xff]  }
 0x38a   : > { %v1314_v44 = vmul.f32 %v1312_v42, %v1308_v40  ;;  %v1313_v45 = vmul.f32 0.044715, %v1309_v43  ;;  %v1311_v56 = vmul.f32 0.5, %v1309_v43  ;;  %v4522_v42 = vld [vmem:[#allocation3 + $0x108] sm:$0xff]  }
 0x38c   : > { %v1316_v46 = vmul.f32 %v1314_v44, %v1308_v40  ;;  %v1315_v47 = vmul.f32 %v1313_v45, %v1309_v43  ;;  %v4524_v44 = vld [vmem:[#allocation3 + $0x110] sm:$0xff]   ;;  %v4525_v45 = vld [vmem:[#allocation3 + $0xd8] sm:$0xff]  }
 0x38e   : > { %v1318_v48 = vadd.f32 %v1316_v46, %v1308_v40  ;;  %v1317_v49 = vmul.f32 %v1315_v47, %v1309_v43  ;;  %v4520_v40 = vld [vmem:[#allocation3 + $0x100] sm:$0xff]   ;;  %v4526_v46 = vld [vmem:[#allocation3 + $0x118] sm:$0xff]  }
 0x38f   : > { %v4527_v47 = vld [vmem:[#allocation3 + $0xe0] sm:$0xff]  }
 0x390   : > { %v1320_v50 = vmul.f32 0.7978846, %v1318_v48  ;;  %v1319_v51 = vadd.f32 %v1317_v49, %v1309_v43  ;;  %v4523_v43 = vld [vmem:[#allocation3 + $0xd0] sm:$0xff]   ;;  %v4528_v48 = vld [vmem:[#allocation3 + $0x120] sm:$0xff]   ;;  %v4529_v49 = vld [vmem:[#allocation3 + $0xe8] sm:$0xff]  }
 0x392   : > { %4627 = vtanh.f32 %v1320_v50  ;;  %v1321_v52 = vmul.f32 0.7978846, %v1319_v51  ;;  %v4530_v50 = vld [vmem:[#allocation3 + $0x128] sm:$0xff]   ;;  %v4531_v51 = vld [vmem:[#allocation3 + $0xf0] sm:$0xff]  }
 0x394   : > { %4629 = vtanh.f32 %v1321_v52  ;;  %v4532_v52 = vld [vmem:[#allocation3 + $0x130] sm:$0xff]  }
 0x39c   : > { %v4628_v53 = vpop.eup %4627 }
 0x39d   : > { %v1324_v35 = vadd.f32 1.0, %v4628_v53  ;;  %v4533_v53 = vld [vmem:[#allocation3 + $0xf8] sm:$0xff]  }
 0x39e   : > { %v4630_v54 = vpop.eup %4629 }
 0x39f   : > { %v1325_v57 = vadd.f32 1.0, %v4630_v54  ;;  %v1326_v58 = vmul.f32 %v1324_v35, %v1310_v55  ;;  %v4534_v35 = vld [vmem:[#allocation3 + $0x138] sm:$0xff]  }
 0x3a1   : > { %v1327_v59 = vmul.f32 %v1325_v57, %v1311_v56 }
 0x3a3   : > { %v1328_v60 = vpack.c.bf16 %v1327_v59, %v1326_v58 }
 0x3a5   : > { %v1330_v61 = vrot.slane %v1328_v60, 4 }
 0x3a7   : > { %1332 = vst [vmem:[#allocation2 + $0x8] ss:$-4 sps:$4 sm:$0xff] %v1330_v61  }
 0x3ae   : > { %v1334_v62 = vld [vmem:[#allocation2] sm:$0xf0]  ;;  %v1335_v63 = vld [vmem:[#allocation2 + $0x8] sm:$0xf] }
 0x3af   : > { %v1353_v0 = vld [vmem:[#allocation2] sm:$0xf8]  ;;  %v1480_v2 = vrot.slane %v1334_v62, 4  ;;  %v1481_v3 = vrot.slane %v1335_v63, 4  ;;  %v1380_v8 = vshrl.u32 %v1335_v63, 16  ;;  %v1383_v9 = vshll.u32 %v1335_v63, 16 }
 0x3b0   : > { %v1372_v4 = vshrl.u32 %v1353_v0, 16  ;;  %v1375_v7 = vshll.u32 %v1353_v0, 16  ;;  %v1354_v23 = vld [vmem:[#allocation2 + $0x8] sm:$0x1f]  ;;  %v1591_v25 = vshrl.u32 %v1334_v62, 16  ;;  %v1594_v26 = vshll.u32 %v1334_v62, 16 }
 0x3b1   : > { %v1482_v6 = vsel %vm1080_vm13, %v1480_v2, %v1481_v3  ;;  %v1382_v14 = vrot.slane %v1380_v8, 3  ;;  %v1385_v15 = vrot.slane %v1383_v9, 4  ;;  %v1599_v27 = vshrl.u32 %v1354_v23, 16  ;;  %v3569_v2 = vld [vmem:[%s5551_s8] ss:$0 sm:$0xff] }
 0x3b2   : > { %v1374_v12 = vrot.slane %v1372_v4, 3  ;;  %v1377_v13 = vrot.slane %v1375_v7, 4  ;;  %4010 = vmatmul.mubr.bf16.vlgmr.msra.gmra.mrb[4].mxu1 %v1482_v6  ;;  %v1602_v28 = vshll.u32 %v1354_v23, 16  ;;  %v1593_v30 = vrot.slane %v1591_v25, 4 }
 0x3b3   : > { %4049 = vmatprep.mubr.msk.bf16.mxu1 %vm4822_vm10, %v4810_v5  ;;  %v1386_v1 = vor.u32 %v1385_v15, %v1382_v14  ;;  %v1596_v31 = vrot.slane %v1594_v26, 5  ;;  %v1601_v32 = vrot.slane %v1599_v27, 4  ;;  %4034 = vmatpush3.bf16.msra.mxu1 %v4519_v39 }
 0x3b4   : > { %v1378_v16 = vor.u32 %v1377_v13, %v1374_v12  ;;  %v1604_v33 = vrot.slane %v1602_v28, 5  ;;  %4035 = vmatprep.subr.bf16.mxu1 %v4810_v5 }
 0x3b5   : > { %v1597_v36 = vor.u32 %v1596_v31, %v1593_v30 }
 0x3b6   : > { %v1387_v18 = vsel %vm970_vm11, %v1378_v16, %v1386_v1  ;;  %v1605_v37 = vor.u32 %v1604_v33, %v1601_v32 }
 0x3b7   : > { %3990 = vmatmul.mubr.bf16.vlgmr.msra.gmra.mrb[12].mxu0 %v1387_v18  ;;  %4036 = vmatpush3.bf16.msra.mxu1 %v4521_v41 }
 0x3b8   : > { %4014 = vmatpush3.bf16.msra.mxu0 %v4511_v17  ;;  %4029 = vmatprep.mubr.msk.bf16.mxu0 %vm4822_vm10, %v4810_v5  ;;  %v1606_v38 = vsel %vm1191_vm12, %v1597_v36, %v1605_v37 }
 0x3b9   : > { %4015 = vmatprep.subr.bf16.mxu0 %v4810_v5  ;;  %4037 = vmatprep.subr.bf16.mxu1 %v4810_v5 }
 0x3bb   : > { %4038 = vmatpush3.bf16.msra.mxu1 %v4523_v43 }
 0x3bc   : > { %4016 = vmatpush3.bf16.msra.mxu0 %v4512_v19  ;;  %4039 = vmatprep.subr.bf16.mxu1 %v4810_v5 }
 0x3bd   : > { %4017 = vmatprep.subr.bf16.mxu0 %v4810_v5 }
 0x3bf   : > { %4040 = vmatpush3.bf16.msra.mxu1 %v4525_v45  ;;  %v4537_v45 = vld [vmem:[#allocation3 + $0x150] sm:$0xff]  }
 0x3c0   : > { %4018 = vmatpush3.bf16.msra.mxu0 %v4513_v20  ;;  %4041 = vmatprep.subr.bf16.mxu1 %v4810_v5 }
 0x3c1   : > { %4019 = vmatprep.subr.bf16.mxu0 %v4810_v5 }
 0x3c3   : > { %4042 = vmatpush3.bf16.msra.mxu1 %v4527_v47  ;;  %v4539_v47 = vld [vmem:[#allocation3 + $0x160] sm:$0xff]  }
 0x3c4   : > { %4020 = vmatpush3.bf16.msra.mxu0 %v4514_v21  ;;  %4043 = vmatprep.subr.bf16.mxu1 %v4810_v5 }
 0x3c5   : > { %4021 = vmatprep.subr.bf16.mxu0 %v4810_v5 }
 0x3c7   : > { %4044 = vmatpush3.bf16.msra.mxu1 %v4529_v49  ;;  %v4541_v49 = vld [vmem:[#allocation3 + $0x170] sm:$0xff]  }
 0x3c8   : > { %4022 = vmatpush3.bf16.msra.mxu0 %v4515_v22  ;;  %4045 = vmatprep.subr.bf16.mxu1 %v4810_v5 }
 0x3c9   : > { %4023 = vmatprep.subr.bf16.mxu0 %v4810_v5 }
 0x3cb   : > { %4046 = vmatpush3.bf16.msra.mxu1 %v4531_v51 }
 0x3cc   : > { %4024 = vmatpush3.bf16.msra.mxu0 %v4516_v24  ;;  %4047 = vmatprep.subr.bf16.mxu1 %v4810_v5 }
 0x3cd   : > { %4025 = vmatprep.subr.bf16.mxu0 %v4810_v5 }
 0x3cf   : > { %4048 = vmatpush3.bf16.msra.mxu1 %v4533_v53 }
 0x3d0   : > { %4026 = vmatpush3.bf16.msra.mxu0 %v4517_v29  ;;  %4073 = vmatprep.subr.bf16.mxu1 %v4810_v5 }
 0x3d1   : > { %4027 = vmatprep.subr.bf16.mxu0 %v4810_v5 }
 0x3d4   : > { %4028 = vmatpush3.bf16.msra.mxu0 %v4518_v34 }
 0x3d5   : > { %4053 = vmatprep.subr.bf16.mxu0 %v4810_v5 }
 0x3d7   : > { %4030 = vmatmul.mubr.bf16.vlgmr.msra.gmra.mrb[16].mxu0 %v1606_v38 }
 0x3d8   : > { %4069 = vmatprep.mubr.msk.bf16.mxu0 %vm4822_vm10, %v4810_v5  ;;  %4054 = vmatpush3.bf16.msra.mxu0 %v4520_v40  ;;  %v4535_v40 = vld [vmem:[#allocation3 + $0x140] sm:$0xff]  }
 0x3d9   : > { %4055 = vmatprep.subr.bf16.mxu0 %v4810_v5 }
 0x3dc   : > { %4056 = vmatpush3.bf16.msra.mxu0 %v4522_v42 }
 0x3dd   : > { %4057 = vmatprep.subr.bf16.mxu0 %v4810_v5 }
 0x3e0   : > { %4058 = vmatpush3.bf16.msra.mxu0 %v4524_v44  ;;  %v4536_v44 = vld [vmem:[#allocation3 + $0x148] sm:$0xff]  }
 0x3e1   : > { %4059 = vmatprep.subr.bf16.mxu0 %v4810_v5 }
 0x3e4   : > { %4060 = vmatpush3.bf16.msra.mxu0 %v4526_v46  ;;  %v4538_v46 = vld [vmem:[#allocation3 + $0x158] sm:$0xff]  }
 0x3e5   : > { %4061 = vmatprep.subr.bf16.mxu0 %v4810_v5 }
 0x3e8   : > { %4062 = vmatpush3.bf16.msra.mxu0 %v4528_v48  ;;  %v4540_v48 = vld [vmem:[#allocation3 + $0x168] sm:$0xff]  }
 0x3e9   : > { %4063 = vmatprep.subr.bf16.mxu0 %v4810_v5 }
 0x3ec   : > { %4064 = vmatpush3.bf16.msra.mxu0 %v4530_v50 }
 0x3ed   : > { %4065 = vmatprep.subr.bf16.mxu0 %v4810_v5 }
 0x3f0   : > { %4066 = vmatpush3.bf16.msra.mxu0 %v4532_v52  ;;  %v4542_v52 = vld [vmem:[#allocation3 + $0x178] sm:$0xff]  }
 0x3f1   : > { %4067 = vmatprep.subr.bf16.mxu0 %v4810_v5 }
 0x3f4   : > { %4068 = vmatpush3.bf16.msra.mxu0 %v4534_v35 }
 0x3f5   : > { %4093 = vmatprep.subr.bf16.mxu0 %v4810_v5 }
 0x485   : > { %v1566_v54 = vpop.f32.mrb[4].mxu1 }
 0x486   : > { %v4011_v55 = vpop.f32.mrb[5].mxu1 }
 0x487   : > { %v1569_v56 = vpop.f32.mrb[6].mxu1  ;;  %v4543_v55 = vld [vmem:[#allocation6 + $0xc0] sm:$0xff]  }
 0x488   : > { %v4012_v57 = vpop.f32.mrb[7].mxu1 }
 0x489   : > { %v4545_v57 = vld [vmem:[#allocation6 + $0xc8] sm:$0xff]  }
 0x48a   : > { %v1471_v58 = vpop.f32.mrb[12].mxu0 }
 0x48b   : > { %v1567_v59 = vadd.f32 %v1566_v54, %v1471_v58  ;;  %v3991_v60 = vpop.f32.mrb[13].mxu0  ;;  %v4546_v58 = vld [vmem:[#allocation6 + $0x108] sm:$0xff]  }
 0x48c   : > { %v1474_v61 = vpop.f32.mrb[14].mxu0  ;;  %v4548_v60 = vld [vmem:[#allocation6 + $0x110] sm:$0xff]  }
 0x48d   : > { %v1570_v62 = vadd.f32 %v1569_v56, %v1474_v61  ;;  %v3992_v63 = vpop.f32.mrb[15].mxu0  ;;  %v4544_v56 = vld [vmem:[#allocation6 + $0x100] sm:$0xff]   ;;  %v4549_v61 = vld [vmem:[#allocation6 + $0xd8] sm:$0xff]  }
 0x48e   : > { %v4551_v63 = vld [vmem:[#allocation6 + $0xe0] sm:$0xff]  }
 0x4aa   : > { %v1690_v0 = vpop.f32.mrb[16].mxu0 }
 0x4ab   : > { %v1697_v3 = vadd.f32 %v1690_v0, %v1567_v59  ;;  %v4031_v4 = vpop.f32.mrb[17].mxu0  ;;  %v4547_v59 = vld [vmem:[#allocation6 + $0xd0] sm:$0xff]   ;;  %v4552_v0 = vld [vmem:[#allocation6 + $0x120] sm:$0xff]  }
 0x4ac   : > { %v1693_v7 = vpop.f32.mrb[18].mxu0  ;;  %v4555_v4 = vld [vmem:[#allocation6 + $0xf0] sm:$0xff]  }
 0x4ad   : > { %v1706_v8 = vadd.f32 %v3569_v2, %v1697_v3  ;;  %v1698_v9 = vadd.f32 %v1693_v7, %v1570_v62  ;;  %v4032_v6 = vpop.f32.mrb[19].mxu0  ;;  %v4550_v62 = vld [vmem:[#allocation6 + $0x118] sm:$0xff]   ;;  %v4554_v3 = vld [vmem:[#allocation6 + $0x128] sm:$0xff]   ;;  %v4556_v7 = vld [vmem:[#allocation6 + $0x130] sm:$0xff]  }
 0x4af   : > { %v5341_v12 = vadd.f32 %v1706_v8, %v5256_v11  ;;  %v1707_v13 = vadd.f32 %v3569_v2, %v1698_v9  ;;  %v4553_v2 = vld [vmem:[#allocation6 + $0xe8] sm:$0xff]   ;;  %v4557_v8 = vld [vmem:[#allocation6 + $0xf8] sm:$0xff]  }
 0x4b0   : > { %v4558_v9 = vld [vmem:[#allocation6 + $0x138] sm:$0xff]  }
 0x4b1   : > { %v1712_v14 = vmul.f32 0.044715, %v5341_v12  ;;  %v5345_v15 = vadd.f32 %v1707_v13, %v5254_v10  ;;  %v1710_v25 = vmul.f32 0.5, %v5341_v12 }
 0x4b3   : > { %v1714_v16 = vmul.f32 %v1712_v14, %v5341_v12  ;;  %v1713_v1 = vmul.f32 0.044715, %v5345_v15  ;;  %v1711_v26 = vmul.f32 0.5, %v5345_v15 }
 0x4b5   : > { %v1716_v17 = vmul.f32 %v1714_v16, %v5341_v12  ;;  %v1715_v18 = vmul.f32 %v1713_v1, %v5345_v15 }
 0x4b7   : > { %v1718_v19 = vadd.f32 %v1716_v17, %v5341_v12  ;;  %v1717_v20 = vmul.f32 %v1715_v18, %v5345_v15 }
 0x4b9   : > { %v1720_v11 = vmul.f32 0.7978846, %v1718_v19  ;;  %v1719_v21 = vadd.f32 %v1717_v20, %v5345_v15 }
 0x4bb   : > { %4631 = vtanh.f32 %v1720_v11  ;;  %v1721_v22 = vmul.f32 0.7978846, %v1719_v21 }
 0x4bd   : > { %4633 = vtanh.f32 %v1721_v22  ;;  %v3595_v22 = vld [vmem:[%s5549_s6 + $0x1] ss:$0 sm:$0xff] }
 0x4c5   : > { %v4632_v10 = vpop.eup %4631 }
 0x4c6   : > { %v1724_v23 = vadd.f32 1.0, %v4632_v10 }
 0x4c7   : > { %v4634_v24 = vpop.eup %4633 }
 0x4c8   : > { %v1725_v27 = vadd.f32 1.0, %v4634_v24  ;;  %v1726_v28 = vmul.f32 %v1724_v23, %v1710_v25 }
 0x4ca   : > { %v1727_v29 = vmul.f32 %v1725_v27, %v1711_v26 }
 0x4cc   : > { %v1728_v30 = vpack.c.bf16 %v1727_v29, %v1726_v28 }
 0x4ce   : > { %v1730_v31 = vrot.slane %v1728_v30, 4 }
 0x4d0   : > { %1732 = vst [vmem:[#allocation2 + $0x8] ss:$-4 sps:$4 sm:$0xff] %v1730_v31  }
 0x4d7   : > { %v1753_v32 = vld [vmem:[#allocation2] sm:$0xf8]  ;;  %v1754_v33 = vld [vmem:[#allocation2 + $0x8] sm:$0x7] }
 0x4d8   : > { %v1734_v34 = vld [vmem:[#allocation2] sm:$0xf0]  ;;  %v1777_v36 = vrot.slane %v1753_v32, 3  ;;  %v1778_v37 = vrot.slane %v1754_v33, 3  ;;  %v1735_v38 = vld [vmem:[#allocation2 + $0x8] sm:$0xf] }
 0x4d9   : > { %v1872_v39 = vrot.slane %v1734_v34, 4  ;;  %v1873_v41 = vrot.slane %v1735_v38, 4  ;;  %v1755_v50 = vld [vmem:[#allocation2] sm:$0xe0]  ;;  %v1756_v51 = vld [vmem:[#allocation2 + $0x8] sm:$0x1f] }
 0x4da   : > { %v1779_v42 = vsel %vm1776_vm14, %v1777_v36, %v1778_v37  ;;  %v1985_v53 = vrot.slane %v1755_v50, 5  ;;  %v1986_v35 = vrot.slane %v1756_v51, 5 }
 0x4db   : > { %4050 = vmatmul.mubr.bf16.vlgmr.msra.gmra.mrb[8].mxu1 %v1779_v42  ;;  %v1874_v43 = vsel %vm1080_vm13, %v1872_v39, %v1873_v41 }
 0x4dc   : > { %4070 = vmatmul.mubr.bf16.vlgmr.msra.gmra.mrb[20].mxu0 %v1874_v43  ;;  %4074 = vmatpush3.bf16.msra.mxu1 %v4535_v40  ;;  %v1987_v54 = vsel %vm1984_vm15, %v1985_v53, %v1986_v35 }
 0x4dd   : > { %4075 = vmatprep.subr.bf16.mxu1 %v4810_v5  ;;  %4089 = vmatprep.mubr.msk.bf16.mxu1 %vm4822_vm10, %v4810_v5 }
 0x4de   : > { %4109 = vmatprep.mubr.msk.bf16.mxu0 %vm4822_vm10, %v4810_v5  ;;  %4094 = vmatpush3.bf16.msra.mxu0 %v4543_v55 }
 0x4df   : > { %4095 = vmatprep.subr.bf16.mxu0 %v4810_v5 }
 0x4e0   : > { %4076 = vmatpush3.bf16.msra.mxu1 %v4536_v44 }
 0x4e1   : > { %4077 = vmatprep.subr.bf16.mxu1 %v4810_v5 }
 0x4e2   : > { %4096 = vmatpush3.bf16.msra.mxu0 %v4545_v57 }
 0x4e3   : > { %4097 = vmatprep.subr.bf16.mxu0 %v4810_v5 }
 0x4e4   : > { %4078 = vmatpush3.bf16.msra.mxu1 %v4537_v45 }
 0x4e5   : > { %4079 = vmatprep.subr.bf16.mxu1 %v4810_v5 }
 0x4e6   : > { %4098 = vmatpush3.bf16.msra.mxu0 %v4547_v59 }
 0x4e7   : > { %4099 = vmatprep.subr.bf16.mxu0 %v4810_v5 }
 0x4e8   : > { %4080 = vmatpush3.bf16.msra.mxu1 %v4538_v46 }
 0x4e9   : > { %4081 = vmatprep.subr.bf16.mxu1 %v4810_v5 }
 0x4ea   : > { %4100 = vmatpush3.bf16.msra.mxu0 %v4549_v61  ;;  %v4561_v61 = vld [vmem:[#allocation6 + $0x150] sm:$0xff]  }
 0x4eb   : > { %4101 = vmatprep.subr.bf16.mxu0 %v4810_v5 }
 0x4ec   : > { %4082 = vmatpush3.bf16.msra.mxu1 %v4539_v47 }
 0x4ed   : > { %4083 = vmatprep.subr.bf16.mxu1 %v4810_v5 }
 0x4ee   : > { %4102 = vmatpush3.bf16.msra.mxu0 %v4551_v63  ;;  %v4563_v63 = vld [vmem:[#allocation6 + $0x160] sm:$0xff]  }
 0x4ef   : > { %4103 = vmatprep.subr.bf16.mxu0 %v4810_v5 }
 0x4f0   : > { %4084 = vmatpush3.bf16.msra.mxu1 %v4540_v48 }
 0x4f1   : > { %4085 = vmatprep.subr.bf16.mxu1 %v4810_v5 }
 0x4f2   : > { %4104 = vmatpush3.bf16.msra.mxu0 %v4553_v2  ;;  %v4565_v2 = vld [vmem:[#allocation6 + $0x170] sm:$0xff]  }
 0x4f3   : > { %4105 = vmatprep.subr.bf16.mxu0 %v4810_v5 }
 0x4f4   : > { %4086 = vmatpush3.bf16.msra.mxu1 %v4541_v49 }
 0x4f5   : > { %4087 = vmatprep.subr.bf16.mxu1 %v4810_v5 }
 0x4f6   : > { %4106 = vmatpush3.bf16.msra.mxu0 %v4555_v4 }
 0x4f7   : > { %4107 = vmatprep.subr.bf16.mxu0 %v4810_v5 }
 0x4f8   : > { %4088 = vmatpush3.bf16.msra.mxu1 %v4542_v52 }
 0x4f9   : > { %4113 = vmatprep.subr.bf16.mxu1 %v4810_v5 }
 0x4fa   : > { %4108 = vmatpush3.bf16.msra.mxu0 %v4557_v8 }
 0x4fb   : > { %4090 = vmatmul.mubr.bf16.vlgmr.msra.gmra.mrb[12].mxu1 %v1987_v54  ;;  %4133 = vmatprep.subr.bf16.mxu0 %v4810_v5 }
 0x4fc   : > { %4129 = vmatprep.mubr.msk.bf16.mxu1 %vm4822_vm10, %v4810_v5  ;;  %4114 = vmatpush3.bf16.msra.mxu1 %v4544_v56  ;;  %v4559_v56 = vld [vmem:[#allocation6 + $0x140] sm:$0xff]  }
 0x4fd   : > { %4115 = vmatprep.subr.bf16.mxu1 %v4810_v5 }
 0x500   : > { %4116 = vmatpush3.bf16.msra.mxu1 %v4546_v58 }
 0x501   : > { %4117 = vmatprep.subr.bf16.mxu1 %v4810_v5 }
 0x504   : > { %4118 = vmatpush3.bf16.msra.mxu1 %v4548_v60  ;;  %v4560_v60 = vld [vmem:[#allocation6 + $0x148] sm:$0xff]  }
 0x505   : > { %4119 = vmatprep.subr.bf16.mxu1 %v4810_v5 }
 0x508   : > { %4120 = vmatpush3.bf16.msra.mxu1 %v4550_v62  ;;  %v4562_v62 = vld [vmem:[#allocation6 + $0x158] sm:$0xff]  }
 0x509   : > { %4121 = vmatprep.subr.bf16.mxu1 %v4810_v5 }
 0x50c   : > { %4122 = vmatpush3.bf16.msra.mxu1 %v4552_v0  ;;  %v4564_v0 = vld [vmem:[#allocation6 + $0x168] sm:$0xff]  }
 0x50d   : > { %4123 = vmatprep.subr.bf16.mxu1 %v4810_v5 }
 0x510   : > { %4124 = vmatpush3.bf16.msra.mxu1 %v4554_v3 }
 0x511   : > { %4125 = vmatprep.subr.bf16.mxu1 %v4810_v5 }
 0x514   : > { %4126 = vmatpush3.bf16.msra.mxu1 %v4556_v7  ;;  %v4566_v7 = vld [vmem:[#allocation6 + $0x178] sm:$0xff]  }
 0x515   : > { %4127 = vmatprep.subr.bf16.mxu1 %v4810_v5 }
 0x518   : > { %4128 = vmatpush3.bf16.msra.mxu1 %v4558_v9 }
 0x519   : > { %4153 = vmatprep.subr.bf16.mxu1 %v4810_v5 }
 0x5ae   : > { %v1863_v6 = vpop.f32.mrb[8].mxu1 }
 0x5af   : > { %v1958_v13 = vpop.f32.mrb[20].mxu0  ;;  %v4051_v14 = vpop.f32.mrb[9].mxu1 }
 0x5b0   : > { %v1959_v16 = vadd.f32 %v1958_v13, %v1863_v6  ;;  %v4071_v1 = vpop.f32.mrb[21].mxu0  ;;  %v1866_v17 = vpop.f32.mrb[10].mxu1  ;;  %v4567_v13 = vld [vmem:[#allocation8] sm:$0xff]   ;;  %v4568_v14 = vld [vmem:[#allocation8 + $0x8] sm:$0xff]  }
 0x5b1   : > { %v1961_v18 = vpop.f32.mrb[22].mxu0  ;;  %v4052_v19 = vpop.f32.mrb[11].mxu1  ;;  %v4570_v1 = vld [vmem:[#allocation8 + $0x18] sm:$0xff]  }
 0x5b2   : > { %v1962_v20 = vadd.f32 %v1961_v18, %v1866_v17  ;;  %v4072_v11 = vpop.f32.mrb[23].mxu0  ;;  %v4571_v17 = vld [vmem:[#allocation8 + $0x20] sm:$0xff]   ;;  %v4572_v18 = vld [vmem:[#allocation8 + $0x28] sm:$0xff]   ;;  %v4573_v19 = vld [vmem:[#allocation8 + $0x30] sm:$0xff]  }
 0x5b3   : > { %v4575_v11 = vld [vmem:[#allocation3 + $0x180] sm:$0xff]  }
 0x5ce   : > { %v2071_v21 = vpop.f32.mrb[12].mxu1 }
 0x5cf   : > { %v2078_v10 = vadd.f32 %v2071_v21, %v1959_v16  ;;  %v4091_v23 = vpop.f32.mrb[13].mxu1  ;;  %v4569_v16 = vld [vmem:[#allocation8 + $0x10] sm:$0xff]   ;;  %v4577_v21 = vld [vmem:[#allocation3 + $0x188] sm:$0xff]  }
 0x5d0   : > { %v2074_v24 = vpop.f32.mrb[14].mxu1  ;;  %v4583_v23 = vld [vmem:[#allocation3 + $0x1a0] sm:$0xff]  }
 0x5d1   : > { %v2088_v25 = vadd.f32 %v3595_v22, %v2078_v10  ;;  %v2079_v26 = vadd.f32 %v2074_v24, %v1962_v20  ;;  %v4092_v27 = vpop.f32.mrb[15].mxu1  ;;  %v4574_v20 = vld [vmem:[#allocation8 + $0x38] sm:$0xff]   ;;  %v4585_v24 = vld [vmem:[#allocation3 + $0x1a8] sm:$0xff]  }
 0x5d2   : > { %v4581_v10 = vld [vmem:[#allocation3 + $0x198] sm:$0xff]  }
 0x5d3   : > { %v2092_v28 = vmul.f32 0.044715, %v2088_v25  ;;  %v2089_v29 = vadd.f32 %v3595_v22, %v2079_v26  ;;  %v2090_v43 = vmul.f32 0.5, %v2088_v25  ;;  %v4579_v22 = vld [vmem:[#allocation3 + $0x190] sm:$0xff]   ;;  %v4589_v26 = vld [vmem:[#allocation3 + $0x1b8] sm:$0xff]  }
 0x5d5   : > { %v2094_v30 = vmul.f32 %v2092_v28, %v2088_v25  ;;  %v2093_v31 = vmul.f32 0.044715, %v2089_v29  ;;  %v2091_v44 = vmul.f32 0.5, %v2089_v29 }
 0x5d7   : > { %v2096_v32 = vmul.f32 %v2094_v30, %v2088_v25  ;;  %v2095_v33 = vmul.f32 %v2093_v31, %v2089_v29 }
 0x5d9   : > { %v2098_v34 = vadd.f32 %v2096_v32, %v2088_v25  ;;  %v2097_v36 = vmul.f32 %v2095_v33, %v2089_v29  ;;  %v4587_v25 = vld [vmem:[#allocation3 + $0x1b0] sm:$0xff]  }
 0x5db   : > { %v2100_v37 = vmul.f32 0.7978846, %v2098_v34  ;;  %v2099_v38 = vadd.f32 %v2097_v36, %v2089_v29 }
 0x5dd   : > { %4635 = vtanh.f32 %v2100_v37  ;;  %v2101_v39 = vmul.f32 0.7978846, %v2099_v38 }
 0x5df   : > { %4637 = vtanh.f32 %v2101_v39  ;;  %v3621_v39 = vld [vmem:[%s5551_s8 + $0x1] ss:$0 sm:$0xff] }
 0x5e7   : > { %v4636_v40 = vpop.eup %4635 }
 0x5e8   : > { %v2104_v41 = vadd.f32 1.0, %v4636_v40 }
 0x5e9   : > { %v4638_v42 = vpop.eup %4637 }
 0x5ea   : > { %v2105_v45 = vadd.f32 1.0, %v4638_v42  ;;  %v2106_v46 = vmul.f32 %v2104_v41, %v2090_v43 }
 0x5ec   : > { %v2107_v47 = vmul.f32 %v2105_v45, %v2091_v44 }
 0x5ee   : > { %v2108_v48 = vpack.c.bf16 %v2107_v47, %v2106_v46 }
 0x5f0   : > { %v2110_v49 = vrot.slane %v2108_v48, 4 }
 0x5f2   : > { %2112 = vst [vmem:[#allocation2 + $0x8] ss:$-4 sps:$4 sm:$0xff] %v2110_v49  }
 0x5f9   : > { %v2133_v50 = vld [vmem:[#allocation2] sm:$0xf8]  ;;  %v2134_v51 = vld [vmem:[#allocation2 + $0x8] sm:$0x7] }
 0x5fa   : > { %v2114_v52 = vld [vmem:[#allocation2] sm:$0xf0]  ;;  %v2156_v53 = vrot.slane %v2133_v50, 3  ;;  %v2157_v35 = vrot.slane %v2134_v51, 3  ;;  %v2115_v54 = vld [vmem:[#allocation2 + $0x8] sm:$0xf] }
 0x5fb   : > { %v2251_v55 = vrot.slane %v2114_v52, 4  ;;  %v2252_v57 = vrot.slane %v2115_v54, 4  ;;  %v2135_v3 = vld [vmem:[#allocation2] sm:$0xe0]  ;;  %v2136_v4 = vld [vmem:[#allocation2 + $0x8] sm:$0x1f] }
 0x5fc   : > { %v2158_v58 = vsel %vm1776_vm14, %v2156_v53, %v2157_v35  ;;  %v2363_v8 = vrot.slane %v2135_v3, 5  ;;  %v2364_v9 = vrot.slane %v2136_v4, 5  ;;  %v4576_v50 = vld [vmem:[#allocation3 + $0x1c0] sm:$0xff]  }
 0x5fd   : > { %4110 = vmatmul.mubr.bf16.vlgmr.msra.gmra.mrb[24].mxu0 %v2158_v58  ;;  %v2253_v59 = vsel %vm1080_vm13, %v2251_v55, %v2252_v57  ;;  %v4578_v55 = vld [vmem:[#allocation3 + $0x1c8] sm:$0xff]  }
 0x5fe   : > { %4130 = vmatmul.mubr.bf16.vlgmr.msra.gmra.mrb[16].mxu1 %v2253_v59  ;;  %4134 = vmatpush3.bf16.msra.mxu0 %v4559_v56  ;;  %v2365_v6 = vsel %vm1984_vm15, %v2363_v8, %v2364_v9 }
 0x5ff   : > { %4135 = vmatprep.subr.bf16.mxu0 %v4810_v5  ;;  %4149 = vmatprep.mubr.msk.bf16.mxu0 %vm4822_vm10, %v4810_v5 }
 0x600   : > { %4169 = vmatprep.mubr.msk.bf16.mxu1 %vm4822_vm10, %v4810_v5  ;;  %4154 = vmatpush3.bf16.msra.mxu1 %v4567_v13 }
 0x601   : > { %4155 = vmatprep.subr.bf16.mxu1 %v4810_v5 }
 0x602   : > { %4136 = vmatpush3.bf16.msra.mxu0 %v4560_v60  ;;  %v4582_v60 = vld [vmem:[#allocation3 + $0x1d8] sm:$0xff]  }
 0x603   : > { %4137 = vmatprep.subr.bf16.mxu0 %v4810_v5 }
 0x604   : > { %4156 = vmatpush3.bf16.msra.mxu1 %v4568_v14 }
 0x605   : > { %4157 = vmatprep.subr.bf16.mxu1 %v4810_v5 }
 0x606   : > { %4138 = vmatpush3.bf16.msra.mxu0 %v4561_v61  ;;  %v4584_v61 = vld [vmem:[#allocation3 + $0x1e0] sm:$0xff]  }
 0x607   : > { %4139 = vmatprep.subr.bf16.mxu0 %v4810_v5 }
 0x608   : > { %4158 = vmatpush3.bf16.msra.mxu1 %v4569_v16  ;;  %v4590_v16 = vld [vmem:[#allocation3 + $0x1f8] sm:$0xff]  }
 0x609   : > { %4159 = vmatprep.subr.bf16.mxu1 %v4810_v5 }
 0x60a   : > { %4140 = vmatpush3.bf16.msra.mxu0 %v4562_v62 }
 0x60b   : > { %4141 = vmatprep.subr.bf16.mxu0 %v4810_v5 }
 0x60c   : > { %4160 = vmatpush3.bf16.msra.mxu1 %v4570_v1 }
 0x60d   : > { %4161 = vmatprep.subr.bf16.mxu1 %v4810_v5 }
 0x60e   : > { %4142 = vmatpush3.bf16.msra.mxu0 %v4563_v63 }
 0x60f   : > { %4143 = vmatprep.subr.bf16.mxu0 %v4810_v5 }
 0x610   : > { %4162 = vmatpush3.bf16.msra.mxu1 %v4571_v17 }
 0x611   : > { %4163 = vmatprep.subr.bf16.mxu1 %v4810_v5 }
 0x612   : > { %4144 = vmatpush3.bf16.msra.mxu0 %v4564_v0  ;;  %v4586_v0 = vld [vmem:[#allocation3 + $0x1e8] sm:$0xff]  }
 0x613   : > { %4145 = vmatprep.subr.bf16.mxu0 %v4810_v5 }
 0x614   : > { %4164 = vmatpush3.bf16.msra.mxu1 %v4572_v18 }
 0x615   : > { %4165 = vmatprep.subr.bf16.mxu1 %v4810_v5 }
 0x616   : > { %4146 = vmatpush3.bf16.msra.mxu0 %v4565_v2 }
 0x617   : > { %4147 = vmatprep.subr.bf16.mxu0 %v4810_v5 }
 0x618   : > { %4166 = vmatpush3.bf16.msra.mxu1 %v4573_v19 }
 0x619   : > { %4167 = vmatprep.subr.bf16.mxu1 %v4810_v5 }
 0x61a   : > { %4148 = vmatpush3.bf16.msra.mxu0 %v4566_v7 }
 0x61b   : > { %4173 = vmatprep.subr.bf16.mxu0 %v4810_v5 }
 0x61c   : > { %4168 = vmatpush3.bf16.msra.mxu1 %v4574_v20 }
 0x61d   : > { %4150 = vmatmul.mubr.bf16.vlgmr.msra.gmra.mrb[28].mxu0 %v2365_v6  ;;  %4193 = vmatprep.subr.bf16.mxu1 %v4810_v5  ;;  %v4588_v6 = vld [vmem:[#allocation3 + $0x1f0] sm:$0xff]  }
 0x61e   : > { %4189 = vmatprep.mubr.msk.bf16.mxu0 %vm4822_vm10, %v4810_v5  ;;  %4174 = vmatpush3.bf16.msra.mxu0 %v4575_v11 }
 0x61f   : > { %4175 = vmatprep.subr.bf16.mxu0 %v4810_v5 }
 0x622   : > { %4176 = vmatpush3.bf16.msra.mxu0 %v4577_v21 }
 0x623   : > { %4177 = vmatprep.subr.bf16.mxu0 %v4810_v5 }
 0x626   : > { %4178 = vmatpush3.bf16.msra.mxu0 %v4579_v22  ;;  %v4591_v22 = vld [vmem:[#allocation3 + $0x200] sm:$0xff]  }
 0x627   : > { %4179 = vmatprep.subr.bf16.mxu0 %v4810_v5 }
 0x62a   : > { %4180 = vmatpush3.bf16.msra.mxu0 %v4581_v10 }
 0x62b   : > { %4181 = vmatprep.subr.bf16.mxu0 %v4810_v5 }
 0x62e   : > { %4182 = vmatpush3.bf16.msra.mxu0 %v4583_v23 }
 0x62f   : > { %4183 = vmatprep.subr.bf16.mxu0 %v4810_v5 }
 0x632   : > { %4184 = vmatpush3.bf16.msra.mxu0 %v4585_v24 }
 0x633   : > { %4185 = vmatprep.subr.bf16.mxu0 %v4810_v5 }
 0x636   : > { %4186 = vmatpush3.bf16.msra.mxu0 %v4587_v25  ;;  %v4592_v25 = vld [vmem:[#allocation3 + $0x208] sm:$0xff]  }
 0x637   : > { %4187 = vmatprep.subr.bf16.mxu0 %v4810_v5 }
 0x63a   : > { %4188 = vmatpush3.bf16.msra.mxu0 %v4589_v26  ;;  %v4593_v26 = vld [vmem:[#allocation3 + $0x210] sm:$0xff]  }
 0x63b   : > { %4213 = vmatprep.subr.bf16.mxu0 %v4810_v5 }
 0x6d0   : > { %v2242_v27 = vpop.f32.mrb[24].mxu0 }
 0x6d1   : > { %v2337_v28 = vpop.f32.mrb[16].mxu1  ;;  %v4111_v29 = vpop.f32.mrb[25].mxu0 }
 0x6d2   : > { %v2338_v30 = vadd.f32 %v2337_v28, %v2242_v27  ;;  %v4131_v31 = vpop.f32.mrb[17].mxu1  ;;  %v2245_v32 = vpop.f32.mrb[26].mxu0  ;;  %v4594_v27 = vld [vmem:[#allocation3 + $0x218] sm:$0xff]   ;;  %v4595_v28 = vld [vmem:[#allocation3 + $0x220] sm:$0xff]   ;;  %v4596_v29 = vld [vmem:[#allocation3 + $0x228] sm:$0xff]  }
 0x6d3   : > { %v2340_v33 = vpop.f32.mrb[18].mxu1  ;;  %v4112_v34 = vpop.f32.mrb[27].mxu0 }
 0x6d4   : > { %v2341_v36 = vadd.f32 %v2340_v33, %v2245_v32  ;;  %v4132_v37 = vpop.f32.mrb[19].mxu1  ;;  %v4598_v33 = vld [vmem:[#allocation3 + $0x238] sm:$0xff]  }
 0x6f0   : > { %v2449_v38 = vpop.f32.mrb[28].mxu0 }
 0x6f1   : > { %v2456_v40 = vadd.f32 %v2449_v38, %v2338_v30  ;;  %v4151_v41 = vpop.f32.mrb[29].mxu0  ;;  %v4597_v30 = vld [vmem:[#allocation3 + $0x230] sm:$0xff]   ;;  %v4599_v38 = vld [vmem:[#allocation6 + $0x180] sm:$0xff]  }
 0x6f2   : > { %v2452_v42 = vpop.f32.mrb[30].mxu0  ;;  %v4602_v41 = vld [vmem:[#allocation6 + $0x198] sm:$0xff]  }
 0x6f3   : > { %v2466_v43 = vadd.f32 %v3621_v39, %v2456_v40  ;;  %v2457_v44 = vadd.f32 %v2452_v42, %v2341_v36  ;;  %v4152_v45 = vpop.f32.mrb[31].mxu0  ;;  %v4601_v40 = vld [vmem:[#allocation6 + $0x190] sm:$0xff]   ;;  %v4603_v42 = vld [vmem:[#allocation6 + $0x1a0] sm:$0xff]  }
 0x6f4   : > { %v4606_v45 = vld [vmem:[#allocation6 + $0x1b8] sm:$0xff]  }
 0x6f5   : > { %v2468_v46 = vadd.f32 %v2466_v43, %v5341_v12  ;;  %v2467_v47 = vadd.f32 %v3621_v39, %v2457_v44  ;;  %v4600_v39 = vld [vmem:[#allocation6 + $0x188] sm:$0xff]   ;;  %v4605_v44 = vld [vmem:[#allocation6 + $0x1b0] sm:$0xff]  }
 0x6f6   : > { %v4604_v43 = vld [vmem:[#allocation6 + $0x1a8] sm:$0xff]  }
 0x6f7   : > { %v2585_v48 = vmul.f32 0.044715, %v2468_v46  ;;  %v2469_v49 = vadd.f32 %v2467_v47, %v5345_v15  ;;  %v4580_v15 = vld [vmem:[#allocation3 + $0x1d0] sm:$0xff]   ;;  %v2583_v3 = vmul.f32 0.5, %v2468_v46 }
 0x6f9   : > { %v2587_v51 = vmul.f32 %v2585_v48, %v2468_v46  ;;  %v2586_v52 = vmul.f32 0.044715, %v2469_v49  ;;  %v2470_v53 = vpack.c.bf16 %v2469_v49, %v2468_v46  ;;  %v2584_v4 = vmul.f32 0.5, %v2469_v49 }
 0x6fb   : > { %v2589_v35 = vmul.f32 %v2587_v51, %v2468_v46  ;;  %v2588_v54 = vmul.f32 %v2586_v52, %v2469_v49  ;;  %4170 = vmatmul.mubr.bf16.vlgmr.msra.gmra.mrb[20].mxu1 %v2470_v53 }
 0x6fc   : > { %4194 = vmatpush3.bf16.msra.mxu1 %v4576_v50  ;;  %4209 = vmatprep.mubr.msk.bf16.mxu1 %vm4822_vm10, %v4810_v5 }
 0x6fd   : > { %v2591_v56 = vadd.f32 %v2589_v35, %v2468_v46  ;;  %v2590_v57 = vmul.f32 %v2588_v54, %v2469_v49  ;;  %4195 = vmatprep.subr.bf16.mxu1 %v4810_v5 }
 0x6ff   : > { %v2593_v12 = vmul.f32 0.7978846, %v2591_v56  ;;  %v2592_v58 = vadd.f32 %v2590_v57, %v2469_v49  ;;  %v3656_v56 = vld [vmem:[%s5549_s6 + $0x2] ss:$0 sm:$0xff] }
 0x700   : > { %4196 = vmatpush3.bf16.msra.mxu1 %v4578_v55 }
 0x701   : > { %4639 = vtanh.f32 %v2593_v12  ;;  %v2594_v59 = vmul.f32 0.7978846, %v2592_v58  ;;  %4197 = vmatprep.subr.bf16.mxu1 %v4810_v5 }
 0x703   : > { %4641 = vtanh.f32 %v2594_v59 }
 0x704   : > { %4198 = vmatpush3.bf16.msra.mxu1 %v4580_v15 }
 0x705   : > { %4199 = vmatprep.subr.bf16.mxu1 %v4810_v5 }
 0x708   : > { %4200 = vmatpush3.bf16.msra.mxu1 %v4582_v60 }
 0x709   : > { %4201 = vmatprep.subr.bf16.mxu1 %v4810_v5 }
 0x70b   : > { %v4640_v62 = vpop.eup %4639 }
 0x70c   : > { %v2597_v63 = vadd.f32 1.0, %v4640_v62  ;;  %4202 = vmatpush3.bf16.msra.mxu1 %v4584_v61 }
 0x70d   : > { %v4642_v2 = vpop.eup %4641  ;;  %4203 = vmatprep.subr.bf16.mxu1 %v4810_v5 }
 0x70e   : > { %v2598_v7 = vadd.f32 1.0, %v4642_v2  ;;  %v2599_v8 = vmul.f32 %v2597_v63, %v2583_v3 }
 0x710   : > { %v2600_v9 = vmul.f32 %v2598_v7, %v2584_v4  ;;  %4204 = vmatpush3.bf16.msra.mxu1 %v4586_v0 }
 0x711   : > { %4205 = vmatprep.subr.bf16.mxu1 %v4810_v5 }
 0x712   : > { %v2601_v13 = vpack.c.bf16 %v2600_v9, %v2599_v8 }
 0x714   : > { %v2603_v14 = vrot.slane %v2601_v13, 4  ;;  %4206 = vmatpush3.bf16.msra.mxu1 %v4588_v6 }
 0x715   : > { %4207 = vmatprep.subr.bf16.mxu1 %v4810_v5 }
 0x716   : > { %2605 = vst [vmem:[#allocation2 + $0x8] ss:$-4 sps:$4 sm:$0xff] %v2603_v14  }
 0x718   : > { %4208 = vmatpush3.bf16.msra.mxu1 %v4590_v16 }
 0x719   : > { %4233 = vmatprep.subr.bf16.mxu1 %v4810_v5 }
 0x71d   : > { %v2626_v1 = vld [vmem:[#allocation2] sm:$0xfc]  ;;  %v2627_v17 = vld [vmem:[#allocation2 + $0x8] sm:$0x3] }
 0x71e   : > { %v2607_v18 = vld [vmem:[#allocation2] sm:$0xf0]  ;;  %v2650_v19 = vrot.slane %v2626_v1, 2  ;;  %v2651_v20 = vrot.slane %v2627_v17, 2  ;;  %v2608_v11 = vld [vmem:[#allocation2 + $0x8] sm:$0xf] }
 0x71f   : > { %v2745_v21 = vrot.slane %v2607_v18, 4  ;;  %v2746_v10 = vrot.slane %v2608_v11, 4  ;;  %v2628_v31 = vld [vmem:[#allocation2] sm:$0xc0]  ;;  %v2629_v32 = vld [vmem:[#allocation2 + $0x8] sm:$0x3f] }
 0x720   : > { %v2652_v23 = vsel %vm2649_vm0, %v2650_v19, %v2651_v20  ;;  %v2858_v34 = vrot.slane %v2628_v31, 6  ;;  %v2859_v36 = vrot.slane %v2629_v32, 6  ;;  %v4612_v31 = vld [vmem:[#allocation6 + $0x1e8] sm:$0xff]   ;;  %v4613_v32 = vld [vmem:[#allocation6 + $0x1f0] sm:$0xff]  }
 0x721   : > { %4190 = vmatmul.mubr.bf16.vlgmr.msra.gmra.mrb[32].mxu0 %v2652_v23  ;;  %v2747_v24 = vsel %vm1080_vm13, %v2745_v21, %v2746_v10 }
 0x722   : > { %4210 = vmatmul.mubr.bf16.vlgmr.msra.gmra.mrb[24].mxu1 %v2747_v24  ;;  %4214 = vmatpush3.bf16.msra.mxu0 %v4591_v22  ;;  %v2860_v37 = vsel %vm2857_vm1, %v2858_v34, %v2859_v36  ;;  %v4614_v36 = vld [vmem:[#allocation6 + $0x1f8] sm:$0xff]  }
 0x723   : > { %4215 = vmatprep.subr.bf16.mxu0 %v4810_v5  ;;  %4229 = vmatprep.mubr.msk.bf16.mxu0 %vm4822_vm10, %v4810_v5 }
 0x724   : > { %4249 = vmatprep.mubr.msk.bf16.mxu1 %vm4822_vm10, %v4810_v5  ;;  %4234 = vmatpush3.bf16.msra.mxu1 %v4599_v38 }
 0x725   : > { %4235 = vmatprep.subr.bf16.mxu1 %v4810_v5 }
 0x726   : > { %4216 = vmatpush3.bf16.msra.mxu0 %v4592_v25  ;;  %v4607_v25 = vld [vmem:[#allocation6 + $0x1c0] sm:$0xff]  }
 0x727   : > { %4217 = vmatprep.subr.bf16.mxu0 %v4810_v5 }
 0x728   : > { %4236 = vmatpush3.bf16.msra.mxu1 %v4600_v39  ;;  %v4615_v39 = vld [vmem:[#allocation6 + $0x200] sm:$0xff]  }
 0x729   : > { %4237 = vmatprep.subr.bf16.mxu1 %v4810_v5 }
 0x72a   : > { %4218 = vmatpush3.bf16.msra.mxu0 %v4593_v26 }
 0x72b   : > { %4219 = vmatprep.subr.bf16.mxu0 %v4810_v5 }
 0x72c   : > { %4238 = vmatpush3.bf16.msra.mxu1 %v4601_v40 }
 0x72d   : > { %4239 = vmatprep.subr.bf16.mxu1 %v4810_v5 }
 0x72e   : > { %4220 = vmatpush3.bf16.msra.mxu0 %v4594_v27  ;;  %v4608_v27 = vld [vmem:[#allocation6 + $0x1c8] sm:$0xff]  }
 0x72f   : > { %4221 = vmatprep.subr.bf16.mxu0 %v4810_v5 }
 0x730   : > { %4240 = vmatpush3.bf16.msra.mxu1 %v4602_v41  ;;  %v4616_v41 = vld [vmem:[#allocation6 + $0x208] sm:$0xff]  }
 0x731   : > { %4241 = vmatprep.subr.bf16.mxu1 %v4810_v5 }
 0x732   : > { %4222 = vmatpush3.bf16.msra.mxu0 %v4595_v28  ;;  %v4609_v28 = vld [vmem:[#allocation6 + $0x1d0] sm:$0xff]  }
 0x733   : > { %4223 = vmatprep.subr.bf16.mxu0 %v4810_v5 }
 0x734   : > { %4242 = vmatpush3.bf16.msra.mxu1 %v4603_v42  ;;  %v4617_v42 = vld [vmem:[#allocation6 + $0x210] sm:$0xff]  }
 0x735   : > { %4243 = vmatprep.subr.bf16.mxu1 %v4810_v5 }
 0x736   : > { %4224 = vmatpush3.bf16.msra.mxu0 %v4596_v29  ;;  %v4610_v29 = vld [vmem:[#allocation6 + $0x1d8] sm:$0xff]  }
 0x737   : > { %4225 = vmatprep.subr.bf16.mxu0 %v4810_v5 }
 0x738   : > { %4244 = vmatpush3.bf16.msra.mxu1 %v4604_v43  ;;  %v4618_v43 = vld [vmem:[#allocation6 + $0x218] sm:$0xff]  }
 0x739   : > { %4245 = vmatprep.subr.bf16.mxu1 %v4810_v5 }
 0x73a   : > { %4226 = vmatpush3.bf16.msra.mxu0 %v4597_v30  ;;  %v4611_v30 = vld [vmem:[#allocation6 + $0x1e0] sm:$0xff]  }
 0x73b   : > { %4227 = vmatprep.subr.bf16.mxu0 %v4810_v5 }
 0x73c   : > { %4246 = vmatpush3.bf16.msra.mxu1 %v4605_v44  ;;  %v4619_v44 = vld [vmem:[#allocation6 + $0x220] sm:$0xff]  }
 0x73d   : > { %4247 = vmatprep.subr.bf16.mxu1 %v4810_v5 }
 0x73e   : > { %4228 = vmatpush3.bf16.msra.mxu0 %v4598_v33 }
 0x740   : > { %4248 = vmatpush3.bf16.msra.mxu1 %v4606_v45  ;;  %v4620_v45 = vld [vmem:[#allocation6 + $0x228] sm:$0xff]  }
 0x741   : > { %4230 = vmatmul.mubr.bf16.vlgmr.msra.gmra.mrb[36].mxu0 %v2860_v37  ;;  %4253 = vmatprep.subr.bf16.mxu1 %v4810_v5 }
 0x7f4   : > { %v2736_v46 = vpop.f32.mrb[32].mxu0 }
 0x7f5   : > { %v2831_v47 = vpop.f32.mrb[24].mxu1  ;;  %v4191_v48 = vpop.f32.mrb[33].mxu0 }
 0x7f6   : > { %v2832_v49 = vadd.f32 %v2831_v47, %v2736_v46  ;;  %v4211_v50 = vpop.f32.mrb[25].mxu1  ;;  %v2739_v51 = vpop.f32.mrb[34].mxu0  ;;  %v4621_v46 = vld [vmem:[#allocation6 + $0x230] sm:$0xff]  }
 0x7f7   : > { %v2834_v52 = vpop.f32.mrb[26].mxu1  ;;  %v4192_v53 = vpop.f32.mrb[35].mxu0 }
 0x7f8   : > { %v2835_v35 = vadd.f32 %v2834_v52, %v2739_v51  ;;  %v4212_v54 = vpop.f32.mrb[27].mxu1  ;;  %v3622_v53 = vld [vmem:[%s5553_s10] ss:$0 sm:$0xff] }
 0x7f9   : > { %v3682_v54 = vld [vmem:[%s5551_s8 + $0x2] ss:$0 sm:$0xff] }
 0x814   : > { %v2944_v55 = vpop.f32.mrb[36].mxu0 }
 0x815   : > { %v2951_v57 = vadd.f32 %v2944_v55, %v2832_v49  ;;  %v4231_v12 = vpop.f32.mrb[37].mxu0  ;;  %v4622_v49 = vld [vmem:[#allocation6 + $0x238] sm:$0xff]  }
 0x816   : > { %v2947_v58 = vpop.f32.mrb[38].mxu0 }
 0x817   : > { %v2961_v15 = vadd.f32 %v3656_v56, %v2951_v57  ;;  %v2952_v59 = vadd.f32 %v2947_v58, %v2835_v35  ;;  %v4232_v60 = vpop.f32.mrb[39].mxu0 }
 0x819   : > { %v2965_v61 = vmul.f32 0.044715, %v2961_v15  ;;  %v2962_v62 = vadd.f32 %v3656_v56, %v2952_v59  ;;  %v2963_v1 = vmul.f32 0.5, %v2961_v15 }
 0x81b   : > { %v2967_v63 = vmul.f32 %v2965_v61, %v2961_v15  ;;  %v2966_v0 = vmul.f32 0.044715, %v2962_v62  ;;  %v2964_v17 = vmul.f32 0.5, %v2962_v62 }
 0x81d   : > { %v2969_v2 = vmul.f32 %v2967_v63, %v2961_v15  ;;  %v2968_v3 = vmul.f32 %v2966_v0, %v2962_v62 }
 0x81f   : > { %v2971_v4 = vadd.f32 %v2969_v2, %v2961_v15  ;;  %v2970_v7 = vmul.f32 %v2968_v3, %v2962_v62 }
 0x821   : > { %v2973_v8 = vmul.f32 0.7978846, %v2971_v4  ;;  %v2972_v9 = vadd.f32 %v2970_v7, %v2962_v62 }
 0x823   : > { %4643 = vtanh.f32 %v2973_v8  ;;  %v2974_v6 = vmul.f32 0.7978846, %v2972_v9 }
 0x825   : > { %4645 = vtanh.f32 %v2974_v6 }
 0x82d   : > { %v4644_v13 = vpop.eup %4643 }
 0x82e   : > { %v2977_v14 = vadd.f32 1.0, %v4644_v13 }
 0x82f   : > { %v4646_v16 = vpop.eup %4645 }
 0x830   : > { %v2978_v18 = vadd.f32 1.0, %v4646_v16  ;;  %v2979_v19 = vmul.f32 %v2977_v14, %v2963_v1 }
 0x832   : > { %v2980_v20 = vmul.f32 %v2978_v18, %v2964_v17 }
 0x834   : > { %v2981_v11 = vpack.c.bf16 %v2980_v20, %v2979_v19 }
 0x836   : > { %v2983_v21 = vrot.slane %v2981_v11, 4 }
 0x838   : > { %2985 = vst [vmem:[#allocation2 + $0x8] ss:$-4 sps:$4 sm:$0xff] %v2983_v21  }
 0x83f   : > { %v3006_v22 = vld [vmem:[#allocation2] sm:$0xfc]  ;;  %v3007_v10 = vld [vmem:[#allocation2 + $0x8] sm:$0x3] }
 0x840   : > { %v3029_v23 = vrot.slane %v3006_v22, 2  ;;  %v3030_v24 = vrot.slane %v3007_v10, 2  ;;  %v2987_v33 = vld [vmem:[#allocation2] sm:$0xf0]  ;;  %v2988_v34 = vld [vmem:[#allocation2 + $0x8] sm:$0xf] }
 0x841   : > { %v3124_v37 = vrot.slane %v2987_v33, 4  ;;  %v3125_v38 = vrot.slane %v2988_v34, 4  ;;  %v3008_v47 = vld [vmem:[#allocation2] sm:$0xc0]  ;;  %v3009_v48 = vld [vmem:[#allocation2 + $0x8] sm:$0x3f] }
 0x842   : > { %v3031_v26 = vsel %vm2649_vm0, %v3029_v23, %v3030_v24  ;;  %v3236_v50 = vrot.slane %v3008_v47, 6  ;;  %v3237_v51 = vrot.slane %v3009_v48, 6 }
 0x843   : > { %4250 = vmatmul.mubr.bf16.vlgmr.msra.gmra.mrb[20].mxu1 %v3031_v26  ;;  %v3126_v40 = vsel %vm1080_vm13, %v3124_v37, %v3125_v38 }
 0x844   : > { %4254 = vmatpush3.bf16.msra.mxu1 %v4607_v25  ;;  %4269 = vmatprep.mubr.msk.bf16.mxu1 %vm4822_vm10, %v4810_v5  ;;  %v3238_v52 = vsel %vm2857_vm1, %v3236_v50, %v3237_v51 }
 0x845   : > { %4255 = vmatprep.subr.bf16.mxu1 %v4810_v5 }
 0x848   : > { %4256 = vmatpush3.bf16.msra.mxu1 %v4608_v27 }
 0x849   : > { %4257 = vmatprep.subr.bf16.mxu1 %v4810_v5 }
 0x84c   : > { %4258 = vmatpush3.bf16.msra.mxu1 %v4609_v28 }
 0x84d   : > { %4259 = vmatprep.subr.bf16.mxu1 %v4810_v5 }
 0x850   : > { %4260 = vmatpush3.bf16.msra.mxu1 %v4610_v29 }
 0x851   : > { %4261 = vmatprep.subr.bf16.mxu1 %v4810_v5 }
 0x854   : > { %4262 = vmatpush3.bf16.msra.mxu1 %v4611_v30 }
 0x855   : > { %4263 = vmatprep.subr.bf16.mxu1 %v4810_v5 }
 0x858   : > { %4264 = vmatpush3.bf16.msra.mxu1 %v4612_v31 }
 0x859   : > { %4265 = vmatprep.subr.bf16.mxu1 %v4810_v5 }
 0x85c   : > { %4266 = vmatpush3.bf16.msra.mxu1 %v4613_v32 }
 0x85d   : > { %4267 = vmatprep.subr.bf16.mxu1 %v4810_v5 }
 0x860   : > { %4268 = vmatpush3.bf16.msra.mxu1 %v4614_v36 }
 0x861   : > { %4273 = vmatprep.subr.bf16.mxu1 %v4810_v5 }
 0x863   : > { %4270 = vmatmul.mubr.bf16.vlgmr.msra.gmra.mrb[20].mxu1 %v3126_v40 }
 0x864   : > { %4274 = vmatpush3.bf16.msra.mxu1 %v4615_v39  ;;  %4289 = vmatprep.mubr.msk.bf16.mxu1 %vm4822_vm10, %v4810_v5 }
 0x865   : > { %4275 = vmatprep.subr.bf16.mxu1 %v4810_v5 }
 0x868   : > { %4276 = vmatpush3.bf16.msra.mxu1 %v4616_v41 }
 0x869   : > { %4277 = vmatprep.subr.bf16.mxu1 %v4810_v5 }
 0x86c   : > { %4278 = vmatpush3.bf16.msra.mxu1 %v4617_v42 }
 0x86d   : > { %4279 = vmatprep.subr.bf16.mxu1 %v4810_v5 }
 0x870   : > { %4280 = vmatpush3.bf16.msra.mxu1 %v4618_v43 }
 0x871   : > { %4281 = vmatprep.subr.bf16.mxu1 %v4810_v5 }
 0x874   : > { %4282 = vmatpush3.bf16.msra.mxu1 %v4619_v44 }
 0x875   : > { %4283 = vmatprep.subr.bf16.mxu1 %v4810_v5 }
 0x878   : > { %4284 = vmatpush3.bf16.msra.mxu1 %v4620_v45 }
 0x879   : > { %4285 = vmatprep.subr.bf16.mxu1 %v4810_v5 }
 0x87c   : > { %4286 = vmatpush3.bf16.msra.mxu1 %v4621_v46 }
 0x87d   : > { %4287 = vmatprep.subr.bf16.mxu1 %v4810_v5 }
 0x880   : > { %4288 = vmatpush3.bf16.msra.mxu1 %v4622_v49 }
 0x883   : > { %4290 = vmatmul.mubr.bf16.vlgmr.msra.gmra.mrb[20].mxu1 %v3238_v52 }
 0x956   : > { %v3322_v35 = vpop.f32.mrb[20].mxu1 }
 0x957   : > { %v4325_v55 = vadd.f32 %v3622_v53, %v3322_v35  ;;  %v4291_v5 = vpop.f32.mrb[21].mxu1 }
 0x958   : > { %v3325_v56 = vpop.f32.mrb[22].mxu1 }
 0x959   : > { %v4326_v57 = vadd.f32 %v4325_v55, %v3682_v54  ;;  %v4327_v12 = vadd.f32 %v3622_v53, %v3325_v56  ;;  %v4292_v58 = vpop.f32.mrb[23].mxu1 }
 0x95b   : > { %3343 = vst [vmem:[%s456_s14] sm:$0xff] %v4326_v57  ;;  %v4328_v15 = vadd.f32 %v4327_v12, %v3682_v54 }
 0x95d   : > { %3344 = vst [vmem:[%s456_s14 + $0x8] sm:$0xff] %v4328_v15 }
 0x95e   : > { %4744 = shalt.err (!%p4741_p9)
}
 0x95f   : > { %s4745_s17 = scalar_lea.hbm %s5500_s23, 256  ;;  %s4749_s25 = scalar_lea.hbm %s5582_s11, 512 }
 0x960   : > { %p4746_p2 = scmp.ne.s32.totalorder %s5500_s23, %s4745_s17  ;;  %p4750_p5 = scmp.lt.u32.totalorder %s5500_s23, %s5582_s11 }
 0x961   : > { %p4751_p10 = scmp.lt.u32.totalorder %s4749_s25, %s4745_s17  ;;  %p4753_p4 = scmp.lt.u32.totalorder %s4745_s17, %s5500_s23 }
 0x962   : > { %p4747_p0 = pnand %p4746_p2, %p5583_p7 }
 0x963   : > { %p4752_p12 = por %p4751_p10, %p4750_p5 }
 0x964   : > { %p4748_p3 = pneg %p4747_p0 }
 0x965   : > { %p4754_p8 = por %p4753_p4, %p4752_p12 }
 0x967   : > { %p4755_p11 = pnand %p4754_p8, %p4748_p3 }
 0x969   : > { %4758 = shalt.err (!%p4755_p11)
}
 0x96a   : > { %s4824_s14 = smov 128   ;;  %s4825_s19 = smov 8  }
 0x96b   : > { %4353 = dma.vmem_to_hbm [thread:$0]  (%p5583_p7), %s5495_s16, 256, %s5500_s23, %s5502_s13, %s4824_s14, %s4824_s14, %s4825_s19  }
 0x96c PF: > { %s5584_s12 = sld [smem:[#allocation15_spill]]  ;;  %s5585_s15 = sld [smem:[#allocation13_spill]] }
 0x96d   : > { %s5586_s22 = sld [smem:[#allocation18_spill]] }
 0x972   : > { %p4375_p13 = scmp.ge.s32.totalorder %s5584_s12, 2  ;;  %s3374_s21 = sand.u32 1, %s5585_s15  }
 0x973   : > { %p5587_p1 = scmp.ne.s32.totalorder %s5586_s22, 0  ;;  %s3375_s24 = scalar_lea.sflag [#allocation5], %s3374_s21 }
 0x975   : > { %p4366_p6 = pnand %p4375_p13, %p5587_p1 }
 0x977   : > { %4784 = dma.done.wait (!%p4366_p6), %s3375_s24, 256  }
 0x978   : > { %4786 = vsyncadd (!%p4366_p6), %s3375_s24, 4294967040  ;;  %s5588_s20 = sld [smem:[#allocation16_spill]]  ;;  %s5589_s26 = sld [smem:[#allocation14_spill]] }
 0x979   : > { %s5590_s19 = sld [smem:[#allocation17_spill]]  ;;  %s5591_s17 = smov %s4793_s18 }
 0x97e   : > { %p23_p9 = scmp.ge.s32.totalorder %s5588_s20, 4   ;;  %s5592_s18 = smov %s5589_s26 }
 0x980   :  { %25 = sbr.rel (!%p23_p9) target bundleno = 7 (0x7), region = 138 }
 0x987   :  { %3380 = vsyncpa [#allocation4], 1 }
 0x988   :  { %3382 = vsyncpa [#allocation4 + $0x1], 1 }
 0x989   :  { %3383 = vsyncpa [#allocation7], 1 }
 0x98a   :  { %3384 = vsyncpa [#allocation5], 1 }
 0x98b   :  { %3386 = vsyncpa [#allocation5 + $0x1], 1 }

</bundles_post_ra>
